<compile_context>
chip_gen: v5e
topology: v5e:2x2
jax: 0.10.0
libtpu: 0.0.40
codegen_flags: <defaults>
</compile_context>

<pallas_src>
import functools

import jax
import jax.numpy as jnp
from jax.experimental import pallas as pl
from jax.experimental.pallas import tpu as pltpu

BN_EPS = 1e-5
LEAKY_SLOPE = 0.01            # nn.LeakyReLU() default negative_slope
LANE = 128                    # TPU lane width
_VMEM_LIMIT = 32 * 1024 * 1024
_MAX_RESIDENT_CONV_BYTES = 12 * 1024 * 1024   # budget for the resident conv scratch


def _round_up(v, m):
    return ((v + m - 1) // m) * m


def _conv_out_size(size, k, s, p, d):
    return (size + 2 * p - d * (k - 1) - 1) // s + 1


# ---------------------------------------------------------------------------
# Fused per-layer kernel: phase 0 = conv matmul + bias + BN stats (resident
# conv in VMEM scratch); phase 1 = BN fold (at mm==0) + scale/shift + LeakyReLU.
# ---------------------------------------------------------------------------
def _make_fused_kernel(*, tile_m, m_valid, need_mask, emit_conv):
    inv_m = 1.0 / float(m_valid)

    def kernel(patches_ref, w_ref, b_ref, g_ref, beta_ref, *rest):
        if emit_conv:
            (act_ref, conv_ref, conv_buf, sum_ref, sq_ref,
             scale_ref, shift_ref) = rest
        else:
            conv_ref = None
            (act_ref, conv_buf, sum_ref, sq_ref,
             scale_ref, shift_ref) = rest

        ph = pl.program_id(0)   # 0: matmul + stats, 1: normalize + activation
        mm = pl.program_id(1)   # M tile

        @pl.when(ph == 0)
        def _phase0():
            @pl.when(mm == 0)
            def _init():
                sum_ref[...] = jnp.zeros_like(sum_ref)
                sq_ref[...] = jnp.zeros_like(sq_ref)

            # bf16 x bf16 -> f32 on the MXU.
            conv = jnp.dot(patches_ref[...], w_ref[...],
                           preferred_element_type=jnp.float32)
            conv = conv + b_ref[...]                  # broadcast (1, Cpad)
            conv_buf[mm] = conv                       # stays resident in VMEM
            if emit_conv:
                conv_ref[...] = conv                  # skip tap (pre-BN), f32

            cm = conv
            if need_mask:                             # static: only if M padded
                rows = mm * tile_m + jax.lax.broadcasted_iota(
                    jnp.int32, conv.shape, 0)
                cm = jnp.where(rows < m_valid, conv, 0.0)
            # One-pass per-channel stats over the full M axis (f32).
            sum_ref[...] += jnp.sum(cm, axis=0, keepdims=True)
            sq_ref[...] += jnp.sum(cm * cm, axis=0, keepdims=True)

        @pl.when(ph == 1)
        def _phase1():
            @pl.when(mm == 0)
            def _fold():
                # BatchNorm training semantics: biased batch variance.
                mean = sum_ref[...] * inv_m
                var = jnp.maximum(sq_ref[...] * inv_m - mean * mean, 0.0)
                scale = g_ref[...] * jax.lax.rsqrt(var + BN_EPS)
                scale_ref[...] = scale
                shift_ref[...] = beta_ref[...] - mean * scale

            y = conv_buf[mm] * scale_ref[...] + shift_ref[...]
            act_ref[...] = jnp.where(y >= 0, y, LEAKY_SLOPE * y).astype(act_ref.dtype)

    return kernel


def _fused_conv_bn_lrelu(patches2d, w2d, bias, gamma, beta, *, emit_conv):
    """patches2d: (M, K) bf16, w2d: (K, Cpad) bf16, bias/gamma/beta: (1, Cpad) f32."""
    patches2d = patches2d.astype(jnp.bfloat16)
    w2d = w2d.astype(jnp.bfloat16)
    m, kdim = patches2d.shape
    c_pad = w2d.shape[1]

    tile_m = min(512, _round_up(m, 16))
    m_pad = _round_up(m, tile_m)
    need_mask = (m_pad != m)
    if need_mask:
        patches2d = jnp.pad(patches2d, ((0, m_pad - m), (0, 0)))
    n_m = m_pad // tile_m
    last = n_m - 1

    # The full conv block stays VMEM-resident between the two phases.
    # TODO(synk): for large M spill the conv to HBM (two-pass) instead of the
    # resident scratch; not needed at these shapes.
    assert m_pad * c_pad * 4 <= _MAX_RESIDENT_CONV_BYTES, (m_pad, c_pad)

    kernel = _make_fused_kernel(tile_m=tile_m, m_valid=m,
                                need_mask=need_mask, emit_conv=emit_conv)

    in_specs = [
        # Patches are only consumed in phase 0; park the block index on the last
        # tile during phase 1 so no extra DMA is issued.
        pl.BlockSpec((tile_m, kdim),
                     lambda ph, mm: (mm * (1 - ph) + last * ph, 0)),
        pl.BlockSpec((kdim, c_pad), lambda ph, mm: (0, 0)),   # VMEM-resident
        pl.BlockSpec((1, c_pad), lambda ph, mm: (0, 0)),      # bias
        pl.BlockSpec((1, c_pad), lambda ph, mm: (0, 0)),      # gamma
        pl.BlockSpec((1, c_pad), lambda ph, mm: (0, 0)),      # beta
    ]

    # Activation blocks are only written in phase 1; park the block index at 0
    # during phase 0 so no junk write-back happens.
    act_spec = pl.BlockSpec((tile_m, c_pad), lambda ph, mm: (mm * ph, 0))
    if emit_conv:
        out_shape = (jax.ShapeDtypeStruct((m_pad, c_pad), jnp.bfloat16),
                     jax.ShapeDtypeStruct((m_pad, c_pad), jnp.float32))
        # Conv blocks are written in phase 0; park on the last tile in phase 1.
        out_specs = (act_spec,
                     pl.BlockSpec((tile_m, c_pad),
                                  lambda ph, mm: (mm * (1 - ph) + last * ph, 0)))
        conv_out_bytes = 4 * m_pad * c_pad
    else:
        out_shape = jax.ShapeDtypeStruct((m_pad, c_pad), jnp.bfloat16)
        out_specs = act_spec
        conv_out_bytes = 0

    cost = pl.CostEstimate(
        flops=2 * m_pad * kdim * c_pad + 8 * m_pad * c_pad,
        transcendentals=c_pad,
        bytes_accessed=2 * (m_pad * kdim + kdim * c_pad + m_pad * c_pad)
                       + conv_out_bytes + 12 * c_pad)

    outs = pl.pallas_call(
        kernel,
        out_shape=out_shape,
        grid_spec=pltpu.PrefetchScalarGridSpec(
            num_scalar_prefetch=0,
            grid=(2, n_m),                          # (phase, M tile)
            in_specs=in_specs,
            out_specs=out_specs,
            scratch_shapes=[
                pltpu.VMEM((n_m, tile_m, c_pad), jnp.float32),  # resident conv
                pltpu.VMEM((1, c_pad), jnp.float32),            # channel sum
                pltpu.VMEM((1, c_pad), jnp.float32),            # channel sum sq
                pltpu.VMEM((1, c_pad), jnp.float32),            # BN scale
                pltpu.VMEM((1, c_pad), jnp.float32),            # BN shift
            ]),
        # TODO(synk): per-tile partial stats + core_parallel on the M axis would
        # let phase 0 shard across v7x's two TensorCores; that needs a
        # cross-core stats reduction, so both axes stay "arbitrary" here.
        compiler_params=pltpu.CompilerParams(
            dimension_semantics=("arbitrary", "arbitrary"),
            vmem_limit_bytes=_VMEM_LIMIT),
        cost_estimate=cost,
    )(patches2d, w2d, bias, gamma, beta)

    if emit_conv:
        act2d, conv2d = outs
        return act2d[:m], conv2d[:m]
    return outs[:m], None


# ---------------------------------------------------------------------------
# XLA glue: im2col patch extraction (NHWC), parameter padding, layer loop.
# ---------------------------------------------------------------------------
def _extract_patches_nhwc(x, k, stride, padding, dilation):
    """x: (N, H, W, C) -> patches (N, OH, OW, k*k*C), ordering (kh, kw, cin)."""
    n, h, w, c = x.shape
    oh = _conv_out_size(h, k, stride, padding, dilation)
    ow = _conv_out_size(w, k, stride, padding, dilation)
    xp = jnp.pad(x, ((0, 0), (padding, padding), (padding, padding), (0, 0)))
    cols = []
    for kh in range(k):
        for kw in range(k):
            h0 = kh * dilation
            w0 = kw * dilation
            sl = xp[:, h0:h0 + stride * (oh - 1) + 1:stride,
                     w0:w0 + stride * (ow - 1) + 1:stride, :]
            cols.append(sl)
    return jnp.concatenate(cols, axis=-1), oh, ow


def init_skip_encoder_params(key, num_layers, kernel_size):
    """Deterministic synthetic parameters (shapes match nn.Conv2d/BatchNorm2d)."""
    params = []
    cin = 1  # self.input_size
    for i in range(num_layers):
        cout = int(min(128, 32 * 2 ** i))
        k = kernel_size[i]
        key, kw_key, kb_key = jax.random.split(key, 3)
        w = 0.1 * jax.random.normal(kw_key, (cout, cin, k, k), jnp.float32)
        b = 0.1 * jax.random.normal(kb_key, (cout,), jnp.float32)
        gamma = jnp.ones((cout,), jnp.float32)   # BatchNorm2d default init
        beta = jnp.zeros((cout,), jnp.float32)
        params.append(dict(w=w, b=b, gamma=gamma, beta=beta))
        cin = cout
    return params


@functools.partial(jax.jit, static_argnames=("num_layers", "kernel_size",
                                             "stride", "padding", "dilation"))
def skip_encoder_forward(x_nchw, params, *, num_layers, kernel_size, stride,
                         padding, dilation):
    """Replicates SkipEncoder.forward.  Input/outputs are NCHW like PyTorch."""
    skippos = num_layers // 2 - 1
    # bf16 activations end-to-end; all accumulation happens in f32 in-kernel.
    x = jnp.transpose(x_nchw, (0, 2, 3, 1)).astype(jnp.bfloat16)   # -> NHWC
    convskip = None

    # TODO(synk): fuse the im2col extraction (pad + strided slices) into the
    # Pallas kernel (k*k accumulated (tile_M,Cin)x(Cin,Cout) matmuls over DMA'd
    # activation tiles) to remove the inter-layer patches HBM round trip.
    for i in range(num_layers):
        p = params[i]
        k, s, pad, dil = kernel_size[i], stride[i], padding[i], dilation[i]
        cout, cin = p["w"].shape[0], p["w"].shape[1]
        assert x.shape[-1] == cin
        cout_pad = _round_up(cout, LANE)

        patches, oh, ow = _extract_patches_nhwc(x, k, s, pad, dil)
        n = patches.shape[0]
        kdim = k * k * cin
        m = n * oh * ow
        patches2d = patches.reshape(m, kdim)

        # (Cout, Cin, KH, KW) -> (KH, KW, Cin, Cout_pad) -> (K, Cout_pad) bf16
        # (matches the (kh, kw, cin) ordering of the im2col concat above).
        w = jnp.transpose(p["w"], (2, 3, 1, 0)).astype(jnp.float32)
        w = jnp.pad(w, ((0, 0), (0, 0), (0, 0), (0, cout_pad - cout)))
        w2d = w.reshape(kdim, cout_pad).astype(jnp.bfloat16)

        def _pad_c(v):
            return jnp.pad(v.astype(jnp.float32),
                           (0, cout_pad - cout)).reshape(1, cout_pad)

        # Padded channels get bias = gamma = beta = 0 so they stay exactly zero
        # through conv, BN (var=0 -> scale=0) and LeakyReLU.
        bias, gamma, beta = _pad_c(p["b"]), _pad_c(p["gamma"]), _pad_c(p["beta"])

        act2d, conv2d = _fused_conv_bn_lrelu(
            patches2d, w2d, bias, gamma, beta, emit_conv=(i == skippos))

        # Drop the 128-lane channel padding before the next layer's im2col so
        # the next contraction dim is k*k*Cout_true, not k*k*Cout_pad.
        x = act2d[:, :cout].reshape(n, oh, ow, cout)
        if i == skippos:
            convskip = conv2d[:, :cout].reshape(n, oh, ow, cout)

    out = jnp.transpose(x, (0, 3, 1, 2)).astype(jnp.float32)       # NHWC->NCHW
    convskip = jnp.transpose(convskip, (0, 3, 1, 2))               # NHWC->NCHW (fixed)
    return out, convskip


# ---------------------------------------------------------------------------
# Pure-JAX references (XLA conv + BN(training) + LeakyReLU) for validation.
# operand_dtype=bf16 mirrors the kernel's bf16-operand / f32-accumulate recipe.
# ---------------------------------------------------------------------------
def _reference_forward(x_nchw, params, num_layers, kernel_size, stride,
                       padding, dilation, operand_dtype=jnp.float32):
    skippos = num_layers // 2 - 1
    x = x_nchw.astype(operand_dtype)
    convskip = None
    for i in range(num_layers):
        p = params[i]
        conv = jax.lax.conv_general_dilated(
            x.astype(operand_dtype), p["w"].astype(operand_dtype),
            window_strides=(stride[i], stride[i]),
            padding=[(padding[i], padding[i])] * 2,
            rhs_dilation=(dilation[i], dilation[i]),
            dimension_numbers=("NCHW", "OIHW", "NCHW"),
            preferred_element_type=jnp.float32,
            precision=jax.lax.Precision.HIGHEST)
        conv = conv + p["b"].reshape(1, -1, 1, 1).astype(jnp.float32)
        if i == skippos:
            convskip = conv
        mean = jnp.mean(conv, axis=(0, 2, 3), keepdims=True)
        var = jnp.mean((conv - mean) ** 2, axis=(0, 2, 3), keepdims=True)
        y = (conv - mean) * jax.lax.rsqrt(var + BN_EPS)
        y = y * p["gamma"].reshape(1, -1, 1, 1) + p["beta"].reshape(1, -1, 1, 1)
        act = jnp.where(y >= 0, y, LEAKY_SLOPE * y)
        x = act.astype(operand_dtype)
    return x.astype(jnp.float32), convskip


def _rel_rms(a, b):
    d = a.astype(jnp.float32) - b.astype(jnp.float32)
    return float(jnp.sqrt(jnp.mean(d * d)) /
                 (jnp.sqrt(jnp.mean(b.astype(jnp.float32) ** 2)) + 1e-12))


if __name__ == "__main__":
    # Module hyper-parameters (small config consistent with SkipEncoder).
    num_layers = 2
    kernel_size = (3, 3)
    stride = (2, 2)
    padding = (1, 1)
    dilation = (1, 1)

    key = jax.random.PRNGKey(0)
    key, xkey, pkey = jax.random.split(key, 3)

    # SkipEncoder expects 1 input channel and 64x64 spatial (input_shape = 64).
    x = jax.random.normal(xkey, (2, 1, 64, 64), jnp.float32)  # NCHW, like torch
    params = init_skip_encoder_params(pkey, num_layers, kernel_size)

    out, convskip = skip_encoder_forward(
        x, params,
        num_layers=num_layers, kernel_size=kernel_size, stride=stride,
        padding=padding, dilation=dilation)
    jax.block_until_ready((out, convskip))

    # Shape checks: layer0 (skip tap) 64->32 spatial, 32 ch; layer1 -> 16, 64 ch.
    assert convskip.shape == (2, 32, 32, 32), convskip.shape
    assert out.shape == (2, 64, 16, 16), out.shape
    assert bool(jnp.all(jnp.isfinite(out))) and bool(jnp.all(jnp.isfinite(convskip)))

    # (1) Element-wise check against an XLA reference with the SAME bf16
    #     operand / f32 accumulation recipe (validates the kernel itself).
    out_ref_bf, skip_ref_bf = _reference_forward(
        x, params, num_layers, kernel_size, stride, padding, dilation,
        operand_dtype=jnp.bfloat16)
    assert bool(jnp.allclose(convskip, skip_ref_bf, rtol=2e-2, atol=2e-2)), \
        float(jnp.max(jnp.abs(convskip - skip_ref_bf)))
    assert bool(jnp.allclose(out, out_ref_bf, rtol=2e-2, atol=2e-2)), \
        float(jnp.max(jnp.abs(out - out_ref_bf)))

    # (2) Aggregate fidelity check against the pure-f32 reference (bounds the
    #     bf16 precision loss without a fragile max-statistic).
    out_ref32, skip_ref32 = _reference_forward(
        x, params, num_layers, kernel_size, stride, padding, dilation,
        operand_dtype=jnp.float32)
    assert _rel_rms(convskip, skip_ref32) < 2e-2, _rel_rms(convskip, skip_ref32)
    assert _rel_rms(out, out_ref32) < 2e-2, _rel_rms(out, out_ref32)

    print("KERNEL_OK")
</pallas_src>

<mosaic_0001>
module attributes {stable_mosaic.version = 11 : i64} {
  func.func @kernel(%arg0: i32, %arg1: i32, %arg2: memref<512x9xbf16, #tpu.memory_space<vmem>>, %arg3: memref<9x128xbf16, #tpu.memory_space<vmem>>, %arg4: memref<1x128xf32, #tpu.memory_space<vmem>>, %arg5: memref<1x128xf32, #tpu.memory_space<vmem>>, %arg6: memref<1x128xf32, #tpu.memory_space<vmem>>, %arg7: memref<512x128xbf16, #tpu.memory_space<vmem>>, %arg8: memref<512x128xf32, #tpu.memory_space<vmem>>, %arg9: memref<4x512x128xf32, #tpu.memory_space<vmem>>, %arg10: memref<1x128xf32, #tpu.memory_space<vmem>>, %arg11: memref<1x128xf32, #tpu.memory_space<vmem>>, %arg12: memref<1x128xf32, #tpu.memory_space<vmem>>, %arg13: memref<1x128xf32, #tpu.memory_space<vmem>>) attributes {dimension_semantics = [#tpu.dimension_semantics<arbitrary>, #tpu.dimension_semantics<arbitrary>], iteration_bounds = array<i64: 2, 4>, scalar_prefetch = 0 : i64, scratch_operands = 5 : i64, tpu.core_type = #tpu.core_type<tc>, window_params = [{transform_indices = @transform_0, window_bounds = array<i64: 512, 9>}, {pipeline_mode = #tpu.pipeline_mode<synchronous>, transform_indices = @transform_1, window_bounds = array<i64: 9, 128>}, {pipeline_mode = #tpu.pipeline_mode<synchronous>, transform_indices = @transform_2, window_bounds = array<i64: 1, 128>}, {pipeline_mode = #tpu.pipeline_mode<synchronous>, transform_indices = @transform_3, window_bounds = array<i64: 1, 128>}, {pipeline_mode = #tpu.pipeline_mode<synchronous>, transform_indices = @transform_4, window_bounds = array<i64: 1, 128>}, {transform_indices = @transform_5, window_bounds = array<i64: 512, 128>}, {transform_indices = @transform_6, window_bounds = array<i64: 512, 128>}]} {
    %c0_i32 = arith.constant 0 : i32
    %0 = arith.cmpi eq, %arg0, %c0_i32 : i32
    %1 = arith.extui %0 : i1 to i32
    %c0_i32_0 = arith.constant 0 : i32
    %2 = arith.cmpi ne, %1, %c0_i32_0 : i32
    scf.if %2 {
      %c0_i32_2 = arith.constant 0 : i32
      %6 = arith.cmpi eq, %arg1, %c0_i32_2 : i32
      %7 = arith.extui %6 : i1 to i32
      %c0_i32_3 = arith.constant 0 : i32
      %8 = arith.cmpi ne, %7, %c0_i32_3 : i32
      scf.if %8 {
        %cst_23 = arith.constant 0.000000e+00 : f32
        %31 = vector.broadcast %cst_23 : f32 to vector<1x128xf32>
        %c0_24 = arith.constant 0 : index
        %c0_25 = arith.constant 0 : index
        %32 = vector.load %arg10[%c0_24, %c0_25] : memref<1x128xf32, #tpu.memory_space<vmem>>, vector<1x128xf32>
        tpu.vector_store %arg10[%c0_24, %c0_25], %31 {strides = array<i32>} : memref<1x128xf32, #tpu.memory_space<vmem>>, vector<1x128xf32>,
        %cst_26 = arith.constant 0.000000e+00 : f32
        %33 = vector.broadcast %cst_26 : f32 to vector<1x128xf32>
        %c0_27 = arith.constant 0 : index
        %c0_28 = arith.constant 0 : index
        %34 = vector.load %arg11[%c0_27, %c0_28] : memref<1x128xf32, #tpu.memory_space<vmem>>, vector<1x128xf32>
        tpu.vector_store %arg11[%c0_27, %c0_28], %33 {strides = array<i32>} : memref<1x128xf32, #tpu.memory_space<vmem>>, vector<1x128xf32>,
      } else {
      }
      %c0 = arith.constant 0 : index
      %c0_4 = arith.constant 0 : index
      %9 = vector.load %arg2[%c0, %c0_4] : memref<512x9xbf16, #tpu.memory_space<vmem>>, vector<512x9xbf16>
      %c0_5 = arith.constant 0 : index
      %c0_6 = arith.constant 0 : index
      %10 = vector.load %arg3[%c0_5, %c0_6] : memref<9x128xbf16, #tpu.memory_space<vmem>>, vector<9x128xbf16>
      %cst = arith.constant dense<0.000000e+00> : vector<512x128xf32>
      %11 = tpu.matmul %9, %10, %cst {dimension_numbers = #tpu.dot_dimension_numbers<[1], [0], [0], [1], [0, 0, 1, 1], [], []>} : vector<512x9xbf16>, vector<9x128xbf16>, vector<512x128xf32> -> vector<512x128xf32>
      %c0_7 = arith.constant 0 : index
      %c0_8 = arith.constant 0 : index
      %12 = vector.load %arg4[%c0_7, %c0_8] : memref<1x128xf32, #tpu.memory_space<vmem>>, vector<1x128xf32>
      %13 = vector.broadcast %12 : vector<1x128xf32> to vector<512x128xf32>
      %14 = arith.addf %11, %13 : vector<512x128xf32>
      %15 = arith.index_cast %arg1 : i32 to index
      %c0_9 = arith.constant 0 : index
      %c0_10 = arith.constant 0 : index
      %16 = vector.load %arg9[%15, %c0_9, %c0_10] : memref<4x512x128xf32, #tpu.memory_space<vmem>>, vector<1x512x128xf32>
      %17 = vector.shape_cast %16 : vector<1x512x128xf32> to vector<512x128xf32>
      %18 = vector.shape_cast %14 : vector<512x128xf32> to vector<1x512x128xf32>
      tpu.vector_store %arg9[%15, %c0_9, %c0_10], %18 {strides = array<i32>} : memref<4x512x128xf32, #tpu.memory_space<vmem>>, vector<1x512x128xf32>,
      %c0_11 = arith.constant 0 : index
      %c0_12 = arith.constant 0 : index
      %19 = vector.load %arg8[%c0_11, %c0_12] : memref<512x128xf32, #tpu.memory_space<vmem>>, vector<512x128xf32>
      tpu.vector_store %arg8[%c0_11, %c0_12], %14 {strides = array<i32>} : memref<512x128xf32, #tpu.memory_space<vmem>>, vector<512x128xf32>,
      %c0_13 = arith.constant 0 : index
      %c0_14 = arith.constant 0 : index
      %20 = vector.load %arg10[%c0_13, %c0_14] : memref<1x128xf32, #tpu.memory_space<vmem>>, vector<1x128xf32>
      %cst_15 = arith.constant dense<0.000000e+00> : vector<128xf32>
      %21 = vector.multi_reduction <add>, %14, %cst_15 [0] : vector<512x128xf32> to vector<128xf32>
      %22 = vector.shape_cast %21 : vector<128xf32> to vector<1x128xf32>
      %23 = arith.addf %20, %22 : vector<1x128xf32>
      %c0_16 = arith.constant 0 : index
      %c0_17 = arith.constant 0 : index
      %24 = vector.load %arg10[%c0_16, %c0_17] : memref<1x128xf32, #tpu.memory_space<vmem>>, vector<1x128xf32>
      tpu.vector_store %arg10[%c0_16, %c0_17], %23 {strides = array<i32>} : memref<1x128xf32, #tpu.memory_space<vmem>>, vector<1x128xf32>,
      %c0_18 = arith.constant 0 : index
      %c0_19 = arith.constant 0 : index
      %25 = vector.load %arg11[%c0_18, %c0_19] : memref<1x128xf32, #tpu.memory_space<vmem>>, vector<1x128xf32>
      %26 = arith.mulf %14, %14 : vector<512x128xf32>
      %cst_20 = arith.constant dense<0.000000e+00> : vector<128xf32>
      %27 = vector.multi_reduction <add>, %26, %cst_20 [0] : vector<512x128xf32> to vector<128xf32>
      %28 = vector.shape_cast %27 : vector<128xf32> to vector<1x128xf32>
      %29 = arith.addf %25, %28 : vector<1x128xf32>
      %c0_21 = arith.constant 0 : index
      %c0_22 = arith.constant 0 : index
      %30 = vector.load %arg11[%c0_21, %c0_22] : memref<1x128xf32, #tpu.memory_space<vmem>>, vector<1x128xf32>
      tpu.vector_store %arg11[%c0_21, %c0_22], %29 {strides = array<i32>} : memref<1x128xf32, #tpu.memory_space<vmem>>, vector<1x128xf32>,
    } else {
    }
    %c1_i32 = arith.constant 1 : i32
    %3 = arith.cmpi eq, %arg0, %c1_i32 : i32
    %4 = arith.extui %3 : i1 to i32
    %c0_i32_1 = arith.constant 0 : i32
    %5 = arith.cmpi ne, %4, %c0_i32_1 : i32
    scf.if %5 {
      %c0_i32_2 = arith.constant 0 : i32
      %6 = arith.cmpi eq, %arg1, %c0_i32_2 : i32
      %7 = arith.extui %6 : i1 to i32
      %c0_i32_3 = arith.constant 0 : i32
      %8 = arith.cmpi ne, %7, %c0_i32_3 : i32
      scf.if %8 {
        %c0_12 = arith.constant 0 : index
        %c0_13 = arith.constant 0 : index
        %25 = vector.load %arg10[%c0_12, %c0_13] : memref<1x128xf32, #tpu.memory_space<vmem>>, vector<1x128xf32>
        %cst_14 = arith.constant 4.8828125E-4 : f32
        %26 = vector.broadcast %cst_14 : f32 to vector<1x128xf32>
        %27 = arith.mulf %25, %26 : vector<1x128xf32>
        %c0_15 = arith.constant 0 : index
        %c0_16 = arith.constant 0 : index
        %28 = vector.load %arg11[%c0_15, %c0_16] : memref<1x128xf32, #tpu.memory_space<vmem>>, vector<1x128xf32>
        %cst_17 = arith.constant 4.8828125E-4 : f32
        %29 = vector.broadcast %cst_17 : f32 to vector<1x128xf32>
        %30 = arith.mulf %28, %29 : vector<1x128xf32>
        %31 = arith.mulf %27, %27 : vector<1x128xf32>
        %32 = arith.subf %30, %31 : vector<1x128xf32>
        %cst_18 = arith.constant 0.000000e+00 : f32
        %33 = vector.broadcast %cst_18 : f32 to vector<1x128xf32>
        %34 = arith.maximumf %32, %33 : vector<1x128xf32>
        %c0_19 = arith.constant 0 : index
        %c0_20 = arith.constant 0 : index
        %35 = vector.load %arg5[%c0_19, %c0_20] : memref<1x128xf32, #tpu.memory_space<vmem>>, vector<1x128xf32>
        %cst_21 = arith.constant 9.99999974E-6 : f32
        %36 = vector.broadcast %cst_21 : f32 to vector<1x128xf32>
        %37 = arith.addf %34, %36 : vector<1x128xf32>
        %38 = math.rsqrt %37 : vector<1x128xf32>
        %39 = arith.mulf %35, %38 : vector<1x128xf32>
        %c0_22 = arith.constant 0 : index
        %c0_23 = arith.constant 0 : index
        %40 = vector.load %arg12[%c0_22, %c0_23] : memref<1x128xf32, #tpu.memory_space<vmem>>, vector<1x128xf32>
        tpu.vector_store %arg12[%c0_22, %c0_23], %39 {strides = array<i32>} : memref<1x128xf32, #tpu.memory_space<vmem>>, vector<1x128xf32>,
        %c0_24 = arith.constant 0 : index
        %c0_25 = arith.constant 0 : index
        %41 = vector.load %arg6[%c0_24, %c0_25] : memref<1x128xf32, #tpu.memory_space<vmem>>, vector<1x128xf32>
        %42 = arith.mulf %27, %39 : vector<1x128xf32>
        %43 = arith.subf %41, %42 : vector<1x128xf32>
        %c0_26 = arith.constant 0 : index
        %c0_27 = arith.constant 0 : index
        %44 = vector.load %arg13[%c0_26, %c0_27] : memref<1x128xf32, #tpu.memory_space<vmem>>, vector<1x128xf32>
        tpu.vector_store %arg13[%c0_26, %c0_27], %43 {strides = array<i32>} : memref<1x128xf32, #tpu.memory_space<vmem>>, vector<1x128xf32>,
      } else {
      }
      %9 = arith.index_cast %arg1 : i32 to index
      %c0 = arith.constant 0 : index
      %c0_4 = arith.constant 0 : index
      %10 = vector.load %arg9[%9, %c0, %c0_4] : memref<4x512x128xf32, #tpu.memory_space<vmem>>, vector<1x512x128xf32>
      %11 = vector.shape_cast %10 : vector<1x512x128xf32> to vector<512x128xf32>
      %c0_5 = arith.constant 0 : index
      %c0_6 = arith.constant 0 : index
      %12 = vector.load %arg12[%c0_5, %c0_6] : memref<1x128xf32, #tpu.memory_space<vmem>>, vector<1x128xf32>
      %13 = vector.broadcast %12 : vector<1x128xf32> to vector<512x128xf32>
      %14 = arith.mulf %11, %13 : vector<512x128xf32>
      %c0_7 = arith.constant 0 : index
      %c0_8 = arith.constant 0 : index
      %15 = vector.load %arg13[%c0_7, %c0_8] : memref<1x128xf32, #tpu.memory_space<vmem>>, vector<1x128xf32>
      %16 = vector.broadcast %15 : vector<1x128xf32> to vector<512x128xf32>
      %17 = arith.addf %14, %16 : vector<512x128xf32>
      %cst = arith.constant 0.000000e+00 : f32
      %18 = vector.broadcast %cst : f32 to vector<512x128xf32>
      %19 = arith.cmpf oge, %17, %18 : vector<512x128xf32>
      %cst_9 = arith.constant 0.00999999977 : f32
      %20 = vector.broadcast %cst_9 : f32 to vector<512x128xf32>
      %21 = arith.mulf %20, %17 : vector<512x128xf32>
      %22 = arith.select %19, %17, %21 : vector<512x128xi1>, vector<512x128xf32>
      %23 = arith.truncf %22 : vector<512x128xf32> to vector<512x128xbf16>
      %c0_10 = arith.constant 0 : index
      %c0_11 = arith.constant 0 : index
      %24 = vector.load %arg7[%c0_10, %c0_11] : memref<512x128xbf16, #tpu.memory_space<vmem>>, vector<512x128xbf16>
      tpu.vector_store %arg7[%c0_10, %c0_11], %23 {strides = array<i32>} : memref<512x128xbf16, #tpu.memory_space<vmem>>, vector<512x128xbf16>,
    } else {
    }
    return
  }
  func.func @transform_0(%arg0: i32, %arg1: i32) -> (i32, i32) {
    %c1_i32 = arith.constant 1 : i32
    %0 = arith.subi %c1_i32, %arg0 : i32
    %1 = arith.muli %arg1, %0 : i32
    %c3_i32 = arith.constant 3 : i32
    %2 = arith.muli %c3_i32, %arg0 : i32
    %3 = arith.addi %1, %2 : i32
    %c0_i32 = arith.constant 0 : i32
    %c0_i32_0 = arith.constant 0 : i32
    return %3, %c0_i32 : i32, i32
  }
  func.func @transform_1(%arg0: i32, %arg1: i32) -> (i32, i32) {
    %c0_i32 = arith.constant 0 : i32
    %c0_i32_0 = arith.constant 0 : i32
    %c0_i32_1 = arith.constant 0 : i32
    return %c0_i32, %c0_i32_0 : i32, i32
  }
  func.func @transform_2(%arg0: i32, %arg1: i32) -> (i32, i32) {
    %c0_i32 = arith.constant 0 : i32
    %c0_i32_0 = arith.constant 0 : i32
    %c0_i32_1 = arith.constant 0 : i32
    return %c0_i32, %c0_i32_0 : i32, i32
  }
  func.func @transform_3(%arg0: i32, %arg1: i32) -> (i32, i32) {
    %c0_i32 = arith.constant 0 : i32
    %c0_i32_0 = arith.constant 0 : i32
    %c0_i32_1 = arith.constant 0 : i32
    return %c0_i32, %c0_i32_0 : i32, i32
  }
  func.func @transform_4(%arg0: i32, %arg1: i32) -> (i32, i32) {
    %c0_i32 = arith.constant 0 : i32
    %c0_i32_0 = arith.constant 0 : i32
    %c0_i32_1 = arith.constant 0 : i32
    return %c0_i32, %c0_i32_0 : i32, i32
  }
  func.func @transform_5(%arg0: i32, %arg1: i32) -> (i32, i32) {
    %0 = arith.muli %arg1, %arg0 : i32
    %c0_i32 = arith.constant 0 : i32
    %c0_i32_0 = arith.constant 0 : i32
    return %0, %c0_i32 : i32, i32
  }
  func.func @transform_6(%arg0: i32, %arg1: i32) -> (i32, i32) {
    %c1_i32 = arith.constant 1 : i32
    %0 = arith.subi %c1_i32, %arg0 : i32
    %1 = arith.muli %arg1, %0 : i32
    %c3_i32 = arith.constant 3 : i32
    %2 = arith.muli %c3_i32, %arg0 : i32
    %3 = arith.addi %1, %2 : i32
    %c0_i32 = arith.constant 0 : i32
    %c0_i32_0 = arith.constant 0 : i32
    return %3, %c0_i32 : i32, i32
  }
}

module attributes {stable_mosaic.version = 11 : i64} {
  func.func @kernel(%arg0: i32, %arg1: i32, %arg2: memref<512x288xbf16, #tpu.memory_space<vmem>>, %arg3: memref<288x128xbf16, #tpu.memory_space<vmem>>, %arg4: memref<1x128xf32, #tpu.memory_space<vmem>>, %arg5: memref<1x128xf32, #tpu.memory_space<vmem>>, %arg6: memref<1x128xf32, #tpu.memory_space<vmem>>, %arg7: memref<512x128xbf16, #tpu.memory_space<vmem>>, %arg8: memref<1x512x128xf32, #tpu.memory_space<vmem>>, %arg9: memref<1x128xf32, #tpu.memory_space<vmem>>, %arg10: memref<1x128xf32, #tpu.memory_space<vmem>>, %arg11: memref<1x128xf32, #tpu.memory_space<vmem>>, %arg12: memref<1x128xf32, #tpu.memory_space<vmem>>) attributes {dimension_semantics = [#tpu.dimension_semantics<arbitrary>, #tpu.dimension_semantics<arbitrary>], iteration_bounds = array<i64: 2, 1>, scalar_prefetch = 0 : i64, scratch_operands = 5 : i64, tpu.core_type = #tpu.core_type<tc>, window_params = [{transform_indices = @transform_0, window_bounds = array<i64: 512, 288>}, {pipeline_mode = #tpu.pipeline_mode<synchronous>, transform_indices = @transform_1, window_bounds = array<i64: 288, 128>}, {pipeline_mode = #tpu.pipeline_mode<synchronous>, transform_indices = @transform_2, window_bounds = array<i64: 1, 128>}, {pipeline_mode = #tpu.pipeline_mode<synchronous>, transform_indices = @transform_3, window_bounds = array<i64: 1, 128>}, {pipeline_mode = #tpu.pipeline_mode<synchronous>, transform_indices = @transform_4, window_bounds = array<i64: 1, 128>}, {transform_indices = @transform_5, window_bounds = array<i64: 512, 128>}]} {
    %c0_i32 = arith.constant 0 : i32
    %0 = arith.cmpi eq, %arg0, %c0_i32 : i32
    %1 = arith.extui %0 : i1 to i32
    %c0_i32_0 = arith.constant 0 : i32
    %2 = arith.cmpi ne, %1, %c0_i32_0 : i32
    scf.if %2 {
      %c0_i32_2 = arith.constant 0 : i32
      %6 = arith.cmpi eq, %arg1, %c0_i32_2 : i32
      %7 = arith.extui %6 : i1 to i32
      %c0_i32_3 = arith.constant 0 : i32
      %8 = arith.cmpi ne, %7, %c0_i32_3 : i32
      scf.if %8 {
        %cst_21 = arith.constant 0.000000e+00 : f32
        %30 = vector.broadcast %cst_21 : f32 to vector<1x128xf32>
        %c0_22 = arith.constant 0 : index
        %c0_23 = arith.constant 0 : index
        %31 = vector.load %arg9[%c0_22, %c0_23] : memref<1x128xf32, #tpu.memory_space<vmem>>, vector<1x128xf32>
        tpu.vector_store %arg9[%c0_22, %c0_23], %30 {strides = array<i32>} : memref<1x128xf32, #tpu.memory_space<vmem>>, vector<1x128xf32>,
        %cst_24 = arith.constant 0.000000e+00 : f32
        %32 = vector.broadcast %cst_24 : f32 to vector<1x128xf32>
        %c0_25 = arith.constant 0 : index
        %c0_26 = arith.constant 0 : index
        %33 = vector.load %arg10[%c0_25, %c0_26] : memref<1x128xf32, #tpu.memory_space<vmem>>, vector<1x128xf32>
        tpu.vector_store %arg10[%c0_25, %c0_26], %32 {strides = array<i32>} : memref<1x128xf32, #tpu.memory_space<vmem>>, vector<1x128xf32>,
      } else {
      }
      %c0 = arith.constant 0 : index
      %c0_4 = arith.constant 0 : index
      %9 = vector.load %arg2[%c0, %c0_4] : memref<512x288xbf16, #tpu.memory_space<vmem>>, vector<512x288xbf16>
      %c0_5 = arith.constant 0 : index
      %c0_6 = arith.constant 0 : index
      %10 = vector.load %arg3[%c0_5, %c0_6] : memref<288x128xbf16, #tpu.memory_space<vmem>>, vector<288x128xbf16>
      %cst = arith.constant dense<0.000000e+00> : vector<512x128xf32>
      %11 = tpu.matmul %9, %10, %cst {dimension_numbers = #tpu.dot_dimension_numbers<[1], [0], [0], [1], [0, 0, 1, 1], [], []>} : vector<512x288xbf16>, vector<288x128xbf16>, vector<512x128xf32> -> vector<512x128xf32>
      %c0_7 = arith.constant 0 : index
      %c0_8 = arith.constant 0 : index
      %12 = vector.load %arg4[%c0_7, %c0_8] : memref<1x128xf32, #tpu.memory_space<vmem>>, vector<1x128xf32>
      %13 = vector.broadcast %12 : vector<1x128xf32> to vector<512x128xf32>
      %14 = arith.addf %11, %13 : vector<512x128xf32>
      %15 = arith.index_cast %arg1 : i32 to index
      %c0_9 = arith.constant 0 : index
      %c0_10 = arith.constant 0 : index
      %16 = vector.load %arg8[%15, %c0_9, %c0_10] : memref<1x512x128xf32, #tpu.memory_space<vmem>>, vector<1x512x128xf32>
      %17 = vector.shape_cast %16 : vector<1x512x128xf32> to vector<512x128xf32>
      %18 = vector.shape_cast %14 : vector<512x128xf32> to vector<1x512x128xf32>
      tpu.vector_store %arg8[%15, %c0_9, %c0_10], %18 {strides = array<i32>} : memref<1x512x128xf32, #tpu.memory_space<vmem>>, vector<1x512x128xf32>,
      %c0_11 = arith.constant 0 : index
      %c0_12 = arith.constant 0 : index
      %19 = vector.load %arg9[%c0_11, %c0_12] : memref<1x128xf32, #tpu.memory_space<vmem>>, vector<1x128xf32>
      %cst_13 = arith.constant dense<0.000000e+00> : vector<128xf32>
      %20 = vector.multi_reduction <add>, %14, %cst_13 [0] : vector<512x128xf32> to vector<128xf32>
      %21 = vector.shape_cast %20 : vector<128xf32> to vector<1x128xf32>
      %22 = arith.addf %19, %21 : vector<1x128xf32>
      %c0_14 = arith.constant 0 : index
      %c0_15 = arith.constant 0 : index
      %23 = vector.load %arg9[%c0_14, %c0_15] : memref<1x128xf32, #tpu.memory_space<vmem>>, vector<1x128xf32>
      tpu.vector_store %arg9[%c0_14, %c0_15], %22 {strides = array<i32>} : memref<1x128xf32, #tpu.memory_space<vmem>>, vector<1x128xf32>,
      %c0_16 = arith.constant 0 : index
      %c0_17 = arith.constant 0 : index
      %24 = vector.load %arg10[%c0_16, %c0_17] : memref<1x128xf32, #tpu.memory_space<vmem>>, vector<1x128xf32>
      %25 = arith.mulf %14, %14 : vector<512x128xf32>
      %cst_18 = arith.constant dense<0.000000e+00> : vector<128xf32>
      %26 = vector.multi_reduction <add>, %25, %cst_18 [0] : vector<512x128xf32> to vector<128xf32>
      %27 = vector.shape_cast %26 : vector<128xf32> to vector<1x128xf32>
      %28 = arith.addf %24, %27 : vector<1x128xf32>
      %c0_19 = arith.constant 0 : index
      %c0_20 = arith.constant 0 : index
      %29 = vector.load %arg10[%c0_19, %c0_20] : memref<1x128xf32, #tpu.memory_space<vmem>>, vector<1x128xf32>
      tpu.vector_store %arg10[%c0_19, %c0_20], %28 {strides = array<i32>} : memref<1x128xf32, #tpu.memory_space<vmem>>, vector<1x128xf32>,
    } else {
    }
    %c1_i32 = arith.constant 1 : i32
    %3 = arith.cmpi eq, %arg0, %c1_i32 : i32
    %4 = arith.extui %3 : i1 to i32
    %c0_i32_1 = arith.constant 0 : i32
    %5 = arith.cmpi ne, %4, %c0_i32_1 : i32
    scf.if %5 {
      %c0_i32_2 = arith.constant 0 : i32
      %6 = arith.cmpi eq, %arg1, %c0_i32_2 : i32
      %7 = arith.extui %6 : i1 to i32
      %c0_i32_3 = arith.constant 0 : i32
      %8 = arith.cmpi ne, %7, %c0_i32_3 : i32
      scf.if %8 {
        %c0_12 = arith.constant 0 : index
        %c0_13 = arith.constant 0 : index
        %25 = vector.load %arg9[%c0_12, %c0_13] : memref<1x128xf32, #tpu.memory_space<vmem>>, vector<1x128xf32>
        %cst_14 = arith.constant 0.001953125 : f32
        %26 = vector.broadcast %cst_14 : f32 to vector<1x128xf32>
        %27 = arith.mulf %25, %26 : vector<1x128xf32>
        %c0_15 = arith.constant 0 : index
        %c0_16 = arith.constant 0 : index
        %28 = vector.load %arg10[%c0_15, %c0_16] : memref<1x128xf32, #tpu.memory_space<vmem>>, vector<1x128xf32>
        %cst_17 = arith.constant 0.001953125 : f32
        %29 = vector.broadcast %cst_17 : f32 to vector<1x128xf32>
        %30 = arith.mulf %28, %29 : vector<1x128xf32>
        %31 = arith.mulf %27, %27 : vector<1x128xf32>
        %32 = arith.subf %30, %31 : vector<1x128xf32>
        %cst_18 = arith.constant 0.000000e+00 : f32
        %33 = vector.broadcast %cst_18 : f32 to vector<1x128xf32>
        %34 = arith.maximumf %32, %33 : vector<1x128xf32>
        %c0_19 = arith.constant 0 : index
        %c0_20 = arith.constant 0 : index
        %35 = vector.load %arg5[%c0_19, %c0_20] : memref<1x128xf32, #tpu.memory_space<vmem>>, vector<1x128xf32>
        %cst_21 = arith.constant 9.99999974E-6 : f32
        %36 = vector.broadcast %cst_21 : f32 to vector<1x128xf32>
        %37 = arith.addf %34, %36 : vector<1x128xf32>
        %38 = math.rsqrt %37 : vector<1x128xf32>
        %39 = arith.mulf %35, %38 : vector<1x128xf32>
        %c0_22 = arith.constant 0 : index
        %c0_23 = arith.constant 0 : index
        %40 = vector.load %arg11[%c0_22, %c0_23] : memref<1x128xf32, #tpu.memory_space<vmem>>, vector<1x128xf32>
        tpu.vector_store %arg11[%c0_22, %c0_23], %39 {strides = array<i32>} : memref<1x128xf32, #tpu.memory_space<vmem>>, vector<1x128xf32>,
        %c0_24 = arith.constant 0 : index
        %c0_25 = arith.constant 0 : index
        %41 = vector.load %arg6[%c0_24, %c0_25] : memref<1x128xf32, #tpu.memory_space<vmem>>, vector<1x128xf32>
        %42 = arith.mulf %27, %39 : vector<1x128xf32>
        %43 = arith.subf %41, %42 : vector<1x128xf32>
        %c0_26 = arith.constant 0 : index
        %c0_27 = arith.constant 0 : index
        %44 = vector.load %arg12[%c0_26, %c0_27] : memref<1x128xf32, #tpu.memory_space<vmem>>, vector<1x128xf32>
        tpu.vector_store %arg12[%c0_26, %c0_27], %43 {strides = array<i32>} : memref<1x128xf32, #tpu.memory_space<vmem>>, vector<1x128xf32>,
      } else {
      }
      %9 = arith.index_cast %arg1 : i32 to index
      %c0 = arith.constant 0 : index
      %c0_4 = arith.constant 0 : index
      %10 = vector.load %arg8[%9, %c0, %c0_4] : memref<1x512x128xf32, #tpu.memory_space<vmem>>, vector<1x512x128xf32>
      %11 = vector.shape_cast %10 : vector<1x512x128xf32> to vector<512x128xf32>
      %c0_5 = arith.constant 0 : index
      %c0_6 = arith.constant 0 : index
      %12 = vector.load %arg11[%c0_5, %c0_6] : memref<1x128xf32, #tpu.memory_space<vmem>>, vector<1x128xf32>
      %13 = vector.broadcast %12 : vector<1x128xf32> to vector<512x128xf32>
      %14 = arith.mulf %11, %13 : vector<512x128xf32>
      %c0_7 = arith.constant 0 : index
      %c0_8 = arith.constant 0 : index
      %15 = vector.load %arg12[%c0_7, %c0_8] : memref<1x128xf32, #tpu.memory_space<vmem>>, vector<1x128xf32>
      %16 = vector.broadcast %15 : vector<1x128xf32> to vector<512x128xf32>
      %17 = arith.addf %14, %16 : vector<512x128xf32>
      %cst = arith.constant 0.000000e+00 : f32
      %18 = vector.broadcast %cst : f32 to vector<512x128xf32>
      %19 = arith.cmpf oge, %17, %18 : vector<512x128xf32>
      %cst_9 = arith.constant 0.00999999977 : f32
      %20 = vector.broadcast %cst_9 : f32 to vector<512x128xf32>
      %21 = arith.mulf %20, %17 : vector<512x128xf32>
      %22 = arith.select %19, %17, %21 : vector<512x128xi1>, vector<512x128xf32>
      %23 = arith.truncf %22 : vector<512x128xf32> to vector<512x128xbf16>
      %c0_10 = arith.constant 0 : index
      %c0_11 = arith.constant 0 : index
      %24 = vector.load %arg7[%c0_10, %c0_11] : memref<512x128xbf16, #tpu.memory_space<vmem>>, vector<512x128xbf16>
      tpu.vector_store %arg7[%c0_10, %c0_11], %23 {strides = array<i32>} : memref<512x128xbf16, #tpu.memory_space<vmem>>, vector<512x128xbf16>,
    } else {
    }
    return
  }
  func.func @transform_0(%arg0: i32, %arg1: i32) -> (i32, i32) {
    %c1_i32 = arith.constant 1 : i32
    %0 = arith.subi %c1_i32, %arg0 : i32
    %1 = arith.muli %arg1, %0 : i32
    %c0_i32 = arith.constant 0 : i32
    %2 = arith.muli %c0_i32, %arg0 : i32
    %3 = arith.addi %1, %2 : i32
    %c0_i32_0 = arith.constant 0 : i32
    %c0_i32_1 = arith.constant 0 : i32
    return %3, %c0_i32_0 : i32, i32
  }
  func.func @transform_1(%arg0: i32, %arg1: i32) -> (i32, i32) {
    %c0_i32 = arith.constant 0 : i32
    %c0_i32_0 = arith.constant 0 : i32
    %c0_i32_1 = arith.constant 0 : i32
    return %c0_i32, %c0_i32_0 : i32, i32
  }
  func.func @transform_2(%arg0: i32, %arg1: i32) -> (i32, i32) {
    %c0_i32 = arith.constant 0 : i32
    %c0_i32_0 = arith.constant 0 : i32
    %c0_i32_1 = arith.constant 0 : i32
    return %c0_i32, %c0_i32_0 : i32, i32
  }
  func.func @transform_3(%arg0: i32, %arg1: i32) -> (i32, i32) {
    %c0_i32 = arith.constant 0 : i32
    %c0_i32_0 = arith.constant 0 : i32
    %c0_i32_1 = arith.constant 0 : i32
    return %c0_i32, %c0_i32_0 : i32, i32
  }
  func.func @transform_4(%arg0: i32, %arg1: i32) -> (i32, i32) {
    %c0_i32 = arith.constant 0 : i32
    %c0_i32_0 = arith.constant 0 : i32
    %c0_i32_1 = arith.constant 0 : i32
    return %c0_i32, %c0_i32_0 : i32, i32
  }
  func.func @transform_5(%arg0: i32, %arg1: i32) -> (i32, i32) {
    %0 = arith.muli %arg1, %arg0 : i32
    %c0_i32 = arith.constant 0 : i32
    %c0_i32_0 = arith.constant 0 : i32
    return %0, %c0_i32 : i32, i32
  }
}

</mosaic_0001>

<bundles_post_ra>
// kernel: skip_encoder_forward.2
= control target key start
LH: loop header
LB: loop body
LE: loop exit
PB: predicated region body
PF: predicated region fallthrough
CT: control target
= control target key end

     0   :  { %s2401_s21 = smov 0   ;;  %s2403_s22 = smov 0   ;;  %s3373_s0 = inlined_call_operand.vmem [shape: bf16[2048,9], index: 0, kind: input, shape index: {}]   ;;  %s3374_s1 = inlined_call_operand.vmem [shape: bf16[9,128], index: 1, kind: input, shape index: {}]   ;;  %s3375_s2 = inlined_call_operand.vmem [shape: f32[1,128], index: 2, kind: input, shape index: {}]   ;;  %s3376_s3 = inlined_call_operand.vmem [shape: f32[1,128], index: 3, kind: input, shape index: {}]   ;;  %s3377_s4 = inlined_call_operand.vmem [shape: f32[1,128], index: 4, kind: input, shape index: {}]   ;;  %s3378_s5 = inlined_call_operand.vmem [shape: bf16[2048,128], index: 5, kind: output, shape index: {0}]   ;;  %s3379_s6 = inlined_call_operand.vmem [shape: f32[2048,128], index: 6, kind: output, shape index: {1}]  }
   0x1   :  { %s2405_s23 = smov 0   ;;  %s2407_s24 = smov 0  }
   0x2   :  { %s2409_s25 = smov 0  }
   0x3 LB: > { %s26_s26 = sadd.s32 1, %s2354_s23  ;;  %s29_s27 = sadd.s32 1, %s2358_s24  ;;  %s2362_s25 = sphi %s2409_s25, %s17_s25   ;;  %s2358_s24 = sphi %s2407_s24, %s3383_s24   ;;  %s2354_s23 = sphi %s2405_s23, %s3382_s23   ;;  %s2350_s22 = sphi %s2403_s22, %s3381_s22   ;;  %s2346_s21 = sphi %s2401_s21, %s3380_s21  }
   0x4   : > { %p27_p0 = scmp.ge.s32.totalorder %s26_s26, 4  ;;  %p1871_p1 = scmp.ge.s32.totalorder %s2362_s25, 1 }
   0x5   : > { %p254_p2 = scmp.lt.s32.totalorder %s2362_s25, 9 }
   0x6   : > { %s3385_s26 = smov (%p27_p0, %s26_s26), 0  ;;  %s3387_s27 = smov (!%p27_p0, %s29_s27), %s2358_s24 }
   0x7   : > { %p255_p3 = pnand %p1871_p1, %p254_p2  ;;  %p31_p4 = scmp.ge.s32.totalorder %s3387_s27, 2 }
   0x8   : > { %s298_s28 = ssub.s32 (!%p255_p3), 1, %s2350_s22  ;;  %s300_s29 = smul.u32 (!%p255_p3), 3, %s2350_s22 }
   0x9   : > { %s3389_s27 = smov (%p31_p4, %s3387_s27), 0  ;;  %258 = sbr.rel (%p255_p3) target bundleno = 545 (0x221), region = 40 }
   0xa   : > { %s299_s30 = smul.u32 (!%p255_p3), %s2346_s21, %s298_s28  ;;  %p1878_p7 = scmp.ne.s32.totalorder (!%p255_p3), %s2350_s22, 0 }
   0xb   : > { %s312_s7 = smul.u32 (!%p255_p3), %s2346_s21, %s2350_s22 }
   0xc   : > { %s301_s8 = sadd.s32 (!%p255_p3), %s300_s29, %s299_s30 }
   0xd   : > { %s1872_s9 = sshll.u32 (!%p255_p3), %s301_s8, 6  ;;  %s1874_s10 = sshll.u32 (!%p255_p3), %s312_s7, 6 }
   0xe   : > { %p303_p5 = scmp.lt.s32.totalorder %s1872_s9, 255  ;;  %p314_p6 = scmp.lt.s32.totalorder %s1874_s10, 255 }
   0xf   : > { %338 = sbr.rel (%p1878_p7) target bundleno = 400 (0x190), region = 44  ;;  %p1879_p8 = scmp.ne.s32.totalorder (!%p1878_p7), %s2346_s21, 0 }
  0x10   : > { %s3391_s9 = smov (!%p303_p5, %s1872_s9), 255  ;;  %s3393_s10 = smov (!%p314_p6, %s1874_s10), 255 }
  0x11   : > { %s1873_s11 = sshll.u32 %s3391_s9, 2  ;;  %s1877_s12 = sshll.u32 %s3391_s9, 3 }
  0x12   : > { %s2443_s15 = scalar_lea.vmem %s3373_s0, %s1873_s11  ;;  %s1875_s16 = sshll.u32 %s3393_s10, 2 }
  0x13   : > { %s2448_s19 = scalar_lea.vmem %s3378_s5, %s1875_s16  ;;  %s2453_s29 = scalar_lea.vmem %s3379_s6, %s1877_s12 }
  0x14   : > { %342 = sbr.rel (%p1879_p8) target bundleno = 28 (0x1c), region = 48 }
  0x19   : > { %v2364_v0 = vmov 0.0  }
  0x1a   : > { %343 = vst [vmem:[#allocation3] sm:$0x1] %v2364_v0 }
  0x1b   : > { %344 = vst [vmem:[#allocation4] sm:$0x1] %v2364_v0 }
  0x1c PF: > { %v2010_v1 = vld [vmem:[%s3374_s1] sm:$0xf]  ;;  %v2082_v2 = vld [vmem:[%s3374_s1] sm:$0x10]  ;;  %vm677_vm0 = vcmask 1043456   ;;  %vm678_vm1 = vcmask 1044480  }
  0x1d   : > { %v2011_v3 = vor.u32 %v2082_v2, %v2010_v1  ;;  %v2365_v4 = vmov 65535   ;;  %v2050_v8 = vld [vmem:[%s2443_s15] sm:$0xff]  ;;  %vm580_vm2 = vcmask 72704   ;;  %v2051_v10 = vld [vmem:[%s2443_s15 + $0x8] sm:$0xff]  ;;  %v2052_v13 = vld [vmem:[%s2443_s15 + $0x10] sm:$0xff]  ;;  %s2044_s12 = sshll.u32 %s2346_s21, 9 }
  0x1e   : > { %v679_v5 = vsel %vm677_vm0, 4294967295, %v2365_v4  ;;  %v2058_v9 = vld [vmem:[%s2443_s15 + $0x40] sm:$0xff]  ;;  %v2059_v11 = vld [vmem:[%s2443_s15 + $0x48] sm:$0xff]  ;;  %v2060_v14 = vld [vmem:[%s2443_s15 + $0x50] sm:$0xff]  ;;  %s2529_s13 = scalar_lea.vmem [#allocation2], %s2044_s12 }
  0x1f   : > { %v680_v6 = vsel %vm678_vm1, %v679_v5, 0  ;;  %v2066_v12 = vld [vmem:[%s2443_s15 + $0x80] sm:$0xff]  ;;  %v2067_v15 = vld [vmem:[%s2443_s15 + $0x88] sm:$0xff]  ;;  %v2053_v16 = vld [vmem:[%s2443_s15 + $0x18] sm:$0xff] }
  0x20   : > { %v682_v7 = vand.u32 %v2011_v3, %v680_v6  ;;  %v2061_v17 = vld [vmem:[%s2443_s15 + $0x58] sm:$0xff]  ;;  %v2068_v18 = vld [vmem:[%s2443_s15 + $0x90] sm:$0xff]  ;;  %v2074_v19 = vld [vmem:[%s2443_s15 + $0xc0] sm:$0xff] }
  0x21   : > { %v2054_v20 = vld [vmem:[%s2443_s15 + $0x20] sm:$0xff]  ;;  %v2069_v22 = vld [vmem:[%s2443_s15 + $0x98] sm:$0xff]  ;;  %v2075_v23 = vld [vmem:[%s2443_s15 + $0xc8] sm:$0xff] }
  0x22   : > { %691 = vmatpush.bf16.msra.mxu0 %v682_v7  ;;  %2274 = vmatpush.bf16.msra.mxu1 %v682_v7  ;;  %v2062_v21 = vld [vmem:[%s2443_s15 + $0x60] sm:$0xff]  ;;  %v2055_v24 = vld [vmem:[%s2443_s15 + $0x28] sm:$0xff]  ;;  %v2076_v27 = vld [vmem:[%s2443_s15 + $0xd0] sm:$0xff] }
  0x23   : > { %2275 = vmatpush.bf16.msra.mxu2 %v682_v7  ;;  %2276 = vmatpush.bf16.msra.mxu3 %v682_v7  ;;  %v2063_v25 = vld [vmem:[%s2443_s15 + $0x68] sm:$0xff]  ;;  %v2070_v26 = vld [vmem:[%s2443_s15 + $0xa0] sm:$0xff]  ;;  %v2056_v28 = vld [vmem:[%s2443_s15 + $0x30] sm:$0xff] }
  0x24   : > { %v2064_v29 = vld [vmem:[%s2443_s15 + $0x70] sm:$0xff]  ;;  %v2071_v30 = vld [vmem:[%s2443_s15 + $0xa8] sm:$0xff]  ;;  %v2077_v31 = vld [vmem:[%s2443_s15 + $0xd8] sm:$0xff] }
  0x25   : > { %2012 = vmatmul.msk.bf16.vlgmr.msra.gmra.mxu0 %vm580_vm2, %v2050_v8  ;;  %2020 = vmatmul.msk.bf16.vlgmr.msra.gmra.mxu1 %vm580_vm2, %v2058_v9  ;;  %v2057_v32 = vld [vmem:[%s2443_s15 + $0x38] sm:$0xff]  ;;  %v2072_v34 = vld [vmem:[%s2443_s15 + $0xb0] sm:$0xff]  ;;  %v2078_v35 = vld [vmem:[%s2443_s15 + $0xe0] sm:$0xff] }
  0x26   : > { %2028 = vmatmul.msk.bf16.vlgmr.msra.gmra.mxu2 %vm580_vm2, %v2066_v12  ;;  %2036 = vmatmul.msk.bf16.vlgmr.msra.gmra.mxu3 %vm580_vm2, %v2074_v19  ;;  %v2065_v33 = vld [vmem:[%s2443_s15 + $0x78] sm:$0xff]  ;;  %v2522_v36 = vld [vmem:[%s3375_s2] ss:$0 sm:$0xff]  ;;  %v2079_v42 = vld [vmem:[%s2443_s15 + $0xe8] sm:$0xff] }
  0x27   : > { %v2073_v41 = vld [vmem:[%s2443_s15 + $0xb8] sm:$0xff]  ;;  %v2080_v57 = vld [vmem:[%s2443_s15 + $0xf0] sm:$0xff] }
  0x28   : > { %v2081_v12 = vld [vmem:[%s2443_s15 + $0xf8] sm:$0xff] }
  0x35   : > { %2013 = vmatmul.msk.bf16.gmra.mxu0 %vm580_vm2, %v2051_v10  ;;  %2021 = vmatmul.msk.bf16.gmra.mxu1 %vm580_vm2, %v2059_v11 }
  0x36   : > { %2029 = vmatmul.msk.bf16.gmra.mxu2 %vm580_vm2, %v2067_v15  ;;  %2037 = vmatmul.msk.bf16.gmra.mxu3 %vm580_vm2, %v2075_v23 }
  0x45   : > { %2014 = vmatmul.msk.bf16.gmra.mxu0 %vm580_vm2, %v2052_v13  ;;  %2022 = vmatmul.msk.bf16.gmra.mxu1 %vm580_vm2, %v2060_v14 }
  0x46   : > { %2030 = vmatmul.msk.bf16.gmra.mxu2 %vm580_vm2, %v2068_v18  ;;  %2038 = vmatmul.msk.bf16.gmra.mxu3 %vm580_vm2, %v2076_v27 }
  0x55   : > { %2015 = vmatmul.msk.bf16.gmra.mxu0 %vm580_vm2, %v2053_v16  ;;  %2023 = vmatmul.msk.bf16.gmra.mxu1 %vm580_vm2, %v2061_v17 }
  0x56   : > { %2031 = vmatmul.msk.bf16.gmra.mxu2 %vm580_vm2, %v2069_v22  ;;  %2039 = vmatmul.msk.bf16.gmra.mxu3 %vm580_vm2, %v2077_v31 }
  0x65   : > { %2016 = vmatmul.msk.bf16.gmra.mxu0 %vm580_vm2, %v2054_v20  ;;  %2024 = vmatmul.msk.bf16.gmra.mxu1 %vm580_vm2, %v2062_v21 }
  0x66   : > { %2032 = vmatmul.msk.bf16.gmra.mxu2 %vm580_vm2, %v2070_v26  ;;  %2040 = vmatmul.msk.bf16.gmra.mxu3 %vm580_vm2, %v2078_v35 }
  0x75   : > { %2017 = vmatmul.msk.bf16.gmra.mxu0 %vm580_vm2, %v2055_v24  ;;  %2025 = vmatmul.msk.bf16.gmra.mxu1 %vm580_vm2, %v2063_v25 }
  0x76   : > { %2033 = vmatmul.msk.bf16.gmra.mxu2 %vm580_vm2, %v2071_v30  ;;  %2041 = vmatmul.msk.bf16.gmra.mxu3 %vm580_vm2, %v2079_v42 }
  0x85   : > { %2018 = vmatmul.msk.bf16.gmra.mxu0 %vm580_vm2, %v2056_v28  ;;  %2026 = vmatmul.msk.bf16.gmra.mxu1 %vm580_vm2, %v2064_v29 }
  0x86   : > { %2034 = vmatmul.msk.bf16.gmra.mxu2 %vm580_vm2, %v2072_v34  ;;  %2042 = vmatmul.msk.bf16.gmra.mxu3 %vm580_vm2, %v2080_v57 }
  0x95   : > { %2019 = vmatmul.msk.bf16.gmra.mxu0 %vm580_vm2, %v2057_v32  ;;  %2027 = vmatmul.msk.bf16.gmra.mxu1 %vm580_vm2, %v2065_v33 }
  0x96   : > { %2035 = vmatmul.msk.bf16.gmra.mxu2 %vm580_vm2, %v2073_v41  ;;  %2043 = vmatmul.msk.bf16.gmra.mxu3 %vm580_vm2, %v2081_v12 }
  0xa2   : > { %v693_v37 = vpop.f32.mrf.mxu0  ;;  %v733_v38 = vpop.f32.mrf.mxu1 }
  0xa3   : > { %v694_v39 = vadd.f32 %v2522_v36, %v693_v37  ;;  %v2527_v40 = vadd.f32 %v2522_v36, %v733_v38 }
  0xa5   : > { %855 = vst [vmem:[%s2529_s13] sm:$0xff] %v694_v39  ;;  %v1056_v47 = vmul.f32 %v694_v39, %v694_v39 }
  0xa6   : > { %919 = vst [vmem:[%s2453_s29] sm:$0xff] %v694_v39 }
  0xa7   : > { %871 = vst [vmem:[%s2529_s13 + $0x80] sm:$0xff] %v2527_v40 }
  0xa8   : > { %935 = vst [vmem:[%s2453_s29 + $0x80] sm:$0xff] %v2527_v40 }
  0xa9   : > { %v773_v63 = vpop.f32.mrf.mxu2  ;;  %v813_v31 = vpop.f32.mrf.mxu3 }
  0xaa   : > { %v695_v43 = vpop.f32.mrf.mxu0  ;;  %v735_v44 = vpop.f32.mrf.mxu1  ;;  %v2572_v3 = vadd.f32 %v2522_v36, %v773_v63  ;;  %v2661_v33 = vadd.f32 %v2522_v36, %v813_v31 }
  0xab   : > { %v696_v45 = vadd.f32 %v2522_v36, %v695_v43  ;;  %v2543_v46 = vadd.f32 %v2522_v36, %v735_v44 }
  0xac   : > { %887 = vst [vmem:[%s2529_s13 + $0x100] sm:$0xff] %v2572_v3 }
  0xad   : > { %856 = vst [vmem:[%s2529_s13 + $0x8] sm:$0xff] %v696_v45  ;;  %v984_v48 = vadd.f32 %v696_v45, %v694_v39  ;;  %v1057_v49 = vmul.f32 %v696_v45, %v696_v45 }
  0xae   : > { %920 = vst [vmem:[%s2453_s29 + $0x8] sm:$0xff] %v696_v45 }
  0xaf   : > { %v1120_v50 = vadd.f32 %v1057_v49, %v1056_v47  ;;  %872 = vst [vmem:[%s2529_s13 + $0x88] sm:$0xff] %v2543_v46 }
  0xb0   : > { %936 = vst [vmem:[%s2453_s29 + $0x88] sm:$0xff] %v2543_v46 }
  0xb1   : > { %951 = vst [vmem:[%s2453_s29 + $0x100] sm:$0xff] %v2572_v3  ;;  %v775_v8 = vpop.f32.mrf.mxu2  ;;  %v815_v41 = vpop.f32.mrf.mxu3 }
  0xb2   : > { %v698_v51 = vpop.f32.mrf.mxu0  ;;  %v738_v52 = vpop.f32.mrf.mxu1  ;;  %v2588_v11 = vadd.f32 %v2522_v36, %v775_v8  ;;  %903 = vst [vmem:[%s2529_s13 + $0x180] sm:$0xff] %v2661_v33  ;;  %v2689_v43 = vadd.f32 %v2522_v36, %v815_v41 }
  0xb3   : > { %v699_v53 = vadd.f32 %v2522_v36, %v698_v51  ;;  %v2553_v54 = vadd.f32 %v2522_v36, %v738_v52  ;;  %967 = vst [vmem:[%s2453_s29 + $0x180] sm:$0xff] %v2661_v33 }
  0xb4   : > { %888 = vst [vmem:[%s2529_s13 + $0x108] sm:$0xff] %v2588_v11 }
  0xb5   : > { %857 = vst [vmem:[%s2529_s13 + $0x10] sm:$0xff] %v699_v53  ;;  %v985_v55 = vadd.f32 %v984_v48, %v699_v53  ;;  %v1058_v56 = vmul.f32 %v699_v53, %v699_v53 }
  0xb6   : > { %921 = vst [vmem:[%s2453_s29 + $0x10] sm:$0xff] %v699_v53 }
  0xb7   : > { %v1121_v58 = vadd.f32 %v1120_v50, %v1058_v56  ;;  %873 = vst [vmem:[%s2529_s13 + $0x90] sm:$0xff] %v2553_v54 }
  0xb8   : > { %937 = vst [vmem:[%s2453_s29 + $0x90] sm:$0xff] %v2553_v54 }
  0xb9   : > { %952 = vst [vmem:[%s2453_s29 + $0x108] sm:$0xff] %v2588_v11  ;;  %v778_v18 = vpop.f32.mrf.mxu2  ;;  %v818_v50 = vpop.f32.mrf.mxu3 }
  0xba   : > { %v700_v59 = vpop.f32.mrf.mxu0  ;;  %v740_v60 = vpop.f32.mrf.mxu1  ;;  %v2616_v19 = vadd.f32 %v2522_v36, %v778_v18  ;;  %904 = vst [vmem:[%s2529_s13 + $0x188] sm:$0xff] %v2689_v43  ;;  %v2717_v52 = vadd.f32 %v2522_v36, %v818_v50 }
  0xbb   : > { %v701_v61 = vadd.f32 %v2522_v36, %v700_v59  ;;  %v2565_v62 = vadd.f32 %v2522_v36, %v740_v60  ;;  %968 = vst [vmem:[%s2453_s29 + $0x188] sm:$0xff] %v2689_v43 }
  0xbc   : > { %889 = vst [vmem:[%s2529_s13 + $0x110] sm:$0xff] %v2616_v19 }
  0xbd   : > { %858 = vst [vmem:[%s2529_s13 + $0x18] sm:$0xff] %v701_v61  ;;  %v986_v0 = vadd.f32 %v985_v55, %v701_v61  ;;  %v1059_v1 = vmul.f32 %v701_v61, %v701_v61 }
  0xbe   : > { %922 = vst [vmem:[%s2453_s29 + $0x18] sm:$0xff] %v701_v61 }
  0xbf   : > { %v1122_v2 = vadd.f32 %v1121_v58, %v1059_v1  ;;  %874 = vst [vmem:[%s2529_s13 + $0x98] sm:$0xff] %v2565_v62 }
  0xc0   : > { %938 = vst [vmem:[%s2453_s29 + $0x98] sm:$0xff] %v2565_v62 }
  0xc1   : > { %953 = vst [vmem:[%s2453_s29 + $0x110] sm:$0xff] %v2616_v19  ;;  %v780_v24 = vpop.f32.mrf.mxu2  ;;  %v820_v59 = vpop.f32.mrf.mxu3 }
  0xc2   : > { %v703_v4 = vpop.f32.mrf.mxu0  ;;  %v743_v5 = vpop.f32.mrf.mxu1  ;;  %v2633_v25 = vadd.f32 %v2522_v36, %v780_v24  ;;  %905 = vst [vmem:[%s2529_s13 + $0x190] sm:$0xff] %v2717_v52  ;;  %v2745_v61 = vadd.f32 %v2522_v36, %v820_v59 }
  0xc3   : > { %v704_v6 = vadd.f32 %v2522_v36, %v703_v4  ;;  %v2582_v7 = vadd.f32 %v2522_v36, %v743_v5  ;;  %969 = vst [vmem:[%s2453_s29 + $0x190] sm:$0xff] %v2717_v52 }
  0xc4   : > { %890 = vst [vmem:[%s2529_s13 + $0x118] sm:$0xff] %v2633_v25 }
  0xc5   : > { %859 = vst [vmem:[%s2529_s13 + $0x20] sm:$0xff] %v704_v6  ;;  %v2585_v9 = vadd.f32 %v986_v0, %v704_v6  ;;  %v1060_v10 = vmul.f32 %v704_v6, %v704_v6 }
  0xc6   : > { %923 = vst [vmem:[%s2453_s29 + $0x20] sm:$0xff] %v704_v6 }
  0xc7   : > { %v2592_v13 = vadd.f32 %v1122_v2, %v1060_v10  ;;  %875 = vst [vmem:[%s2529_s13 + $0xa0] sm:$0xff] %v2582_v7 }
  0xc8   : > { %939 = vst [vmem:[%s2453_s29 + $0xa0] sm:$0xff] %v2582_v7 }
  0xc9   : > { %954 = vst [vmem:[%s2453_s29 + $0x118] sm:$0xff] %v2633_v25  ;;  %v783_v30 = vpop.f32.mrf.mxu2  ;;  %v823_v5 = vpop.f32.mrf.mxu3 }
  0xca   : > { %v705_v14 = vpop.f32.mrf.mxu0  ;;  %v745_v15 = vpop.f32.mrf.mxu1  ;;  %v2658_v32 = vadd.f32 %v2522_v36, %v783_v30  ;;  %906 = vst [vmem:[%s2529_s13 + $0x198] sm:$0xff] %v2745_v61 }
  0xcb   : > { %v2604_v16 = vadd.f32 %v2522_v36, %v705_v14  ;;  %v2607_v17 = vadd.f32 %v2522_v36, %v745_v15  ;;  %970 = vst [vmem:[%s2453_s29 + $0x198] sm:$0xff] %v2745_v61 }
  0xcc   : > { %891 = vst [vmem:[%s2529_s13 + $0x120] sm:$0xff] %v2658_v32 }
  0xcd   : > { %860 = vst [vmem:[%s2529_s13 + $0x28] sm:$0xff] %v2604_v16  ;;  %v988_v24 = vadd.f32 %v2585_v9, %v2604_v16 }
  0xce   : > { %924 = vst [vmem:[%s2453_s29 + $0x28] sm:$0xff] %v2604_v16 }
  0xcf   : > { %876 = vst [vmem:[%s2529_s13 + $0xa8] sm:$0xff] %v2607_v17 }
  0xd0   : > { %940 = vst [vmem:[%s2453_s29 + $0xa8] sm:$0xff] %v2607_v17 }
  0xd1   : > { %955 = vst [vmem:[%s2453_s29 + $0x120] sm:$0xff] %v2658_v32  ;;  %v785_v39 = vpop.f32.mrf.mxu2  ;;  %v825_v14 = vpop.f32.mrf.mxu3 }
  0xd2   : > { %v708_v20 = vpop.f32.mrf.mxu0  ;;  %v748_v21 = vpop.f32.mrf.mxu1  ;;  %v2682_v42 = vadd.f32 %v2522_v36, %v785_v39 }
  0xd3   : > { %v2625_v22 = vadd.f32 %v2522_v36, %v708_v20  ;;  %v2628_v23 = vadd.f32 %v2522_v36, %v748_v21  ;;  %v1061_v20 = vmul.f32 %v2604_v16, %v2604_v16  ;;  %v2785_v21 = vadd.f32 %v2522_v36, %v823_v5 }
  0xd4   : > { %892 = vst [vmem:[%s2529_s13 + $0x128] sm:$0xff] %v2682_v42 }
  0xd5   : > { %861 = vst [vmem:[%s2529_s13 + $0x30] sm:$0xff] %v2625_v22 }
  0xd6   : > { %925 = vst [vmem:[%s2453_s29 + $0x30] sm:$0xff] %v2625_v22 }
  0xd7   : > { %877 = vst [vmem:[%s2529_s13 + $0xb0] sm:$0xff] %v2628_v23 }
  0xd8   : > { %941 = vst [vmem:[%s2453_s29 + $0xb0] sm:$0xff] %v2628_v23 }
  0xd9   : > { %956 = vst [vmem:[%s2453_s29 + $0x128] sm:$0xff] %v2682_v42  ;;  %v788_v49 = vpop.f32.mrf.mxu2  ;;  %v828_v39 = vpop.f32.mrf.mxu3 }
  0xda   : > { %v710_v26 = vpop.f32.mrf.mxu0  ;;  %v750_v27 = vpop.f32.mrf.mxu1  ;;  %v2714_v51 = vadd.f32 %v2522_v36, %v788_v49  ;;  %907 = vst [vmem:[%s2529_s13 + $0x1a0] sm:$0xff] %v2785_v21 }
  0xdb   : > { %v2646_v28 = vadd.f32 %v2522_v36, %v710_v26  ;;  %v2649_v29 = vadd.f32 %v2522_v36, %v750_v27  ;;  %v1062_v26 = vmul.f32 %v2625_v22, %v2625_v22  ;;  %v1124_v27 = vadd.f32 %v2592_v13, %v1061_v20  ;;  %971 = vst [vmem:[%s2453_s29 + $0x1a0] sm:$0xff] %v2785_v21 }
  0xdc   : > { %893 = vst [vmem:[%s2529_s13 + $0x130] sm:$0xff] %v2714_v51 }
  0xdd   : > { %862 = vst [vmem:[%s2529_s13 + $0x38] sm:$0xff] %v2646_v28  ;;  %v1125_v41 = vadd.f32 %v1124_v27, %v1062_v26 }
  0xde   : > { %926 = vst [vmem:[%s2453_s29 + $0x38] sm:$0xff] %v2646_v28 }
  0xdf   : > { %878 = vst [vmem:[%s2529_s13 + $0xb8] sm:$0xff] %v2649_v29 }
  0xe0   : > { %942 = vst [vmem:[%s2453_s29 + $0xb8] sm:$0xff] %v2649_v29 }
  0xe1   : > { %957 = vst [vmem:[%s2453_s29 + $0x130] sm:$0xff] %v2714_v51  ;;  %v790_v58 = vpop.f32.mrf.mxu2 }
  0xe2   : > { %v713_v34 = vpop.f32.mrf.mxu0  ;;  %v753_v35 = vpop.f32.mrf.mxu1  ;;  %v2738_v60 = vadd.f32 %v2522_v36, %v790_v58 }
  0xe3   : > { %v2670_v37 = vadd.f32 %v2522_v36, %v713_v34  ;;  %v2673_v38 = vadd.f32 %v2522_v36, %v753_v35  ;;  %v989_v34 = vadd.f32 %v988_v24, %v2625_v22  ;;  %v1063_v35 = vmul.f32 %v2646_v28, %v2646_v28 }
  0xe4   : > { %894 = vst [vmem:[%s2529_s13 + $0x138] sm:$0xff] %v2738_v60 }
  0xe5   : > { %863 = vst [vmem:[%s2529_s13 + $0x40] sm:$0xff] %v2670_v37  ;;  %v990_v22 = vadd.f32 %v989_v34, %v2646_v28  ;;  %v1126_v49 = vadd.f32 %v1125_v41, %v1063_v35  ;;  %v2823_v28 = vadd.f32 %v2522_v36, %v825_v14 }
  0xe6   : > { %927 = vst [vmem:[%s2453_s29 + $0x40] sm:$0xff] %v2670_v37 }
  0xe7   : > { %879 = vst [vmem:[%s2529_s13 + $0xc0] sm:$0xff] %v2673_v38  ;;  %v991_v50 = vadd.f32 %v990_v22, %v2670_v37 }
  0xe8   : > { %943 = vst [vmem:[%s2453_s29 + $0xc0] sm:$0xff] %v2673_v38 }
  0xe9   : > { %958 = vst [vmem:[%s2453_s29 + $0x138] sm:$0xff] %v2738_v60  ;;  %v793_v4 = vpop.f32.mrf.mxu2 }
  0xea   : > { %v715_v44 = vpop.f32.mrf.mxu0  ;;  %v755_v45 = vpop.f32.mrf.mxu1  ;;  %v2777_v18 = vadd.f32 %v2522_v36, %v793_v4  ;;  %908 = vst [vmem:[%s2529_s13 + $0x1a8] sm:$0xff] %v2823_v28 }
  0xeb   : > { %v2698_v47 = vadd.f32 %v2522_v36, %v715_v44  ;;  %v2701_v48 = vadd.f32 %v2522_v36, %v755_v45  ;;  %v1064_v44 = vmul.f32 %v2670_v37, %v2670_v37  ;;  %972 = vst [vmem:[%s2453_s29 + $0x1a8] sm:$0xff] %v2823_v28 }
  0xec   : > { %895 = vst [vmem:[%s2529_s13 + $0x140] sm:$0xff] %v2777_v18 }
  0xed   : > { %864 = vst [vmem:[%s2529_s13 + $0x48] sm:$0xff] %v2698_v47  ;;  %v992_v58 = vadd.f32 %v991_v50, %v2698_v47 }
  0xee   : > { %928 = vst [vmem:[%s2453_s29 + $0x48] sm:$0xff] %v2698_v47 }
  0xef   : > { %880 = vst [vmem:[%s2529_s13 + $0xc8] sm:$0xff] %v2701_v48 }
  0xf0   : > { %944 = vst [vmem:[%s2453_s29 + $0xc8] sm:$0xff] %v2701_v48 }
  0xf1   : > { %v795_v12 = vpop.f32.mrf.mxu2  ;;  %959 = vst [vmem:[%s2453_s29 + $0x140] sm:$0xff] %v2777_v18 }
  0xf2   : > { %v718_v53 = vpop.f32.mrf.mxu0  ;;  %v758_v55 = vpop.f32.mrf.mxu1  ;;  %v2814_v45 = vadd.f32 %v2522_v36, %v795_v12 }
  0xf3   : > { %v2726_v56 = vadd.f32 %v2522_v36, %v718_v53  ;;  %v2729_v57 = vadd.f32 %v2522_v36, %v758_v55  ;;  %v1065_v53 = vmul.f32 %v2698_v47, %v2698_v47  ;;  %v1127_v55 = vadd.f32 %v1126_v49, %v1064_v44 }
  0xf4   : > { %896 = vst [vmem:[%s2529_s13 + $0x148] sm:$0xff] %v2814_v45 }
  0xf5   : > { %865 = vst [vmem:[%s2529_s13 + $0x50] sm:$0xff] %v2726_v56  ;;  %v1066_v59 = vmul.f32 %v2726_v56, %v2726_v56  ;;  %v993_v4 = vadd.f32 %v992_v58, %v2726_v56 }
  0xf6   : > { %929 = vst [vmem:[%s2453_s29 + $0x50] sm:$0xff] %v2726_v56 }
  0xf7   : > { %881 = vst [vmem:[%s2529_s13 + $0xd0] sm:$0xff] %v2729_v57 }
  0xf8   : > { %945 = vst [vmem:[%s2453_s29 + $0xd0] sm:$0xff] %v2729_v57 }
  0xf9   : > { %v798_v13 = vpop.f32.mrf.mxu2  ;;  %960 = vst [vmem:[%s2453_s29 + $0x148] sm:$0xff] %v2814_v45 }
  0xfa   : > { %v720_v63 = vpop.f32.mrf.mxu0  ;;  %v760_v0 = vpop.f32.mrf.mxu1  ;;  %v2848_v24 = vadd.f32 %v2522_v36, %v798_v13 }
  0xfb   : > { %v2754_v1 = vadd.f32 %v2522_v36, %v720_v63  ;;  %v2757_v2 = vadd.f32 %v2522_v36, %v760_v0  ;;  %v1128_v0 = vadd.f32 %v1127_v55, %v1065_v53 }
  0xfc   : > { %897 = vst [vmem:[%s2529_s13 + $0x150] sm:$0xff] %v2848_v24 }
  0xfd   : > { %866 = vst [vmem:[%s2529_s13 + $0x58] sm:$0xff] %v2754_v1  ;;  %v1067_v5 = vmul.f32 %v2754_v1, %v2754_v1  ;;  %v1129_v14 = vadd.f32 %v1128_v0, %v1066_v59  ;;  %v994_v56 = vadd.f32 %v993_v4, %v2754_v1  ;;  %v1072_v59 = vmul.f32 %v2527_v40, %v2527_v40 }
  0xfe   : > { %930 = vst [vmem:[%s2453_s29 + $0x58] sm:$0xff] %v2754_v1  ;;  %v1073_v4 = vmul.f32 %v2543_v46, %v2543_v46 }
  0xff   : > { %882 = vst [vmem:[%s2529_s13 + $0xd8] sm:$0xff] %v2757_v2  ;;  %v1130_v26 = vadd.f32 %v1129_v14, %v1067_v5 }
 0x100   : > { %946 = vst [vmem:[%s2453_s29 + $0xd8] sm:$0xff] %v2757_v2 }
 0x101   : > { %961 = vst [vmem:[%s2453_s29 + $0x150] sm:$0xff] %v2848_v24 }
 0x102   : > { %v723_v6 = vpop.f32.mrf.mxu0  ;;  %v763_v8 = vpop.f32.mrf.mxu1 }
 0x103   : > { %v724_v10 = vadd.f32 %v2522_v36, %v723_v6  ;;  %v2773_v15 = vadd.f32 %v2522_v36, %v763_v8  ;;  %v800_v6 = vpop.f32.mrf.mxu2  ;;  %v830_v8 = vpop.f32.mrf.mxu3 }
 0x104   : > { %v2872_v58 = vadd.f32 %v2522_v36, %v800_v6  ;;  %v2881_v0 = vadd.f32 %v2522_v36, %v830_v8 }
 0x105   : > { %867 = vst [vmem:[%s2529_s13 + $0x60] sm:$0xff] %v724_v10  ;;  %v1068_v20 = vmul.f32 %v724_v10, %v724_v10  ;;  %v995_v27 = vadd.f32 %v994_v56, %v724_v10 }
 0x106   : > { %931 = vst [vmem:[%s2453_s29 + $0x60] sm:$0xff] %v724_v10 }
 0x107   : > { %883 = vst [vmem:[%s2529_s13 + $0xe0] sm:$0xff] %v2773_v15  ;;  %v1131_v1 = vadd.f32 %v1130_v26, %v1068_v20 }
 0x108   : > { %947 = vst [vmem:[%s2453_s29 + $0xe0] sm:$0xff] %v2773_v15 }
 0x109   : > { %898 = vst [vmem:[%s2529_s13 + $0x158] sm:$0xff] %v2872_v58 }
 0x10a   : > { %v725_v30 = vpop.f32.mrf.mxu0  ;;  %v765_v31 = vpop.f32.mrf.mxu1  ;;  %962 = vst [vmem:[%s2453_s29 + $0x158] sm:$0xff] %v2872_v58 }
 0x10b   : > { %v726_v9 = vadd.f32 %v2522_v36, %v725_v30  ;;  %v2805_v16 = vadd.f32 %v2522_v36, %v765_v31  ;;  %v2854_v31 = vadd.f32 %v2522_v36, %v828_v39  ;;  %v833_v49 = vpop.f32.mrf.mxu3  ;;  %910 = vst [vmem:[%s2529_s13 + $0x1b8] sm:$0xff] %v2881_v0 }
 0x10c   : > { %974 = vst [vmem:[%s2453_s29 + $0x1b8] sm:$0xff] %v2881_v0  ;;  %v2903_v20 = vadd.f32 %v2522_v36, %v833_v49 }
 0x10d   : > { %868 = vst [vmem:[%s2529_s13 + $0x68] sm:$0xff] %v726_v9  ;;  %v1069_v30 = vmul.f32 %v726_v9, %v726_v9  ;;  %v996_v34 = vadd.f32 %v995_v27, %v726_v9 }
 0x10e   : > { %932 = vst [vmem:[%s2453_s29 + $0x68] sm:$0xff] %v726_v9  ;;  %v803_v9 = vpop.f32.mrf.mxu2 }
 0x10f   : > { %884 = vst [vmem:[%s2529_s13 + $0xe8] sm:$0xff] %v2805_v16  ;;  %v1132_v41 = vadd.f32 %v1131_v1, %v1069_v30  ;;  %v1076_v1 = vmul.f32 %v2582_v7, %v2582_v7 }
 0x110   : > { %948 = vst [vmem:[%s2453_s29 + $0xe8] sm:$0xff] %v2805_v16 }
 0x111   : > { %909 = vst [vmem:[%s2529_s13 + $0x1b0] sm:$0xff] %v2854_v31 }
 0x112   : > { %v728_v37 = vpop.f32.mrf.mxu0  ;;  %v768_v63 = vpop.f32.mrf.mxu1  ;;  %973 = vst [vmem:[%s2453_s29 + $0x1b0] sm:$0xff] %v2854_v31 }
 0x113   : > { %v729_v47 = vadd.f32 %v2522_v36, %v728_v37  ;;  %v2843_v12 = vadd.f32 %v2522_v36, %v768_v63  ;;  %v835_v56 = vpop.f32.mrf.mxu3  ;;  %911 = vst [vmem:[%s2529_s13 + $0x1c0] sm:$0xff] %v2903_v20 }
 0x114   : > { %975 = vst [vmem:[%s2453_s29 + $0x1c0] sm:$0xff] %v2903_v20 }
 0x115   : > { %869 = vst [vmem:[%s2529_s13 + $0x70] sm:$0xff] %v729_v47  ;;  %v1070_v35 = vmul.f32 %v729_v47, %v729_v47  ;;  %v997_v22 = vadd.f32 %v996_v34, %v729_v47 }
 0x116   : > { %933 = vst [vmem:[%s2453_s29 + $0x70] sm:$0xff] %v729_v47  ;;  %v805_v14 = vpop.f32.mrf.mxu2 }
 0x117   : > { %885 = vst [vmem:[%s2529_s13 + $0xf0] sm:$0xff] %v2843_v12  ;;  %v1133_v50 = vadd.f32 %v1132_v41, %v1070_v35  ;;  %v2911_v30 = vadd.f32 %v2522_v36, %v805_v14 }
 0x118   : > { %949 = vst [vmem:[%s2453_s29 + $0xf0] sm:$0xff] %v2843_v12 }
 0x119   : > { %900 = vst [vmem:[%s2529_s13 + $0x168] sm:$0xff] %v2911_v30 }
 0x11a   : > { %v730_v13 = vpop.f32.mrf.mxu0  ;;  %v770_v10 = vpop.f32.mrf.mxu1  ;;  %964 = vst [vmem:[%s2453_s29 + $0x168] sm:$0xff] %v2911_v30 }
 0x11b   : > { %v731_v39 = vadd.f32 %v2522_v36, %v730_v13  ;;  %v2866_v44 = vadd.f32 %v2522_v36, %v770_v10  ;;  %v1077_v13 = vmul.f32 %v2607_v17, %v2607_v17  ;;  %v838_v49 = vpop.f32.mrf.mxu3 }
 0x11d   : > { %870 = vst [vmem:[%s2529_s13 + $0x78] sm:$0xff] %v731_v39  ;;  %v998_v53 = vadd.f32 %v997_v22, %v731_v39  ;;  %v1071_v55 = vmul.f32 %v731_v39, %v731_v39 }
 0x11e   : > { %934 = vst [vmem:[%s2453_s29 + $0x78] sm:$0xff] %v731_v39 }
 0x11f   : > { %v999_v37 = vadd.f32 %v998_v53, %v2527_v40  ;;  %v1134_v63 = vadd.f32 %v1133_v50, %v1071_v55  ;;  %886 = vst [vmem:[%s2529_s13 + $0xf8] sm:$0xff] %v2866_v44  ;;  %v1074_v40 = vmul.f32 %v2553_v54, %v2553_v54  ;;  %v1080_v55 = vmul.f32 %v2673_v38, %v2673_v38 }
 0x120   : > { %950 = vst [vmem:[%s2453_s29 + $0xf8] sm:$0xff] %v2866_v44 }
 0x121   : > { %v1000_v5 = vadd.f32 %v999_v37, %v2543_v46  ;;  %v1135_v47 = vadd.f32 %v1134_v63, %v1072_v59  ;;  %v2900_v46 = vadd.f32 %v2522_v36, %v803_v9  ;;  %v808_v9 = vpop.f32.mrf.mxu2  ;;  %v1081_v37 = vmul.f32 %v2701_v48, %v2701_v48 }
 0x123   : > { %v1001_v6 = vadd.f32 %v1000_v5, %v2553_v54  ;;  %v1136_v8 = vadd.f32 %v1135_v47, %v1073_v4  ;;  %v1075_v54 = vmul.f32 %v2565_v62, %v2565_v62  ;;  %899 = vst [vmem:[%s2529_s13 + $0x160] sm:$0xff] %v2900_v46 }
 0x124   : > { %963 = vst [vmem:[%s2453_s29 + $0x160] sm:$0xff] %v2900_v46 }
 0x125   : > { %v1002_v26 = vadd.f32 %v1001_v6, %v2565_v62  ;;  %v1137_v27 = vadd.f32 %v1136_v8, %v1074_v40  ;;  %v2921_v62 = vadd.f32 %v2522_v36, %v835_v56  ;;  %v840_v6 = vpop.f32.mrf.mxu3  ;;  %v2952_v8 = vadd.f32 %v2522_v36, %v808_v9 }
 0x127   : > { %v1003_v34 = vadd.f32 %v1002_v26, %v2582_v7  ;;  %v1138_v35 = vadd.f32 %v1137_v27, %v1075_v54  ;;  %v1078_v7 = vmul.f32 %v2628_v23, %v2628_v23  ;;  %912 = vst [vmem:[%s2529_s13 + $0x1c8] sm:$0xff] %v2921_v62  ;;  %v1084_v26 = vmul.f32 %v2773_v15, %v2773_v15 }
 0x128   : > { %976 = vst [vmem:[%s2453_s29 + $0x1c8] sm:$0xff] %v2921_v62 }
 0x129   : > { %v1004_v10 = vadd.f32 %v1003_v34, %v2607_v17  ;;  %v1139_v41 = vadd.f32 %v1138_v35, %v1076_v1  ;;  %v1079_v17 = vmul.f32 %v2649_v29, %v2649_v29  ;;  %v810_v40 = vpop.f32.mrf.mxu2  ;;  %901 = vst [vmem:[%s2529_s13 + $0x170] sm:$0xff] %v2952_v8  ;;  %v1085_v35 = vmul.f32 %v2805_v16, %v2805_v16 }
 0x12a   : > { %965 = vst [vmem:[%s2453_s29 + $0x170] sm:$0xff] %v2952_v8 }
 0x12b   : > { %v1140_v22 = vadd.f32 %v1139_v41, %v1077_v13  ;;  %v1005_v39 = vadd.f32 %v1004_v10, %v2628_v23  ;;  %v1086_v10 = vmul.f32 %v2843_v12, %v2843_v12 }
 0x12d   : > { %v1006_v50 = vadd.f32 %v1005_v39, %v2649_v29  ;;  %v1141_v53 = vadd.f32 %v1140_v22, %v1078_v7  ;;  %v1082_v29 = vmul.f32 %v2729_v57, %v2729_v57  ;;  %v843_v41 = vpop.f32.mrf.mxu3  ;;  %v1088_v39 = vmul.f32 %v2572_v3, %v2572_v3 }
 0x12f   : > { %v1007_v23 = vadd.f32 %v1006_v50, %v2673_v38  ;;  %v1142_v59 = vadd.f32 %v1141_v53, %v1079_v17  ;;  %v2955_v38 = vadd.f32 %v2522_v36, %v838_v49  ;;  %v1089_v49 = vmul.f32 %v2588_v11, %v2588_v11 }
 0x131   : > { %v1008_v63 = vadd.f32 %v1007_v23, %v2701_v48  ;;  %v1143_v4 = vadd.f32 %v1142_v59, %v1080_v55  ;;  %v1083_v48 = vmul.f32 %v2757_v2, %v2757_v2  ;;  %913 = vst [vmem:[%s2529_s13 + $0x1d0] sm:$0xff] %v2955_v38  ;;  %v3004_v59 = vadd.f32 %v2522_v36, %v843_v41 }
 0x132   : > { %977 = vst [vmem:[%s2453_s29 + $0x1d0] sm:$0xff] %v2955_v38 }
 0x133   : > { %v1009_v5 = vadd.f32 %v1008_v63, %v2729_v57  ;;  %v1144_v47 = vadd.f32 %v1143_v4, %v1081_v37  ;;  %v2963_v57 = vadd.f32 %v2522_v36, %v810_v40  ;;  %v1091_v37 = vmul.f32 %v2633_v25, %v2633_v25  ;;  %915 = vst [vmem:[%s2529_s13 + $0x1e0] sm:$0xff] %v3004_v59 }
 0x134   : > { %979 = vst [vmem:[%s2453_s29 + $0x1e0] sm:$0xff] %v3004_v59 }
 0x135   : > { %v1010_v14 = vadd.f32 %v1009_v5, %v2757_v2  ;;  %v1145_v56 = vadd.f32 %v1144_v47, %v1082_v29  ;;  %v2973_v2 = vadd.f32 %v2522_v36, %v840_v6  ;;  %902 = vst [vmem:[%s2529_s13 + $0x178] sm:$0xff] %v2963_v57  ;;  %v845_v23 = vpop.f32.mrf.mxu3  ;;  %v1093_v5 = vmul.f32 %v2682_v42, %v2682_v42 }
 0x136   : > { %966 = vst [vmem:[%s2453_s29 + $0x178] sm:$0xff] %v2963_v57 }
 0x137   : > { %v1011_v54 = vadd.f32 %v1010_v14, %v2773_v15  ;;  %v1146_v27 = vadd.f32 %v1145_v56, %v1083_v48  ;;  %914 = vst [vmem:[%s2529_s13 + $0x1d8] sm:$0xff] %v2973_v2  ;;  %v1095_v14 = vmul.f32 %v2738_v60, %v2738_v60 }
 0x138   : > { %978 = vst [vmem:[%s2453_s29 + $0x1d8] sm:$0xff] %v2973_v2 }
 0x139   : > { %v1147_v1 = vadd.f32 %v1146_v27, %v1084_v26  ;;  %v1012_v34 = vadd.f32 %v1011_v54, %v2805_v16  ;;  %v1087_v16 = vmul.f32 %v2866_v44, %v2866_v44  ;;  %v1096_v26 = vmul.f32 %v2777_v18, %v2777_v18 }
 0x13b   : > { %v1148_v15 = vadd.f32 %v1147_v1, %v1085_v35  ;;  %v1013_v13 = vadd.f32 %v1012_v34, %v2843_v12  ;;  %v1097_v1 = vmul.f32 %v2814_v45, %v2814_v45  ;;  %v1098_v35 = vmul.f32 %v2848_v24, %v2848_v24 }
 0x13d   : > { %v1149_v7 = vadd.f32 %v1148_v15, %v1086_v10  ;;  %v1014_v22 = vadd.f32 %v1013_v13, %v2866_v44  ;;  %v1090_v44 = vmul.f32 %v2616_v19, %v2616_v19 }
 0x13f   : > { %v1015_v9 = vadd.f32 %v1014_v22, %v2572_v3  ;;  %v1150_v12 = vadd.f32 %v1149_v7, %v1087_v16  ;;  %v3007_v3 = vadd.f32 %v2522_v36, %v845_v23  ;;  %v1100_v16 = vmul.f32 %v2900_v46, %v2900_v46 }
 0x141   : > { %v1016_v17 = vadd.f32 %v1015_v9, %v2588_v11  ;;  %v1151_v50 = vadd.f32 %v1150_v12, %v1088_v39  ;;  %916 = vst [vmem:[%s2529_s13 + $0x1e8] sm:$0xff] %v3007_v3  ;;  %v1101_v9 = vmul.f32 %v2911_v30, %v2911_v30 }
 0x142   : > { %980 = vst [vmem:[%s2453_s29 + $0x1e8] sm:$0xff] %v3007_v3 }
 0x143   : > { %v1017_v53 = vadd.f32 %v1016_v17, %v2616_v19  ;;  %v1152_v55 = vadd.f32 %v1151_v50, %v1089_v49  ;;  %v1092_v19 = vmul.f32 %v2658_v32, %v2658_v32  ;;  %v1102_v49 = vmul.f32 %v2952_v8, %v2952_v8 }
 0x144   : > { %v1103_v50 = vmul.f32 %v2963_v57, %v2963_v57 }
 0x145   : > { %v1018_v11 = vadd.f32 %v1017_v53, %v2633_v25  ;;  %v1153_v63 = vadd.f32 %v1152_v55, %v1090_v44  ;;  %v1094_v25 = vmul.f32 %v2714_v51, %v2714_v51  ;;  %v1104_v44 = vmul.f32 %v2661_v33, %v2661_v33 }
 0x146   : > { %v1105_v55 = vmul.f32 %v2689_v43, %v2689_v43 }
 0x147   : > { %v1019_v4 = vadd.f32 %v1018_v11, %v2658_v32  ;;  %v1154_v29 = vadd.f32 %v1153_v63, %v1091_v37  ;;  %v848_v32 = vpop.f32.mrf.mxu3 }
 0x148   : > { %v3042_v10 = vadd.f32 %v2522_v36, %v848_v32 }
 0x149   : > { %v1155_v47 = vadd.f32 %v1154_v29, %v1092_v19  ;;  %v1020_v40 = vadd.f32 %v1019_v4, %v2682_v42 }
 0x14a   : > { %917 = vst [vmem:[%s2529_s13 + $0x1f0] sm:$0xff] %v3042_v10 }
 0x14b   : > { %v1021_v6 = vadd.f32 %v1020_v40, %v2714_v51  ;;  %v1156_v48 = vadd.f32 %v1155_v47, %v1093_v5  ;;  %981 = vst [vmem:[%s2453_s29 + $0x1f0] sm:$0xff] %v3042_v10 }
 0x14d   : > { %v1022_v56 = vadd.f32 %v1021_v6, %v2738_v60  ;;  %v1157_v54 = vadd.f32 %v1156_v48, %v1094_v25 }
 0x14f   : > { %v1023_v42 = vadd.f32 %v1022_v56, %v2777_v18  ;;  %v1158_v27 = vadd.f32 %v1157_v54, %v1095_v14  ;;  %v850_v13 = vpop.f32.mrf.mxu3 }
 0x150   : > { %v3045_v18 = vadd.f32 %v2522_v36, %v850_v13 }
 0x151   : > { %v1024_v51 = vadd.f32 %v1023_v42, %v2814_v45  ;;  %v1159_v34 = vadd.f32 %v1158_v27, %v1096_v26  ;;  %v1099_v45 = vmul.f32 %v2872_v58, %v2872_v58 }
 0x152   : > { %918 = vst [vmem:[%s2529_s13 + $0x1f8] sm:$0xff] %v3045_v18 }
 0x153   : > { %v1025_v60 = vadd.f32 %v1024_v51, %v2848_v24  ;;  %v1160_v15 = vadd.f32 %v1159_v34, %v1097_v1  ;;  %982 = vst [vmem:[%s2453_s29 + $0x1f8] sm:$0xff] %v3045_v18  ;;  %v1115_v1 = vmul.f32 %v2973_v2, %v2973_v2 }
 0x155   : > { %v1026_v41 = vadd.f32 %v1025_v60, %v2872_v58  ;;  %v1161_v7 = vadd.f32 %v1160_v15, %v1098_v35  ;;  %v1116_v35 = vmul.f32 %v3004_v59, %v3004_v59  ;;  %v1117_v15 = vmul.f32 %v3007_v3, %v3007_v3 }
 0x157   : > { %v1162_v22 = vadd.f32 %v1161_v7, %v1099_v45  ;;  %v1027_v24 = vadd.f32 %v1026_v41, %v2900_v46  ;;  %v1118_v41 = vmul.f32 %v3042_v10, %v3042_v10  ;;  %v1119_v7 = vmul.f32 %v3045_v18, %v3045_v18 }
 0x159   : > { %v1163_v36 = vadd.f32 %v1162_v22, %v1100_v16  ;;  %v1028_v39 = vadd.f32 %v1027_v24, %v2911_v30 }
 0x15b   : > { %v1164_v58 = vadd.f32 %v1163_v36, %v1101_v9  ;;  %v1029_v12 = vadd.f32 %v1028_v39, %v2952_v8  ;;  %v1106_v8 = vmul.f32 %v2717_v52, %v2717_v52 }
 0x15d   : > { %v1165_v17 = vadd.f32 %v1164_v58, %v1102_v49  ;;  %v1030_v46 = vadd.f32 %v1029_v12, %v2963_v57  ;;  %v1107_v57 = vmul.f32 %v2745_v61, %v2745_v61  ;;  %v983_v49 = vld [vmem:[#allocation3] sm:$0x1] }
 0x15f   : > { %v1031_v53 = vadd.f32 %v1030_v46, %v2661_v33  ;;  %v1166_v30 = vadd.f32 %v1165_v17, %v1103_v50  ;;  %v1108_v33 = vmul.f32 %v2785_v21, %v2785_v21 }
 0x161   : > { %v1032_v23 = vadd.f32 %v1031_v53, %v2689_v43  ;;  %v1167_v37 = vadd.f32 %v1166_v30, %v1104_v44  ;;  %v1109_v43 = vmul.f32 %v2823_v28, %v2823_v28 }
 0x163   : > { %v1033_v11 = vadd.f32 %v1032_v23, %v2717_v52  ;;  %v1168_v63 = vadd.f32 %v1167_v37, %v1105_v55  ;;  %v1110_v52 = vmul.f32 %v2854_v31, %v2854_v31 }
 0x165   : > { %v1034_v19 = vadd.f32 %v1033_v11, %v2745_v61  ;;  %v1169_v4 = vadd.f32 %v1168_v63, %v1106_v8  ;;  %v1111_v61 = vmul.f32 %v2881_v0, %v2881_v0 }
 0x167   : > { %v1035_v29 = vadd.f32 %v1034_v19, %v2785_v21  ;;  %v1170_v5 = vadd.f32 %v1169_v4, %v1107_v57  ;;  %v1112_v21 = vmul.f32 %v2903_v20, %v2903_v20 }
 0x169   : > { %v1171_v47 = vadd.f32 %v1170_v5, %v1108_v33  ;;  %v1036_v40 = vadd.f32 %v1035_v29, %v2823_v28  ;;  %v1113_v28 = vmul.f32 %v2921_v62, %v2921_v62 }
 0x16b   : > { %v1037_v25 = vadd.f32 %v1036_v40, %v2854_v31  ;;  %v1172_v6 = vadd.f32 %v1171_v47, %v1109_v43  ;;  %v1114_v31 = vmul.f32 %v2955_v38, %v2955_v38 }
 0x16d   : > { %v1038_v48 = vadd.f32 %v1037_v25, %v2881_v0  ;;  %v1173_v32 = vadd.f32 %v1172_v6, %v1110_v52 }
 0x16f   : > { %v1039_v14 = vadd.f32 %v1038_v48, %v2903_v20  ;;  %v1174_v56 = vadd.f32 %v1173_v32, %v1111_v61 }
 0x171   : > { %v1040_v54 = vadd.f32 %v1039_v14, %v2921_v62  ;;  %v1175_v26 = vadd.f32 %v1174_v56, %v1112_v21 }
 0x173   : > { %v1041_v42 = vadd.f32 %v1040_v54, %v2955_v38  ;;  %v1176_v27 = vadd.f32 %v1175_v26, %v1113_v28 }
 0x175   : > { %v1042_v0 = vadd.f32 %v1041_v42, %v2973_v2  ;;  %v1177_v51 = vadd.f32 %v1176_v27, %v1114_v31 }
 0x177   : > { %v1178_v20 = vadd.f32 %v1177_v51, %v1115_v1  ;;  %v1043_v34 = vadd.f32 %v1042_v0, %v3004_v59 }
 0x179   : > { %v1179_v62 = vadd.f32 %v1178_v20, %v1116_v35  ;;  %v1044_v60 = vadd.f32 %v1043_v34, %v3007_v3 }
 0x17b   : > { %v1180_v38 = vadd.f32 %v1179_v62, %v1117_v15  ;;  %v1045_v13 = vadd.f32 %v1044_v60, %v3042_v10  ;;  %v1055_v10 = vld [vmem:[#allocation4] sm:$0x1] }
 0x17d   : > { %v1181_v2 = vadd.f32 %v1180_v38, %v1118_v41  ;;  %v1046_v45 = vadd.f32 %v1045_v13, %v3045_v18 }
 0x17f   : > { %v1047_v22 = vrot.slane %v1046_v45, 4  ;;  %v1182_v59 = vadd.f32 %v1181_v2, %v1119_v7 }
 0x181   : > { %v1048_v24 = vadd.f32 %v1047_v22, %v1046_v45  ;;  %v1183_v16 = vrot.slane %v1182_v59, 4 }
 0x183   : > { %v1049_v36 = vrot.slane %v1048_v24, 2  ;;  %v1184_v39 = vadd.f32 %v1183_v16, %v1182_v59 }
 0x185   : > { %v1050_v9 = vadd.f32 %v1049_v36, %v1048_v24  ;;  %v1185_v3 = vrot.slane %v1184_v39, 2 }
 0x187   : > { %v1051_v58 = vrot.slane %v1050_v9, 1  ;;  %v1186_v12 = vadd.f32 %v1185_v3, %v1184_v39 }
 0x189   : > { %v1052_v17 = vadd.f32 %v1051_v58, %v1050_v9  ;;  %v1187_v46 = vrot.slane %v1186_v12, 1 }
 0x18b   : > { %v1053_v50 = vadd.f32 %v1052_v17, %v983_v49  ;;  %v1188_v44 = vadd.f32 %v1187_v46, %v1186_v12 }
 0x18d   : > { %1054 = vst [vmem:[#allocation3] sm:$0x1] %v1053_v50  ;;  %v1189_v53 = vadd.f32 %v1188_v44, %v1055_v10 }
 0x18f   : > { %1190 = vst [vmem:[#allocation4] sm:$0x1] %v1189_v53 }
 0x190 PF: > { %p2045_p9 = scmp.ne.s32.totalorder %s2350_s22, 1 }
 0x191   : > { %p2046_p10 = scmp.ne.s32.totalorder (!%p2045_p9), %s2346_s21, 0 }
 0x192   : > { %1194 = sbr.rel (%p2045_p9) target bundleno = 545 (0x221), region = 52 }
 0x197   : > { %1198 = sbr.rel (%p2046_p10) target bundleno = 448 (0x1c0), region = 56 }
 0x19c   : > { %v1199_v18 = vld [vmem:[#allocation3] sm:$0x1]  ;;  %v1201_v30 = vld [vmem:[#allocation4] sm:$0x1] }
 0x19d   : > { %v1200_v55 = vmul.f32 0.00048828125, %v1199_v18  ;;  %v1202_v23 = vmul.f32 0.00048828125, %v1201_v30  ;;  %v1206_v5 = vld [vmem:[%s3376_s3] sm:$0x1] }
 0x19e   : > { %v1220_v52 = vld [vmem:[%s3377_s4] sm:$0x1] }
 0x19f   : > { %v1203_v37 = vmul.f32 %v1200_v55, %v1200_v55 }
 0x1a1   : > { %v1204_v8 = vsub.f32 %v1202_v23, %v1203_v37 }
 0x1a3   : > { %v1205_v11 = vmax.f32 %v1204_v8, 0.0 }
 0x1a5   : > { %v1207_v63 = vadd.f32 1e-05, %v1205_v11 }
 0x1a7   : > { %2320 = vrsqrt.f32 %v1207_v63  ;;  %vm1214_vm3 = vweird.f32 %v1207_v63 }
 0x1ad   : > { %v2321_v57 = vpop.eup %2320 }
 0x1ae   : > { %v1209_v19 = vmul.f32 %v2321_v57, %v1207_v63  ;;  %vm1215_vm4 = vweird.f32 %v2321_v57 }
 0x1af   : > { %vm1216_vm5 = vmor %vm1214_vm3, %vm1215_vm4 }
 0x1b0   : > { %v1210_v4 = vmul.f32 %v2321_v57, %v1209_v19 }
 0x1b2   : > { %v1211_v33 = vmul.f32 0.5, %v1210_v4 }
 0x1b4   : > { %v1212_v29 = vsub.f32 1.5, %v1211_v33 }
 0x1b6   : > { %v1213_v43 = vmul.f32 %v2321_v57, %v1212_v29 }
 0x1b8   : > { %v1217_v47 = vsel %vm1216_vm5, %v2321_v57, %v1213_v43 }
 0x1b9   : > { %v1218_v40 = vmul.f32 %v1217_v47, %v1206_v5 }
 0x1bb   : > { %1219 = vst [vmem:[#allocation5] sm:$0x1] %v1218_v40  ;;  %v1221_v25 = vmul.f32 %v1218_v40, %v1200_v55 }
 0x1bd   : > { %v1222_v6 = vsub.f32 %v1220_v52, %v1221_v25 }
 0x1bf   : > { %1223 = vst [vmem:[#allocation6] sm:$0x1] %v1222_v6 }
 0x1c0 PF: > { %s2047_s17 = sshll.u32 %s2346_s21, 9 }
 0x1c1   : > { %s3131_s18 = scalar_lea.vmem [#allocation2], %s2047_s17 }
 0x1c2   : > { %v3127_v61 = vld [vmem:[#allocation5] ss:$0 sm:$0xff]  ;;  %v1227_v21 = vld [vmem:[%s3131_s18 + $0x8] sm:$0xff]  ;;  %v1228_v14 = vld [vmem:[%s3131_s18 + $0x10] sm:$0xff] }
 0x1c3   : > { %v1226_v32 = vld [vmem:[%s3131_s18] sm:$0xff]  ;;  %v1295_v28 = vmul.f32 %v3127_v61, %v1227_v21  ;;  %v1229_v54 = vld [vmem:[%s3131_s18 + $0x18] sm:$0xff]  ;;  %v1296_v26 = vmul.f32 %v3127_v61, %v1228_v14  ;;  %v1231_v42 = vld [vmem:[%s3131_s18 + $0x28] sm:$0xff] }
 0x1c4   : > { %v1294_v56 = vmul.f32 %v3127_v61, %v1226_v32  ;;  %v1230_v31 = vld [vmem:[%s3131_s18 + $0x20] sm:$0xff]  ;;  %v1297_v27 = vmul.f32 %v3127_v61, %v1229_v54  ;;  %v1299_v1 = vmul.f32 %v3127_v61, %v1231_v42  ;;  %v1232_v51 = vld [vmem:[%s3131_s18 + $0x30] sm:$0xff]  ;;  %v1233_v20 = vld [vmem:[%s3131_s18 + $0x38] sm:$0xff] }
 0x1c5   : > { %v1298_v0 = vmul.f32 %v3127_v61, %v1230_v31  ;;  %v1300_v60 = vmul.f32 %v3127_v61, %v1232_v51  ;;  %v1301_v41 = vmul.f32 %v3127_v61, %v1233_v20  ;;  %v1234_v16 = vld [vmem:[%s3131_s18 + $0x40] sm:$0xff]  ;;  %v1235_v36 = vld [vmem:[%s3131_s18 + $0x48] sm:$0xff]  ;;  %v1236_v39 = vld [vmem:[%s3131_s18 + $0x50] sm:$0xff] }
 0x1c6   : > { %v3129_v48 = vld [vmem:[#allocation6] ss:$0 sm:$0xff]  ;;  %v1302_v44 = vmul.f32 %v3127_v61, %v1234_v16  ;;  %v1303_v53 = vmul.f32 %v3127_v61, %v1235_v36  ;;  %v1237_v18 = vld [vmem:[%s3131_s18 + $0x58] sm:$0xff]  ;;  %v1304_v30 = vmul.f32 %v3127_v61, %v1236_v39  ;;  %v1239_v29 = vld [vmem:[%s3131_s18 + $0x68] sm:$0xff] }
 0x1c7   : > { %v1362_v34 = vadd.f32 %v3129_v48, %v1294_v56  ;;  %v1363_v35 = vadd.f32 %v3129_v48, %v1295_v28  ;;  %v1364_v62 = vadd.f32 %v3129_v48, %v1296_v26  ;;  %v1365_v15 = vadd.f32 %v3129_v48, %v1297_v27  ;;  %v1238_v55 = vld [vmem:[%s3131_s18 + $0x60] sm:$0xff]  ;;  %v1240_v40 = vld [vmem:[%s3131_s18 + $0x70] sm:$0xff]  ;;  %v1241_v28 = vld [vmem:[%s3131_s18 + $0x78] sm:$0xff] }
 0x1c8   : > { %v1366_v38 = vadd.f32 %v3129_v48, %v1298_v0  ;;  %v1367_v13 = vadd.f32 %v3129_v48, %v1299_v1  ;;  %v1368_v46 = vadd.f32 %v3129_v48, %v1300_v60  ;;  %v1369_v10 = vadd.f32 %v3129_v48, %v1301_v41  ;;  %v1242_v42 = vld [vmem:[%s3131_s18 + $0x80] sm:$0xff]  ;;  %v1244_v60 = vld [vmem:[%s3131_s18 + $0x90] sm:$0xff]  ;;  %v1247_v39 = vld [vmem:[%s3131_s18 + $0xa8] sm:$0xff] }
 0x1c9   : > { %vm1426_vm6 = vcmp.ge.f32.partialorder %v1362_v34, 0.0  ;;  %vm1427_vm7 = vcmp.ge.f32.partialorder %v1363_v35, 0.0  ;;  %v1490_v2 = vmul.f32 0.01, %v1362_v34  ;;  %v1491_v45 = vmul.f32 0.01, %v1363_v35 }
 0x1ca   : > { %vm1428_vm8 = vcmp.ge.f32.partialorder %v1364_v62, 0.0  ;;  %vm1429_vm9 = vcmp.ge.f32.partialorder %v1365_v15, 0.0  ;;  %v1492_v7 = vmul.f32 0.01, %v1364_v62  ;;  %v1493_v22 = vmul.f32 0.01, %v1365_v15 }
 0x1cb   : > { %v1554_v59 = vsel %vm1426_vm6, %v1362_v34, %v1490_v2  ;;  %v1555_v24 = vsel %vm1427_vm7, %v1363_v35, %v1491_v45  ;;  %vm1430_vm10 = vcmp.ge.f32.partialorder %v1366_v38, 0.0  ;;  %vm1431_vm11 = vcmp.ge.f32.partialorder %v1367_v13, 0.0  ;;  %v1246_v36 = vld [vmem:[%s3131_s18 + $0xa0] sm:$0xff] }
 0x1cc   : > { %v2086_v9 = vpack.c.bf16 %v1555_v24, %v1554_v59  ;;  %v1556_v3 = vsel %vm1428_vm8, %v1364_v62, %v1492_v7  ;;  %v1557_v58 = vsel %vm1429_vm9, %v1365_v15, %v1493_v22  ;;  %v1494_v12 = vmul.f32 0.01, %v1366_v38  ;;  %v1243_v62 = vld [vmem:[%s3131_s18 + $0x88] sm:$0xff]  ;;  %v1245_v7 = vld [vmem:[%s3131_s18 + $0x98] sm:$0xff] }
 0x1cd   : > { %v2091_v49 = vpack.c.bf16 %v1557_v58, %v1556_v3  ;;  %v1495_v17 = vmul.f32 0.01, %v1367_v13  ;;  %vm1432_vm12 = vcmp.ge.f32.partialorder %v1368_v46, 0.0  ;;  %vm1433_vm13 = vcmp.ge.f32.partialorder %v1369_v10, 0.0 }
 0x1ce   : > { %2087 = vst [vmem:[%s2448_s19] sm:$0xff] %v2086_v9   ;;  %v1558_v50 = vsel %vm1430_vm10, %v1366_v38, %v1494_v12  ;;  %v1496_v37 = vmul.f32 0.01, %v1368_v46  ;;  %v1497_v11 = vmul.f32 0.01, %v1369_v10  ;;  %v1370_v63 = vadd.f32 %v3129_v48, %v1302_v44 }
 0x1cf   : > { %2243 = vst [vmem:[%s2448_s19 + $0x8] sm:$0xff] %v2091_v49   ;;  %v1559_v23 = vsel %vm1431_vm11, %v1367_v13, %v1495_v17  ;;  %v1371_v57 = vadd.f32 %v3129_v48, %v1303_v53  ;;  %v1305_v4 = vmul.f32 %v3127_v61, %v1237_v18  ;;  %v1372_v33 = vadd.f32 %v3129_v48, %v1304_v30  ;;  %v1248_v53 = vld [vmem:[%s3131_s18 + $0xb0] sm:$0xff]  ;;  %v1249_v18 = vld [vmem:[%s3131_s18 + $0xb8] sm:$0xff] }
 0x1d0   : > { %v2096_v8 = vpack.c.bf16 %v1559_v23, %v1558_v50  ;;  %v1560_v19 = vsel %vm1432_vm12, %v1368_v46, %v1496_v37  ;;  %v1306_v5 = vmul.f32 %v3127_v61, %v1238_v55  ;;  %v1561_v43 = vsel %vm1433_vm13, %v1369_v10, %v1497_v11 }
 0x1d1   : > { %vm1434_vm14 = vcmp.ge.f32.partialorder %v1370_v63, 0.0  ;;  %vm1435_vm15 = vcmp.ge.f32.partialorder %v1371_v57, 0.0  ;;  %v1498_v47 = vmul.f32 0.01, %v1370_v63  ;;  %v2101_v52 = vpack.c.bf16 %v1561_v43, %v1560_v19 }
 0x1d2   : > { %2244 = vst [vmem:[%s2448_s19 + $0x10] sm:$0xff] %v2096_v8   ;;  %v1499_v25 = vmul.f32 0.01, %v1371_v57  ;;  %v1373_v6 = vadd.f32 %v3129_v48, %v1305_v4  ;;  %vm1436_vm0 = vcmp.ge.f32.partialorder %v1372_v33, 0.0  ;;  %v1500_v21 = vmul.f32 0.01, %v1372_v33 }
 0x1d3   : > { %v1562_v32 = vsel %vm1434_vm14, %v1370_v63, %v1498_v47  ;;  %v1307_v14 = vmul.f32 %v3127_v61, %v1239_v29  ;;  %v1374_v56 = vadd.f32 %v3129_v48, %v1306_v5  ;;  %2245 = vst [vmem:[%s2448_s19 + $0x18] sm:$0xff] %v2101_v52   ;;  %v1308_v31 = vmul.f32 %v3127_v61, %v1240_v40  ;;  %v1251_v47 = vld [vmem:[%s3131_s18 + $0xc8] sm:$0xff] }
 0x1d4   : > { %v1563_v54 = vsel %vm1435_vm15, %v1371_v57, %v1499_v25  ;;  %vm1437_vm1 = vcmp.ge.f32.partialorder %v1373_v6, 0.0  ;;  %v1501_v26 = vmul.f32 0.01, %v1373_v6  ;;  %v1564_v0 = vsel %vm1436_vm0, %v1372_v33, %v1500_v21  ;;  %v1250_v33 = vld [vmem:[%s3131_s18 + $0xc0] sm:$0xff] }
 0x1d5   : > { %v2106_v27 = vpack.c.bf16 %v1563_v54, %v1562_v32  ;;  %v1375_v1 = vadd.f32 %v3129_v48, %v1307_v14  ;;  %vm1438_vm2 = vcmp.ge.f32.partialorder %v1374_v56, 0.0  ;;  %v1502_v20 = vmul.f32 0.01, %v1374_v56  ;;  %v1252_v14 = vld [vmem:[%s3131_s18 + $0xd0] sm:$0xff] }
 0x1d6   : > { %v1565_v51 = vsel %vm1437_vm1, %v1373_v6, %v1501_v26  ;;  %v1309_v34 = vmul.f32 %v3127_v61, %v1241_v28  ;;  %v1376_v35 = vadd.f32 %v3129_v48, %v1308_v31  ;;  %v1310_v13 = vmul.f32 %v3127_v61, %v1242_v42  ;;  %v1253_v31 = vld [vmem:[%s3131_s18 + $0xd8] sm:$0xff]  ;;  %v1254_v42 = vld [vmem:[%s3131_s18 + $0xe0] sm:$0xff] }
 0x1d7   : > { %2246 = vst [vmem:[%s2448_s19 + $0x20] sm:$0xff] %v2106_v27   ;;  %v2111_v15 = vpack.c.bf16 %v1565_v51, %v1564_v0  ;;  %vm1439_vm3 = vcmp.ge.f32.partialorder %v1375_v1, 0.0  ;;  %v1503_v38 = vmul.f32 0.01, %v1375_v1  ;;  %v1566_v41 = vsel %vm1438_vm2, %v1374_v56, %v1502_v20  ;;  %v1255_v27 = vld [vmem:[%s3131_s18 + $0xe8] sm:$0xff] }
 0x1d8   : > { %v1377_v2 = vadd.f32 %v3129_v48, %v1309_v34  ;;  %vm1440_vm4 = vcmp.ge.f32.partialorder %v1376_v35, 0.0  ;;  %v1504_v45 = vmul.f32 0.01, %v1376_v35  ;;  %v1311_v59 = vmul.f32 %v3127_v61, %v1243_v62 }
 0x1d9   : > { %2247 = vst [vmem:[%s2448_s19 + $0x28] sm:$0xff] %v2111_v15   ;;  %v1567_v22 = vsel %vm1439_vm3, %v1375_v1, %v1503_v38  ;;  %v1378_v24 = vadd.f32 %v3129_v48, %v1310_v13  ;;  %v1312_v16 = vmul.f32 %v3127_v61, %v1244_v60  ;;  %v1313_v17 = vmul.f32 %v3127_v61, %v1245_v7  ;;  %v1256_v13 = vld [vmem:[%s3131_s18 + $0xf0] sm:$0xff] }
 0x1da   : > { %v2116_v9 = vpack.c.bf16 %v1567_v22, %v1566_v41  ;;  %vm1441_vm5 = vcmp.ge.f32.partialorder %v1377_v2, 0.0  ;;  %v1505_v3 = vmul.f32 0.01, %v1377_v2  ;;  %v1568_v58 = vsel %vm1440_vm4, %v1376_v35, %v1504_v45 }
 0x1db   : > { %v1379_v12 = vadd.f32 %v3129_v48, %v1311_v59  ;;  %vm1442_vm6 = vcmp.ge.f32.partialorder %v1378_v24, 0.0  ;;  %v1506_v49 = vmul.f32 0.01, %v1378_v24  ;;  %v1380_v10 = vadd.f32 %v3129_v48, %v1312_v16 }
 0x1dc   : > { %2248 = vst [vmem:[%s2448_s19 + $0x30] sm:$0xff] %v2116_v9   ;;  %v1569_v46 = vsel %vm1441_vm5, %v1377_v2, %v1505_v3  ;;  %v1314_v50 = vmul.f32 %v3127_v61, %v1246_v36  ;;  %v1315_v44 = vmul.f32 %v3127_v61, %v1247_v39  ;;  %v1381_v37 = vadd.f32 %v3129_v48, %v1313_v17  ;;  %v1257_v39 = vld [vmem:[%s3131_s18 + $0xf8] sm:$0xff]  ;;  %v1258_v3 = vld [vmem:[%s3131_s18 + $0x100] sm:$0xff] }
 0x1dd   : > { %v2121_v30 = vpack.c.bf16 %v1569_v46, %v1568_v58  ;;  %vm1443_vm7 = vcmp.ge.f32.partialorder %v1379_v12, 0.0  ;;  %v1507_v55 = vmul.f32 0.01, %v1379_v12  ;;  %v1570_v23 = vsel %vm1442_vm6, %v1378_v24, %v1506_v49  ;;  %v1259_v49 = vld [vmem:[%s3131_s18 + $0x108] sm:$0xff] }
 0x1de   : > { %vm1444_vm8 = vcmp.ge.f32.partialorder %v1380_v10, 0.0  ;;  %v1508_v8 = vmul.f32 0.01, %v1380_v10  ;;  %v1382_v11 = vadd.f32 %v3129_v48, %v1314_v50  ;;  %v1383_v57 = vadd.f32 %v3129_v48, %v1315_v44 }
 0x1df   : > { %2249 = vst [vmem:[%s2448_s19 + $0x38] sm:$0xff] %v2121_v30   ;;  %v1571_v63 = vsel %vm1443_vm7, %v1379_v12, %v1507_v55  ;;  %v1316_v19 = vmul.f32 %v3127_v61, %v1248_v53  ;;  %v1317_v4 = vmul.f32 %v3127_v61, %v1249_v18  ;;  %vm1445_vm9 = vcmp.ge.f32.partialorder %v1381_v37, 0.0 }
 0x1e0   : > { %v2126_v29 = vpack.c.bf16 %v1571_v63, %v1570_v23  ;;  %v1509_v5 = vmul.f32 0.01, %v1381_v37  ;;  %v1572_v43 = vsel %vm1444_vm8, %v1380_v10, %v1508_v8  ;;  %vm1446_vm10 = vcmp.ge.f32.partialorder %v1382_v11, 0.0 }
 0x1e1   : > { %vm1447_vm11 = vcmp.ge.f32.partialorder %v1383_v57, 0.0  ;;  %v1510_v40 = vmul.f32 0.01, %v1382_v11  ;;  %v1511_v52 = vmul.f32 0.01, %v1383_v57  ;;  %v1384_v6 = vadd.f32 %v3129_v48, %v1316_v19  ;;  %v1261_v19 = vld [vmem:[%s3131_s18 + $0x118] sm:$0xff] }
 0x1e2   : > { %2250 = vst [vmem:[%s2448_s19 + $0x40] sm:$0xff] %v2126_v29   ;;  %v1573_v25 = vsel %vm1445_vm9, %v1381_v37, %v1509_v5  ;;  %v1385_v32 = vadd.f32 %v3129_v48, %v1317_v4  ;;  %v1318_v21 = vmul.f32 %v3127_v61, %v1250_v33  ;;  %v1319_v26 = vmul.f32 %v3127_v61, %v1251_v47  ;;  %v1260_v37 = vld [vmem:[%s3131_s18 + $0x110] sm:$0xff] }
 0x1e3   : > { %v2131_v56 = vpack.c.bf16 %v1573_v25, %v1572_v43  ;;  %v1574_v28 = vsel %vm1446_vm10, %v1382_v11, %v1510_v40  ;;  %v1575_v54 = vsel %vm1447_vm11, %v1383_v57, %v1511_v52  ;;  %vm1448_vm12 = vcmp.ge.f32.partialorder %v1384_v6, 0.0  ;;  %v1262_v40 = vld [vmem:[%s3131_s18 + $0x120] sm:$0xff] }
 0x1e4   : > { %v2136_v0 = vpack.c.bf16 %v1575_v54, %v1574_v28  ;;  %vm1449_vm13 = vcmp.ge.f32.partialorder %v1385_v32, 0.0  ;;  %v1512_v1 = vmul.f32 0.01, %v1384_v6  ;;  %v1513_v51 = vmul.f32 0.01, %v1385_v32 }
 0x1e5   : > { %2251 = vst [vmem:[%s2448_s19 + $0x48] sm:$0xff] %v2131_v56   ;;  %v1386_v20 = vadd.f32 %v3129_v48, %v1318_v21  ;;  %v1387_v34 = vadd.f32 %v3129_v48, %v1319_v26  ;;  %v1320_v35 = vmul.f32 %v3127_v61, %v1252_v14  ;;  %v1321_v60 = vmul.f32 %v3127_v61, %v1253_v31 }
 0x1e6   : > { %2252 = vst [vmem:[%s2448_s19 + $0x50] sm:$0xff] %v2136_v0   ;;  %v1576_v62 = vsel %vm1448_vm12, %v1384_v6, %v1512_v1  ;;  %v1322_v15 = vmul.f32 %v3127_v61, %v1254_v42  ;;  %v1323_v38 = vmul.f32 %v3127_v61, %v1255_v27  ;;  %v1577_v41 = vsel %vm1449_vm13, %v1385_v32, %v1513_v51  ;;  %v1263_v32 = vld [vmem:[%s3131_s18 + $0x128] sm:$0xff]  ;;  %v1264_v42 = vld [vmem:[%s3131_s18 + $0x130] sm:$0xff]  ;;  %v1265_v27 = vld [vmem:[%s3131_s18 + $0x138] sm:$0xff] }
 0x1e7   : > { %vm1450_vm14 = vcmp.ge.f32.partialorder %v1386_v20, 0.0  ;;  %vm1451_vm15 = vcmp.ge.f32.partialorder %v1387_v34, 0.0  ;;  %v1514_v2 = vmul.f32 0.01, %v1386_v20  ;;  %v2141_v45 = vpack.c.bf16 %v1577_v41, %v1576_v62  ;;  %v1267_v41 = vld [vmem:[%s3131_s18 + $0x148] sm:$0xff] }
 0x1e8   : > { %v1515_v7 = vmul.f32 0.01, %v1387_v34  ;;  %v1388_v22 = vadd.f32 %v3129_v48, %v1320_v35  ;;  %v1389_v59 = vadd.f32 %v3129_v48, %v1321_v60  ;;  %v1390_v16 = vadd.f32 %v3129_v48, %v1322_v15 }
 0x1e9   : > { %v1578_v24 = vsel %vm1450_vm14, %v1386_v20, %v1514_v2  ;;  %v1391_v36 = vadd.f32 %v3129_v48, %v1323_v38  ;;  %v1324_v9 = vmul.f32 %v3127_v61, %v1256_v13  ;;  %2253 = vst [vmem:[%s2448_s19 + $0x58] sm:$0xff] %v2141_v45   ;;  %v1325_v53 = vmul.f32 %v3127_v61, %v1257_v39  ;;  %v1266_v20 = vld [vmem:[%s3131_s18 + $0x140] sm:$0xff] }
 0x1ea   : > { %v1579_v58 = vsel %vm1451_vm15, %v1387_v34, %v1515_v7  ;;  %vm1452_vm0 = vcmp.ge.f32.partialorder %v1388_v22, 0.0  ;;  %vm1453_vm1 = vcmp.ge.f32.partialorder %v1389_v59, 0.0  ;;  %v1516_v12 = vmul.f32 0.01, %v1388_v22 }
 0x1eb   : > { %v2146_v17 = vpack.c.bf16 %v1579_v58, %v1578_v24  ;;  %v1517_v46 = vmul.f32 0.01, %v1389_v59  ;;  %vm1454_vm2 = vcmp.ge.f32.partialorder %v1390_v16, 0.0  ;;  %vm1455_vm3 = vcmp.ge.f32.partialorder %v1391_v36, 0.0  ;;  %v1269_v58 = vld [vmem:[%s3131_s18 + $0x158] sm:$0xff] }
 0x1ec   : > { %v1580_v10 = vsel %vm1452_vm0, %v1388_v22, %v1516_v12  ;;  %v1518_v50 = vmul.f32 0.01, %v1390_v16  ;;  %v1519_v44 = vmul.f32 0.01, %v1391_v36  ;;  %v1392_v30 = vadd.f32 %v3129_v48, %v1324_v9  ;;  %v1268_v22 = vld [vmem:[%s3131_s18 + $0x150] sm:$0xff] }
 0x1ed   : > { %2254 = vst [vmem:[%s2448_s19 + $0x60] sm:$0xff] %v2146_v17   ;;  %v1581_v18 = vsel %vm1453_vm1, %v1389_v59, %v1517_v46  ;;  %v1326_v55 = vmul.f32 %v3127_v61, %v1258_v3  ;;  %v1327_v23 = vmul.f32 %v3127_v61, %v1259_v49  ;;  %v1393_v57 = vadd.f32 %v3129_v48, %v1325_v53 }
 0x1ee   : > { %v2151_v8 = vpack.c.bf16 %v1581_v18, %v1580_v10  ;;  %v1582_v11 = vsel %vm1454_vm2, %v1390_v16, %v1518_v50  ;;  %v1583_v63 = vsel %vm1455_vm3, %v1391_v36, %v1519_v44  ;;  %vm1456_vm4 = vcmp.ge.f32.partialorder %v1392_v30, 0.0  ;;  %v1270_v44 = vld [vmem:[%s3131_s18 + $0x160] sm:$0xff] }
 0x1ef   : > { %v2156_v4 = vpack.c.bf16 %v1583_v63, %v1582_v11  ;;  %v1520_v33 = vmul.f32 0.01, %v1392_v30  ;;  %v1394_v29 = vadd.f32 %v3129_v48, %v1326_v55  ;;  %vm1457_vm5 = vcmp.ge.f32.partialorder %v1393_v57, 0.0  ;;  %v1271_v55 = vld [vmem:[%s3131_s18 + $0x168] sm:$0xff] }
 0x1f0   : > { %2255 = vst [vmem:[%s2448_s19 + $0x68] sm:$0xff] %v2151_v8   ;;  %v1521_v5 = vmul.f32 0.01, %v1393_v57  ;;  %v1395_v43 = vadd.f32 %v3129_v48, %v1327_v23  ;;  %v1328_v47 = vmul.f32 %v3127_v61, %v1260_v37  ;;  %v1329_v6 = vmul.f32 %v3127_v61, %v1261_v19 }
 0x1f1   : > { %2256 = vst [vmem:[%s2448_s19 + $0x70] sm:$0xff] %v2156_v4   ;;  %v1584_v52 = vsel %vm1456_vm4, %v1392_v30, %v1520_v33  ;;  %vm1458_vm6 = vcmp.ge.f32.partialorder %v1394_v29, 0.0  ;;  %v1522_v25 = vmul.f32 0.01, %v1394_v29  ;;  %v1330_v31 = vmul.f32 %v3127_v61, %v1262_v40  ;;  %v1272_v4 = vld [vmem:[%s3131_s18 + $0x170] sm:$0xff]  ;;  %v1273_v33 = vld [vmem:[%s3131_s18 + $0x178] sm:$0xff] }
 0x1f2   : > { %v1585_v21 = vsel %vm1457_vm5, %v1393_v57, %v1521_v5  ;;  %vm1459_vm7 = vcmp.ge.f32.partialorder %v1395_v43, 0.0  ;;  %v1523_v14 = vmul.f32 0.01, %v1395_v43  ;;  %v1396_v56 = vadd.f32 %v3129_v48, %v1328_v47  ;;  %v1274_v47 = vld [vmem:[%s3131_s18 + $0x180] sm:$0xff] }
 0x1f3   : > { %v2161_v28 = vpack.c.bf16 %v1585_v21, %v1584_v52  ;;  %v1586_v54 = vsel %vm1458_vm6, %v1394_v29, %v1522_v25  ;;  %v1397_v26 = vadd.f32 %v3129_v48, %v1329_v6  ;;  %v1331_v51 = vmul.f32 %v3127_v61, %v1263_v32 }
 0x1f4   : > { %v1587_v0 = vsel %vm1459_vm7, %v1395_v43, %v1523_v14  ;;  %vm1460_vm8 = vcmp.ge.f32.partialorder %v1396_v56, 0.0  ;;  %v1524_v1 = vmul.f32 0.01, %v1396_v56  ;;  %v1398_v62 = vadd.f32 %v3129_v48, %v1330_v31  ;;  %v1276_v31 = vld [vmem:[%s3131_s18 + $0x190] sm:$0xff] }
 0x1f5   : > { %2257 = vst [vmem:[%s2448_s19 + $0x78] sm:$0xff] %v2161_v28   ;;  %v2166_v34 = vpack.c.bf16 %v1587_v0, %v1586_v54  ;;  %vm1461_vm9 = vcmp.ge.f32.partialorder %v1397_v26, 0.0  ;;  %v1525_v35 = vmul.f32 0.01, %v1397_v26  ;;  %v1399_v15 = vadd.f32 %v3129_v48, %v1331_v51 }
 0x1f6   : > { %v1588_v60 = vsel %vm1460_vm8, %v1396_v56, %v1524_v1  ;;  %v1332_v38 = vmul.f32 %v3127_v61, %v1264_v42  ;;  %v1333_v13 = vmul.f32 %v3127_v61, %v1265_v27  ;;  %vm1462_vm10 = vcmp.ge.f32.partialorder %v1398_v62, 0.0  ;;  %v1275_v56 = vld [vmem:[%s3131_s18 + $0x188] sm:$0xff] }
 0x1f7   : > { %2258 = vst [vmem:[%s2448_s19 + $0x80] sm:$0xff] %v2166_v34   ;;  %v1589_v2 = vsel %vm1461_vm9, %v1397_v26, %v1525_v35  ;;  %v1526_v45 = vmul.f32 0.01, %v1398_v62  ;;  %v1334_v7 = vmul.f32 %v3127_v61, %v1266_v20  ;;  %vm1463_vm11 = vcmp.ge.f32.partialorder %v1399_v15, 0.0  ;;  %v1277_v35 = vld [vmem:[%s3131_s18 + $0x198] sm:$0xff] }
 0x1f8   : > { %v2171_v59 = vpack.c.bf16 %v1589_v2, %v1588_v60  ;;  %v1527_v24 = vmul.f32 0.01, %v1399_v15  ;;  %v1400_v16 = vadd.f32 %v3129_v48, %v1332_v38  ;;  %v1401_v39 = vadd.f32 %v3129_v48, %v1333_v13  ;;  %v1278_v2 = vld [vmem:[%s3131_s18 + $0x1a0] sm:$0xff] }
 0x1f9   : > { %v1590_v36 = vsel %vm1462_vm10, %v1398_v62, %v1526_v45  ;;  %v1335_v9 = vmul.f32 %v3127_v61, %v1267_v41  ;;  %v1402_v3 = vadd.f32 %v3129_v48, %v1334_v7  ;;  %v1336_v17 = vmul.f32 %v3127_v61, %v1268_v22 }
 0x1fa   : > { %2259 = vst [vmem:[%s2448_s19 + $0x88] sm:$0xff] %v2171_v59   ;;  %v1591_v12 = vsel %vm1463_vm11, %v1399_v15, %v1527_v24  ;;  %vm1464_vm12 = vcmp.ge.f32.partialorder %v1400_v16, 0.0  ;;  %v1528_v49 = vmul.f32 0.01, %v1400_v16  ;;  %vm1465_vm13 = vcmp.ge.f32.partialorder %v1401_v39, 0.0  ;;  %v1279_v59 = vld [vmem:[%s3131_s18 + $0x1a8] sm:$0xff] }
 0x1fb   : > { %v2176_v46 = vpack.c.bf16 %v1591_v12, %v1590_v36  ;;  %v1529_v10 = vmul.f32 0.01, %v1401_v39  ;;  %v1403_v50 = vadd.f32 %v3129_v48, %v1335_v9  ;;  %vm1466_vm14 = vcmp.ge.f32.partialorder %v1402_v3, 0.0  ;;  %v1280_v12 = vld [vmem:[%s3131_s18 + $0x1b0] sm:$0xff] }
 0x1fc   : > { %v1592_v53 = vsel %vm1464_vm12, %v1400_v16, %v1528_v49  ;;  %v1530_v18 = vmul.f32 0.01, %v1402_v3  ;;  %v1337_v30 = vmul.f32 %v3127_v61, %v1269_v58  ;;  %v1404_v8 = vadd.f32 %v3129_v48, %v1336_v17  ;;  %v1281_v49 = vld [vmem:[%s3131_s18 + $0x1b8] sm:$0xff] }
 0x1fd   : > { %2260 = vst [vmem:[%s2448_s19 + $0x90] sm:$0xff] %v2176_v46   ;;  %v1593_v23 = vsel %vm1465_vm13, %v1401_v39, %v1529_v10  ;;  %vm1467_vm15 = vcmp.ge.f32.partialorder %v1403_v50, 0.0  ;;  %v1531_v37 = vmul.f32 0.01, %v1403_v50  ;;  %v1338_v19 = vmul.f32 %v3127_v61, %v1270_v44 }
 0x1fe   : > { %v2181_v11 = vpack.c.bf16 %v1593_v23, %v1592_v53  ;;  %v1594_v63 = vsel %vm1466_vm14, %v1402_v3, %v1530_v18  ;;  %v1405_v57 = vadd.f32 %v3129_v48, %v1337_v30  ;;  %vm1468_vm0 = vcmp.ge.f32.partialorder %v1404_v8, 0.0 }
 0x1ff   : > { %v1595_v29 = vsel %vm1467_vm15, %v1403_v50, %v1531_v37  ;;  %v1532_v5 = vmul.f32 0.01, %v1404_v8  ;;  %v1339_v43 = vmul.f32 %v3127_v61, %v1271_v55  ;;  %v1406_v25 = vadd.f32 %v3129_v48, %v1338_v19  ;;  %v1282_v50 = vld [vmem:[%s3131_s18 + $0x1c0] sm:$0xff]  ;;  %v1284_v19 = vld [vmem:[%s3131_s18 + $0x1d0] sm:$0xff] }
 0x200   : > { %2261 = vst [vmem:[%s2448_s19 + $0x98] sm:$0xff] %v2181_v11   ;;  %v2186_v40 = vpack.c.bf16 %v1595_v29, %v1594_v63  ;;  %vm1469_vm1 = vcmp.ge.f32.partialorder %v1405_v57, 0.0  ;;  %v1533_v52 = vmul.f32 0.01, %v1405_v57  ;;  %v1340_v21 = vmul.f32 %v3127_v61, %v1272_v4 }
 0x201   : > { %v1596_v6 = vsel %vm1468_vm0, %v1404_v8, %v1532_v5  ;;  %v1407_v32 = vadd.f32 %v3129_v48, %v1339_v43  ;;  %v1341_v14 = vmul.f32 %v3127_v61, %v1273_v33  ;;  %vm1470_vm2 = vcmp.ge.f32.partialorder %v1406_v25, 0.0  ;;  %v1283_v8 = vld [vmem:[%s3131_s18 + $0x1c8] sm:$0xff] }
 0x202   : > { %2262 = vst [vmem:[%s2448_s19 + $0xa0] sm:$0xff] %v2186_v40   ;;  %v1597_v28 = vsel %vm1469_vm1, %v1405_v57, %v1533_v52  ;;  %v1534_v54 = vmul.f32 0.01, %v1406_v25  ;;  %v1342_v26 = vmul.f32 %v3127_v61, %v1274_v47  ;;  %v1408_v0 = vadd.f32 %v3129_v48, %v1340_v21  ;;  %v1285_v52 = vld [vmem:[%s3131_s18 + $0x1d8] sm:$0xff] }
 0x203   : > { %v2191_v42 = vpack.c.bf16 %v1597_v28, %v1596_v6  ;;  %vm1471_vm3 = vcmp.ge.f32.partialorder %v1407_v32, 0.0  ;;  %v1535_v27 = vmul.f32 0.01, %v1407_v32  ;;  %v1409_v51 = vadd.f32 %v3129_v48, %v1341_v14  ;;  %v1286_v28 = vld [vmem:[%s3131_s18 + $0x1e0] sm:$0xff] }
 0x204   : > { %v1598_v1 = vsel %vm1470_vm2, %v1406_v25, %v1534_v54  ;;  %v1343_v20 = vmul.f32 %v3127_v61, %v1275_v56  ;;  %v1410_v34 = vadd.f32 %v3129_v48, %v1342_v26  ;;  %vm1472_vm4 = vcmp.ge.f32.partialorder %v1408_v0, 0.0 }
 0x205   : > { %2263 = vst [vmem:[%s2448_s19 + $0xa8] sm:$0xff] %v2191_v42   ;;  %v1599_v62 = vsel %vm1471_vm3, %v1407_v32, %v1535_v27  ;;  %v1536_v60 = vmul.f32 0.01, %v1408_v0  ;;  %v1344_v15 = vmul.f32 %v3127_v61, %v1276_v31  ;;  %vm1473_vm5 = vcmp.ge.f32.partialorder %v1409_v51, 0.0  ;;  %v1287_v42 = vld [vmem:[%s3131_s18 + $0x1e8] sm:$0xff] }
 0x206   : > { %v2196_v38 = vpack.c.bf16 %v1599_v62, %v1598_v1  ;;  %v1537_v13 = vmul.f32 0.01, %v1409_v51  ;;  %v1411_v41 = vadd.f32 %v3129_v48, %v1343_v20  ;;  %vm1474_vm6 = vcmp.ge.f32.partialorder %v1410_v34, 0.0  ;;  %v1288_v62 = vld [vmem:[%s3131_s18 + $0x1f0] sm:$0xff] }
 0x207   : > { %v1600_v45 = vsel %vm1472_vm4, %v1408_v0, %v1536_v60  ;;  %v1538_v7 = vmul.f32 0.01, %v1410_v34  ;;  %v1345_v22 = vmul.f32 %v3127_v61, %v1277_v35  ;;  %v1412_v36 = vadd.f32 %v3129_v48, %v1344_v15  ;;  %v1289_v60 = vld [vmem:[%s3131_s18 + $0x1f8] sm:$0xff] }
 0x208   : > { %2264 = vst [vmem:[%s2448_s19 + $0xb0] sm:$0xff] %v2196_v38   ;;  %v1601_v24 = vsel %vm1473_vm5, %v1409_v51, %v1537_v13  ;;  %vm1475_vm7 = vcmp.ge.f32.partialorder %v1411_v41, 0.0  ;;  %v1539_v16 = vmul.f32 0.01, %v1411_v41  ;;  %v1346_v58 = vmul.f32 %v3127_v61, %v1278_v2 }
 0x209   : > { %v2201_v39 = vpack.c.bf16 %v1601_v24, %v1600_v45  ;;  %v1602_v9 = vsel %vm1474_vm6, %v1410_v34, %v1538_v7  ;;  %v1413_v3 = vadd.f32 %v3129_v48, %v1345_v22  ;;  %vm1476_vm8 = vcmp.ge.f32.partialorder %v1412_v36, 0.0 }
 0x20a   : > { %v1603_v17 = vsel %vm1475_vm7, %v1411_v41, %v1539_v16  ;;  %v1540_v46 = vmul.f32 0.01, %v1412_v36  ;;  %v1347_v10 = vmul.f32 %v3127_v61, %v1279_v59  ;;  %v1414_v18 = vadd.f32 %v3129_v48, %v1346_v58 }
 0x20b   : > { %2265 = vst [vmem:[%s2448_s19 + $0xb8] sm:$0xff] %v2201_v39   ;;  %v2206_v44 = vpack.c.bf16 %v1603_v17, %v1602_v9  ;;  %vm1477_vm9 = vcmp.ge.f32.partialorder %v1413_v3, 0.0  ;;  %v1541_v53 = vmul.f32 0.01, %v1413_v3  ;;  %v1348_v23 = vmul.f32 %v3127_v61, %v1280_v12 }
 0x20c   : > { %v1604_v30 = vsel %vm1476_vm8, %v1412_v36, %v1540_v46  ;;  %v1415_v55 = vadd.f32 %v3129_v48, %v1347_v10  ;;  %v1349_v37 = vmul.f32 %v3127_v61, %v1281_v49  ;;  %vm1478_vm10 = vcmp.ge.f32.partialorder %v1414_v18, 0.0 }
 0x20d   : > { %2266 = vst [vmem:[%s2448_s19 + $0xc0] sm:$0xff] %v2206_v44   ;;  %v1605_v11 = vsel %vm1477_vm9, %v1413_v3, %v1541_v53  ;;  %v1542_v63 = vmul.f32 0.01, %v1414_v18  ;;  %v1350_v57 = vmul.f32 %v3127_v61, %v1282_v50  ;;  %v1416_v29 = vadd.f32 %v3129_v48, %v1348_v23 }
 0x20e   : > { %v2211_v4 = vpack.c.bf16 %v1605_v11, %v1604_v30  ;;  %vm1479_vm11 = vcmp.ge.f32.partialorder %v1415_v55, 0.0  ;;  %v1543_v33 = vmul.f32 0.01, %v1415_v55  ;;  %v1417_v43 = vadd.f32 %v3129_v48, %v1349_v37 }
 0x20f   : > { %v1606_v5 = vsel %vm1478_vm10, %v1414_v18, %v1542_v63  ;;  %v1351_v47 = vmul.f32 %v3127_v61, %v1283_v8  ;;  %v1418_v40 = vadd.f32 %v3129_v48, %v1350_v57  ;;  %vm1480_vm12 = vcmp.ge.f32.partialorder %v1416_v29, 0.0 }
 0x210   : > { %2267 = vst [vmem:[%s2448_s19 + $0xc8] sm:$0xff] %v2211_v4   ;;  %v1607_v25 = vsel %vm1479_vm11, %v1415_v55, %v1543_v33  ;;  %v1544_v6 = vmul.f32 0.01, %v1416_v29  ;;  %v1352_v32 = vmul.f32 %v3127_v61, %v1284_v19  ;;  %vm1481_vm13 = vcmp.ge.f32.partialorder %v1417_v43, 0.0 }
 0x211   : > { %v2216_v21 = vpack.c.bf16 %v1607_v25, %v1606_v5  ;;  %v1545_v14 = vmul.f32 0.01, %v1417_v43  ;;  %v1419_v56 = vadd.f32 %v3129_v48, %v1351_v47  ;;  %vm1482_vm14 = vcmp.ge.f32.partialorder %v1418_v40, 0.0 }
 0x212   : > { %v1608_v54 = vsel %vm1480_vm12, %v1416_v29, %v1544_v6  ;;  %v1546_v26 = vmul.f32 0.01, %v1418_v40  ;;  %v1353_v31 = vmul.f32 %v3127_v61, %v1285_v52  ;;  %v1420_v1 = vadd.f32 %v3129_v48, %v1352_v32 }
 0x213   : > { %2268 = vst [vmem:[%s2448_s19 + $0xd0] sm:$0xff] %v2216_v21   ;;  %v1609_v27 = vsel %vm1481_vm13, %v1417_v43, %v1545_v14  ;;  %vm1483_vm15 = vcmp.ge.f32.partialorder %v1419_v56, 0.0  ;;  %v1547_v0 = vmul.f32 0.01, %v1419_v56  ;;  %v1354_v35 = vmul.f32 %v3127_v61, %v1286_v28 }
 0x214   : > { %v2221_v51 = vpack.c.bf16 %v1609_v27, %v1608_v54  ;;  %v1610_v20 = vsel %vm1482_vm14, %v1418_v40, %v1546_v26  ;;  %v1421_v34 = vadd.f32 %v3129_v48, %v1353_v31  ;;  %vm1484_vm0 = vcmp.ge.f32.partialorder %v1420_v1, 0.0 }
 0x215   : > { %v1611_v15 = vsel %vm1483_vm15, %v1419_v56, %v1547_v0  ;;  %v1548_v38 = vmul.f32 0.01, %v1420_v1  ;;  %v1355_v13 = vmul.f32 %v3127_v61, %v1287_v42  ;;  %v1422_v45 = vadd.f32 %v3129_v48, %v1354_v35 }
 0x216   : > { %2269 = vst [vmem:[%s2448_s19 + $0xd8] sm:$0xff] %v2221_v51   ;;  %v2226_v41 = vpack.c.bf16 %v1611_v15, %v1610_v20  ;;  %vm1485_vm1 = vcmp.ge.f32.partialorder %v1421_v34, 0.0  ;;  %v1549_v2 = vmul.f32 0.01, %v1421_v34  ;;  %v1356_v59 = vmul.f32 %v3127_v61, %v1288_v62 }
 0x217   : > { %v1612_v7 = vsel %vm1484_vm0, %v1420_v1, %v1548_v38  ;;  %v1423_v22 = vadd.f32 %v3129_v48, %v1355_v13  ;;  %v1357_v24 = vmul.f32 %v3127_v61, %v1289_v60  ;;  %vm1486_vm2 = vcmp.ge.f32.partialorder %v1422_v45, 0.0 }
 0x218   : > { %2270 = vst [vmem:[%s2448_s19 + $0xe0] sm:$0xff] %v2226_v41   ;;  %v1613_v16 = vsel %vm1485_vm1, %v1421_v34, %v1549_v2  ;;  %v1550_v36 = vmul.f32 0.01, %v1422_v45  ;;  %v1424_v3 = vadd.f32 %v3129_v48, %v1356_v59 }
 0x219   : > { %v2231_v39 = vpack.c.bf16 %v1613_v16, %v1612_v7  ;;  %vm1487_vm3 = vcmp.ge.f32.partialorder %v1423_v22, 0.0  ;;  %v1551_v9 = vmul.f32 0.01, %v1423_v22  ;;  %v1425_v12 = vadd.f32 %v3129_v48, %v1357_v24 }
 0x21a   : > { %v1614_v58 = vsel %vm1486_vm2, %v1422_v45, %v1550_v36  ;;  %vm1488_vm4 = vcmp.ge.f32.partialorder %v1424_v3, 0.0  ;;  %v1552_v17 = vmul.f32 0.01, %v1424_v3 }
 0x21b   : > { %2271 = vst [vmem:[%s2448_s19 + $0xe8] sm:$0xff] %v2231_v39   ;;  %v1615_v49 = vsel %vm1487_vm3, %v1423_v22, %v1551_v9  ;;  %vm1489_vm5 = vcmp.ge.f32.partialorder %v1425_v12, 0.0  ;;  %v1553_v61 = vmul.f32 0.01, %v1425_v12 }
 0x21c   : > { %v2236_v46 = vpack.c.bf16 %v1615_v49, %v1614_v58  ;;  %v1616_v10 = vsel %vm1488_vm4, %v1424_v3, %v1552_v17 }
 0x21d   : > { %v1617_v50 = vsel %vm1489_vm5, %v1425_v12, %v1553_v61 }
 0x21e   : > { %2272 = vst [vmem:[%s2448_s19 + $0xf0] sm:$0xff] %v2236_v46   ;;  %v2241_v44 = vpack.c.bf16 %v1617_v50, %v1616_v10 }
 0x220   : > { %2273 = vst [vmem:[%s2448_s19 + $0xf8] sm:$0xff] %v2241_v44  }
 0x221 PF: > { %s17_s25 = sadd.s32 1, %s2362_s25   ;;  %s3380_s21 = smov %s2354_s23 }
 0x222   : > { %p14_p11 = scmp.ge.s32.totalorder %s17_s25, 10   ;;  %s3381_s22 = smov %s2358_s24 }
 0x223   : > { %s3382_s23 = smov %s3385_s26  ;;  %s3383_s24 = smov %s3389_s27 }
 0x224   :  { %16 = sbr.rel (!%p14_p11) target bundleno = 3 (0x3), region = 100 }

// kernel: skip_encoder_forward.3
= control target key start
LH: loop header
LB: loop body
LE: loop exit
PB: predicated region body
PF: predicated region fallthrough
CT: control target
= control target key end

     0   :  { %s3443_s18 = smov 0   ;;  %s3445_s19 = smov 0   ;;  %s4644_s0 = inlined_call_operand.vmem [shape: bf16[512,288], index: 0, kind: input, shape index: {}]   ;;  %s4645_s1 = inlined_call_operand.vmem [shape: bf16[288,128], index: 1, kind: input, shape index: {}]   ;;  %s4646_s2 = inlined_call_operand.vmem [shape: f32[1,128], index: 2, kind: input, shape index: {}]   ;;  %s4647_s3 = inlined_call_operand.vmem [shape: f32[1,128], index: 3, kind: input, shape index: {}]   ;;  %s4648_s4 = inlined_call_operand.vmem [shape: f32[1,128], index: 4, kind: input, shape index: {}]   ;;  %s4649_s5 = inlined_call_operand.vmem [shape: bf16[512,128], index: 5, kind: output, shape index: {}]  }
   0x1   :  { %s3447_s20 = smov 0  }
   0x2 LB: > { %s27_s21 = sadd.s32 1, %s3406_s19  ;;  %p2539_p0 = scmp.ge.s32.totalorder %s3410_s20, 1  ;;  %s3410_s20 = sphi %s3447_s20, %s15_s20   ;;  %s3406_s19 = sphi %s3445_s19, %s4651_s19   ;;  %s3402_s18 = sphi %s3443_s18, %s4650_s18  }
   0x3   : > { %p29_p1 = scmp.ge.s32.totalorder %s27_s21, 2  ;;  %p211_p2 = scmp.lt.s32.totalorder %s3410_s20, 3 }
   0x5   : > { %s4653_s21 = smov (%p29_p1, %s27_s21), 0  ;;  %p212_p3 = pnand %p2539_p0, %p211_p2 }
   0x6   : > { %p2540_p4 = scmp.ne.s32.totalorder (!%p212_p3), %s3402_s18, 0 }
   0x7   : > { %215 = sbr.rel (%p212_p3) target bundleno = 750 (0x2ee), region = 40 }
   0xc   : > { %266 = sbr.rel (%p2540_p4) target bundleno = 611 (0x263), region = 44 }
  0x11   : > { %v3137_v0 = vld [vmem:[%s4645_s1 + $0x38] sm:$0xff]  ;;  %v3473_v2 = vld [vmem:[%s4645_s1 + $0x88] sm:$0xff]  ;;  %v3136_v3 = vld [vmem:[%s4645_s1 + $0x30] sm:$0xff]  ;;  %vm1029_vm0 = vcmask 261120  }
  0x12   : > { %v3145_v1 = vld [vmem:[%s4645_s1 + $0x78] sm:$0xff]  ;;  %1126 = vmatpush.bf16.msra.mxu0 %v3137_v0  ;;  %3339 = vmatpush.bf16.msra.mxu3 %v3137_v0  ;;  %v3144_v4 = vld [vmem:[%s4645_s1 + $0x70] sm:$0xff]  ;;  %v3485_v5 = vld [vmem:[%s4645_s1 + $0x80] sm:$0xff] }
  0x13   : > { %1295 = vmatpush.bf16.msra.mxu1 %v3145_v1  ;;  %1470 = vmatpush.bf16.msra.mxu2 %v3473_v2  ;;  %v2551_v6 = vld [vmem:[%s4644_s0 + $0x8] sm:$0xf]  ;;  %v3036_v7 = vld [vmem:[%s4644_s0 + $0x10] sm:$0xf0]  ;;  %v3134_v11 = vld [vmem:[%s4645_s1 + $0x20] sm:$0xff] }
  0x14   : > { %v2552_v8 = vor.u32 %v3036_v7, %v2551_v6  ;;  %v3135_v9 = vld [vmem:[%s4645_s1 + $0x28] sm:$0xff]  ;;  %v3142_v12 = vld [vmem:[%s4645_s1 + $0x60] sm:$0xff]  ;;  %v3133_v13 = vld [vmem:[%s4645_s1 + $0x18] sm:$0xff] }
  0x15   : > { %v3143_v10 = vld [vmem:[%s4645_s1 + $0x68] sm:$0xff]  ;;  %v3141_v14 = vld [vmem:[%s4645_s1 + $0x58] sm:$0xff]  ;;  %v3132_v15 = vld [vmem:[%s4645_s1 + $0x10] sm:$0xff] }
  0x16   : > { %1127 = vmatpush.bf16.msra.mxu0 %v3136_v3  ;;  %3340 = vmatpush.bf16.msra.mxu3 %v3136_v3  ;;  %v3140_v16 = vld [vmem:[%s4645_s1 + $0x50] sm:$0xff]  ;;  %v2563_v17 = vld [vmem:[%s4644_s0 + $0x20] sm:$0xf]  ;;  %v3039_v18 = vld [vmem:[%s4644_s0 + $0x28] sm:$0xf0] }
  0x17   : > { %1296 = vmatpush.bf16.msra.mxu1 %v3144_v4  ;;  %1471 = vmatpush.bf16.msra.mxu2 %v3485_v5  ;;  %v2564_v19 = vor.u32 %v3039_v18, %v2563_v17  ;;  %v3131_v20 = vld [vmem:[%s4645_s1 + $0x8] sm:$0xff]  ;;  %v3130_v22 = vld [vmem:[%s4645_s1] sm:$0xff]  ;;  %v2545_v29 = vld [vmem:[%s4644_s0 + $0xc] sm:$0xf0] }
  0x18   : > { %v3139_v21 = vld [vmem:[%s4645_s1 + $0x48] sm:$0xff]  ;;  %v3138_v23 = vld [vmem:[%s4645_s1 + $0x40] sm:$0xff]  ;;  %v2575_v33 = vld [vmem:[%s4644_s0 + $0x38] sm:$0xf] }
  0x19   : > { %v2543_v24 = vld [vmem:[%s4644_s0] sm:$0xf]  ;;  %v3035_v25 = vld [vmem:[%s4644_s0 + $0x8] sm:$0xf0]  ;;  %v3034_v28 = vld [vmem:[%s4644_s0 + $0x4] sm:$0xf] }
  0x1a   : > { %2997 = vmatmul.msk.bf16.vlgmr.msra.gmra.mxu2 %vm1029_vm0, %v2552_v8  ;;  %1128 = vmatpush.bf16.msra.mxu0 %v3135_v9  ;;  %v2831_v26 = vld [vmem:[%s4644_s0 + $0x240] sm:$0xf]  ;;  %v3107_v27 = vld [vmem:[%s4644_s0 + $0x248] sm:$0xf0]  ;;  %v2544_v30 = vor.u32 %v3035_v25, %v2543_v24  ;;  %v2548_v32 = vor.u32 %v3034_v28, %v2545_v29  ;;  %v3042_v34 = vld [vmem:[%s4644_s0 + $0x40] sm:$0xf0] }
  0x1b   : > { %3341 = vmatpush.bf16.msra.mxu3 %v3135_v9  ;;  %1297 = vmatpush.bf16.msra.mxu1 %v3143_v10  ;;  %v2832_v31 = vor.u32 %v3107_v27, %v2831_v26  ;;  %v2576_v35 = vor.u32 %v3042_v34, %v2575_v33  ;;  %v2555_v36 = vld [vmem:[%s4644_s0 + $0x18] sm:$0xf]  ;;  %v3038_v37 = vld [vmem:[%s4644_s0 + $0x20] sm:$0xf0]  ;;  %v3037_v40 = vld [vmem:[%s4644_s0 + $0x1c] sm:$0xf] }
  0x1c   : > { %v2843_v38 = vld [vmem:[%s4644_s0 + $0x258] sm:$0xf]  ;;  %v3110_v39 = vld [vmem:[%s4644_s0 + $0x260] sm:$0xf0]  ;;  %v2557_v41 = vld [vmem:[%s4644_s0 + $0x24] sm:$0xf0]  ;;  %v2556_v42 = vor.u32 %v3038_v37, %v2555_v36 }
  0x1d   : > { %v2844_v43 = vor.u32 %v3110_v39, %v2843_v38  ;;  %v2560_v44 = vor.u32 %v3037_v40, %v2557_v41  ;;  %v2587_v45 = vld [vmem:[%s4644_s0 + $0x50] sm:$0xf]  ;;  %v3045_v46 = vld [vmem:[%s4644_s0 + $0x58] sm:$0xf0]  ;;  %v3040_v52 = vld [vmem:[%s4644_s0 + $0x34] sm:$0xf] }
  0x1e   : > { %1129 = vmatpush.bf16.msra.mxu0 %v3134_v11  ;;  %v2588_v47 = vor.u32 %v3045_v46, %v2587_v45  ;;  %v2567_v48 = vld [vmem:[%s4644_s0 + $0x30] sm:$0xf]  ;;  %v3041_v49 = vld [vmem:[%s4644_s0 + $0x38] sm:$0xf0]  ;;  %v2569_v53 = vld [vmem:[%s4644_s0 + $0x3c] sm:$0xf0] }
  0x1f   : > { %3342 = vmatpush.bf16.msra.mxu3 %v3134_v11  ;;  %1298 = vmatpush.bf16.msra.mxu1 %v3142_v12  ;;  %v2855_v50 = vld [vmem:[%s4644_s0 + $0x270] sm:$0xf]  ;;  %v3113_v51 = vld [vmem:[%s4644_s0 + $0x278] sm:$0xf0]  ;;  %v2568_v54 = vor.u32 %v3041_v49, %v2567_v48  ;;  %v2572_v56 = vor.u32 %v3040_v52, %v2569_v53  ;;  %v2599_v57 = vld [vmem:[%s4644_s0 + $0x68] sm:$0xf] }
  0x20   : > { %v2856_v55 = vor.u32 %v3113_v51, %v2855_v50  ;;  %v3048_v58 = vld [vmem:[%s4644_s0 + $0x70] sm:$0xf0]  ;;  %v2579_v60 = vld [vmem:[%s4644_s0 + $0x48] sm:$0xf]  ;;  %v3043_v0 = vld [vmem:[%s4644_s0 + $0x4c] sm:$0xf] }
  0x21   : > { %v2600_v59 = vor.u32 %v3048_v58, %v2599_v57  ;;  %v3044_v61 = vld [vmem:[%s4644_s0 + $0x50] sm:$0xf0]  ;;  %v2867_v62 = vld [vmem:[%s4644_s0 + $0x288] sm:$0xf]  ;;  %v3051_v6 = vld [vmem:[%s4644_s0 + $0x88] sm:$0xf0] }
  0x22   : > { %1130 = vmatpush.bf16.msra.mxu0 %v3133_v13  ;;  %v3116_v63 = vld [vmem:[%s4644_s0 + $0x290] sm:$0xf0]  ;;  %v2591_v8 = vld [vmem:[%s4644_s0 + $0x60] sm:$0xf]  ;;  %v3047_v9 = vld [vmem:[%s4644_s0 + $0x68] sm:$0xf0] }
  0x23   : > { %3343 = vmatpush.bf16.msra.mxu3 %v3133_v13  ;;  %1299 = vmatpush.bf16.msra.mxu1 %v3141_v14  ;;  %v2868_v3 = vor.u32 %v3116_v63, %v2867_v62  ;;  %v3119_v11 = vld [vmem:[%s4644_s0 + $0x2a8] sm:$0xf0]  ;;  %v2593_v13 = vld [vmem:[%s4644_s0 + $0x6c] sm:$0xf0]  ;;  %v2623_v17 = vld [vmem:[%s4644_s0 + $0x98] sm:$0xf] }
  0x24   : > { %v3054_v18 = vld [vmem:[%s4644_s0 + $0xa0] sm:$0xf0]  ;;  %v3049_v24 = vld [vmem:[%s4644_s0 + $0x7c] sm:$0xf]  ;;  %v2605_v25 = vld [vmem:[%s4644_s0 + $0x84] sm:$0xf0] }
  0x25   : > { %v2608_v28 = vor.u32 %v3049_v24, %v2605_v25  ;;  %v2635_v29 = vld [vmem:[%s4644_s0 + $0xb0] sm:$0xf]  ;;  %v3053_v33 = vld [vmem:[%s4644_s0 + $0x98] sm:$0xf0]  ;;  %v3052_v36 = vld [vmem:[%s4644_s0 + $0x94] sm:$0xf] }
  0x26   : > { %1131 = vmatpush.bf16.msra.mxu0 %v3132_v15  ;;  %v2903_v34 = vld [vmem:[%s4644_s0 + $0x2d0] sm:$0xf]  ;;  %v2617_v37 = vld [vmem:[%s4644_s0 + $0x9c] sm:$0xf0]  ;;  %v2647_v41 = vld [vmem:[%s4644_s0 + $0xc8] sm:$0xf] }
  0x27   : > { %3344 = vmatpush.bf16.msra.mxu3 %v3132_v15  ;;  %1300 = vmatpush.bf16.msra.mxu1 %v3140_v16  ;;  %v2620_v40 = vor.u32 %v3052_v36, %v2617_v37  ;;  %v3056_v45 = vld [vmem:[%s4644_s0 + $0xb0] sm:$0xf0]  ;;  %v2915_v46 = vld [vmem:[%s4644_s0 + $0x2e8] sm:$0xf]  ;;  %v3055_v48 = vld [vmem:[%s4644_s0 + $0xac] sm:$0xf] }
  0x28   : > { %v2629_v49 = vld [vmem:[%s4644_s0 + $0xb4] sm:$0xf0]  ;;  %v3742_v58 = vld [vmem:[%s4646_s2] ss:$0 sm:$0xff]  ;;  %v2641_v62 = vld [vmem:[%s4644_s0 + $0xcc] sm:$0xf0] }
  0x29   : > { %v2632_v53 = vor.u32 %v3055_v48, %v2629_v49  ;;  %v3106_v63 = vld [vmem:[%s4644_s0 + $0x244] sm:$0xf]  ;;  %v3109_v24 = vld [vmem:[%s4644_s0 + $0x25c] sm:$0xf]  ;;  %v2845_v25 = vld [vmem:[%s4644_s0 + $0x264] sm:$0xf0] }
  0x2a   : > { %2998 = vmatmul.msk.bf16.gmra.mxu2 %vm1029_vm0, %v2564_v19  ;;  %1132 = vmatpush.bf16.msra.mxu0 %v3131_v20  ;;  %v2624_v19 = vor.u32 %v3054_v18, %v2623_v17 }
  0x2b   : > { %3345 = vmatpush.bf16.msra.mxu3 %v3131_v20  ;;  %1301 = vmatpush.bf16.msra.mxu1 %v3139_v21  ;;  %v2603_v20 = vld [vmem:[%s4644_s0 + $0x78] sm:$0xf] }
  0x2e   : > { %1133 = vmatpush.bf16.msra.mxu0 %v3130_v22 }
  0x2f   : > { %3346 = vmatpush.bf16.msra.mxu3 %v3130_v22  ;;  %1302 = vmatpush.bf16.msra.mxu1 %v3138_v23  ;;  %v2891_v22 = vld [vmem:[%s4644_s0 + $0x2b8] sm:$0xf] }
  0x31   : > { %1134 = vmatmul.bf16.vlgmr.msra.gmra.mxu0 %v2544_v30  ;;  %v3057_v30 = vld [vmem:[%s4644_s0 + $0xb8] sm:$0xf0] }
  0x32   : > { %1254 = vmatmul.bf16.vlgmr.msra.gmra.mxu3 %v2832_v31  ;;  %1303 = vmatmul.bf16.vlgmr.msra.gmra.mxu1 %v2548_v32  ;;  %v2636_v31 = vor.u32 %v3057_v30, %v2635_v29  ;;  %v2615_v32 = vld [vmem:[%s4644_s0 + $0x90] sm:$0xf] }
  0x33   : > { %3347 = vmatpush.bf16.msrb.mxu3 %v3145_v1  ;;  %v2581_v1 = vld [vmem:[%s4644_s0 + $0x54] sm:$0xf0]  ;;  %v2616_v38 = vor.u32 %v3053_v33, %v2615_v32 }
  0x37   : > { %3348 = vmatpush.bf16.msrb.mxu3 %v3144_v4  ;;  %v2584_v4 = vor.u32 %v3043_v0, %v2581_v1  ;;  %v2833_v0 = vld [vmem:[%s4644_s0 + $0x24c] sm:$0xf0] }
  0x3a   : > { %2999 = vmatmul.msk.bf16.gmra.mxu2 %vm1029_vm0, %v2576_v35  ;;  %v3125_v35 = vld [vmem:[%s4644_s0 + $0x2d8] sm:$0xf0] }
  0x3b   : > { %3349 = vmatpush.bf16.msrb.mxu3 %v3143_v10  ;;  %v2879_v10 = vld [vmem:[%s4644_s0 + $0x2a0] sm:$0xf]  ;;  %v2904_v39 = vor.u32 %v3125_v35, %v2903_v34  ;;  %v2848_v34 = vor.u32 %v3109_v24, %v2845_v25  ;;  %v3067_v24 = vld [vmem:[%s4644_s0 + $0x10c] sm:$0xf] }
  0x3c   : > { %v2880_v15 = vor.u32 %v3119_v11, %v2879_v10  ;;  %v2671_v10 = vld [vmem:[%s4644_s0 + $0xf8] sm:$0xf]  ;;  %v3066_v11 = vld [vmem:[%s4644_s0 + $0x100] sm:$0xf0] }
  0x3f   : > { %3350 = vmatpush.bf16.msrb.mxu3 %v3142_v12  ;;  %v3046_v12 = vld [vmem:[%s4644_s0 + $0x64] sm:$0xf] }
  0x41   : > { %1139 = vmatmul.bf16.gmra.mxu0 %v2556_v42  ;;  %v3060_v42 = vld [vmem:[%s4644_s0 + $0xd0] sm:$0xf0] }
  0x42   : > { %1259 = vmatmul.bf16.gmra.mxu3 %v2844_v43  ;;  %1308 = vmatmul.bf16.gmra.mxu1 %v2560_v44  ;;  %v2648_v43 = vor.u32 %v3060_v42, %v2647_v41  ;;  %v2627_v44 = vld [vmem:[%s4644_s0 + $0xa8] sm:$0xf]  ;;  %v3069_v41 = vld [vmem:[%s4644_s0 + $0x118] sm:$0xf0] }
  0x43   : > { %3351 = vmatpush.bf16.msrb.mxu3 %v3141_v14  ;;  %v2592_v14 = vor.u32 %v3047_v9, %v2591_v8  ;;  %v2628_v51 = vor.u32 %v3056_v45, %v2627_v44 }
  0x47   : > { %3352 = vmatpush.bf16.msrb.mxu3 %v3140_v16  ;;  %v2596_v16 = vor.u32 %v3046_v12, %v2593_v13 }
  0x4a   : > { %3000 = vmatmul.msk.bf16.gmra.mxu2 %vm1029_vm0, %v2588_v47  ;;  %v3128_v47 = vld [vmem:[%s4644_s0 + $0x2f0] sm:$0xf0] }
  0x4b   : > { %3353 = vmatpush.bf16.msrb.mxu3 %v3139_v21  ;;  %v3050_v21 = vld [vmem:[%s4644_s0 + $0x80] sm:$0xf0]  ;;  %v2916_v52 = vor.u32 %v3128_v47, %v2915_v46 }
  0x4c   : > { %v2604_v26 = vor.u32 %v3050_v21, %v2603_v20  ;;  %v3062_v20 = vld [vmem:[%s4644_s0 + $0xe0] sm:$0xf0]  ;;  %v3061_v21 = vld [vmem:[%s4644_s0 + $0xdc] sm:$0xf] }
  0x4f   : > { %3354 = vmatpush.bf16.msrb.mxu3 %v3138_v23  ;;  %v3122_v23 = vld [vmem:[%s4644_s0 + $0x2c0] sm:$0xf0] }
  0x50   : > { %v2892_v27 = vor.u32 %v3122_v23, %v2891_v22  ;;  %v2653_v23 = vld [vmem:[%s4644_s0 + $0xe4] sm:$0xf0] }
  0x51   : > { %1144 = vmatmul.bf16.gmra.mxu0 %v2568_v54  ;;  %v2659_v54 = vld [vmem:[%s4644_s0 + $0xe0] sm:$0xf]  ;;  %v2656_v33 = vor.u32 %v3061_v21, %v2653_v23  ;;  %v3068_v23 = vld [vmem:[%s4644_s0 + $0x110] sm:$0xf0] }
  0x52   : > { %1264 = vmatmul.bf16.gmra.mxu3 %v2856_v55  ;;  %1313 = vmatmul.bf16.gmra.mxu1 %v2572_v56  ;;  %v3063_v55 = vld [vmem:[%s4644_s0 + $0xe8] sm:$0xf0] }
  0x53   : > { %3355 = vmatpush.bf16.msra.mxu3 %v3473_v2  ;;  %v2580_v2 = vor.u32 %v3044_v61, %v2579_v60  ;;  %v2660_v57 = vor.u32 %v3063_v55, %v2659_v54  ;;  %v3059_v60 = vld [vmem:[%s4644_s0 + $0xc8] sm:$0xf0]  ;;  %v3058_v61 = vld [vmem:[%s4644_s0 + $0xc4] sm:$0xf]  ;;  %v3064_v54 = vld [vmem:[%s4644_s0 + $0xf4] sm:$0xf] }
  0x57   : > { %3356 = vmatpush.bf16.msra.mxu3 %v3485_v5  ;;  %v2611_v5 = vld [vmem:[%s4644_s0 + $0x80] sm:$0xf] }
  0x58   : > { %v2612_v7 = vor.u32 %v3051_v6, %v2611_v5  ;;  %v2836_v5 = vor.u32 %v3106_v63, %v2833_v0 }
  0x5a   : > { %3001 = vmatmul.msk.bf16.gmra.mxu2 %vm1029_vm0, %v2600_v59  ;;  %v2639_v59 = vld [vmem:[%s4644_s0 + $0xc0] sm:$0xf] }
  0x61   : > { %1149 = vmatmul.bf16.gmra.mxu0 %v2580_v2  ;;  %v2640_v2 = vor.u32 %v3059_v60, %v2639_v59  ;;  %v2857_v59 = vld [vmem:[%s4644_s0 + $0x27c] sm:$0xf0] }
  0x62   : > { %1269 = vmatmul.bf16.gmra.mxu3 %v2868_v3  ;;  %1318 = vmatmul.bf16.gmra.mxu1 %v2584_v4  ;;  %v2644_v4 = vor.u32 %v3058_v61, %v2641_v62 }
  0x6a   : > { %3002 = vmatmul.msk.bf16.gmra.mxu2 %vm1029_vm0, %v2612_v7 }
  0x71   : > { %1154 = vmatmul.bf16.gmra.mxu0 %v2592_v14 }
  0x72   : > { %1274 = vmatmul.bf16.gmra.mxu3 %v2880_v15  ;;  %1323 = vmatmul.bf16.gmra.mxu1 %v2596_v16  ;;  %v2672_v15 = vor.u32 %v3066_v11, %v2671_v10  ;;  %v3072_v10 = vld [vmem:[%s4644_s0 + $0x130] sm:$0xf0] }
  0x7a   : > { %3003 = vmatmul.msk.bf16.gmra.mxu2 %vm1029_vm0, %v2624_v19  ;;  %v2651_v19 = vld [vmem:[%s4644_s0 + $0xd8] sm:$0xf] }
  0x81   : > { %1159 = vmatmul.bf16.gmra.mxu0 %v2604_v26 }
  0x82   : > { %1279 = vmatmul.bf16.gmra.mxu3 %v2892_v27  ;;  %1328 = vmatmul.bf16.gmra.mxu1 %v2608_v28 }
  0x8a   : > { %3004 = vmatmul.msk.bf16.gmra.mxu2 %vm1029_vm0, %v2636_v31  ;;  %v2652_v31 = vor.u32 %v3062_v20, %v2651_v19 }
  0x91   : > { %1164 = vmatmul.bf16.gmra.mxu0 %v2616_v38 }
  0x92   : > { %1284 = vmatmul.bf16.gmra.mxu3 %v2904_v39  ;;  %1333 = vmatmul.bf16.gmra.mxu1 %v2620_v40  ;;  %v2683_v40 = vld [vmem:[%s4644_s0 + $0x110] sm:$0xf] }
  0x93   : > { %v2684_v47 = vor.u32 %v3069_v41, %v2683_v40 }
  0x9a   : > { %3005 = vmatmul.msk.bf16.gmra.mxu2 %vm1029_vm0, %v2648_v43 }
  0x9d   : > { %v1473_v50 = vpop.f32.mrf.mxu2 }
  0xa1   : > { %1169 = vmatmul.bf16.gmra.mxu0 %v2628_v51 }
  0xa2   : > { %1289 = vmatmul.bf16.gmra.mxu3 %v2916_v52  ;;  %1338 = vmatmul.bf16.gmra.mxu1 %v2632_v53  ;;  %v2663_v52 = vld [vmem:[%s4644_s0 + $0xf0] sm:$0xf]  ;;  %v3065_v53 = vld [vmem:[%s4644_s0 + $0xf8] sm:$0xf0] }
  0xa3   : > { %v2664_v0 = vor.u32 %v3065_v53, %v2663_v52 }
  0xa5   : > { %v1475_v56 = vpop.f32.mrf.mxu2 }
  0xaa   : > { %3006 = vmatmul.msk.bf16.gmra.mxu2 %vm1029_vm0, %v2660_v57  ;;  %v3112_v57 = vld [vmem:[%s4644_s0 + $0x274] sm:$0xf] }
  0xad   : > { %v1478_v1 = vpop.f32.mrf.mxu2 }
  0xae   : > { %v1135_v3 = vpop.f32.mrf.mxu0 }
  0xaf   : > { %v1136_v6 = vadd.f32 %v3742_v58, %v1135_v3  ;;  %v1304_v7 = vpop.f32.mrf.mxu1  ;;  %v2860_v3 = vor.u32 %v3112_v57, %v2857_v59  ;;  %v3071_v57 = vld [vmem:[%s4644_s0 + $0x128] sm:$0xf0]  ;;  %v3070_v59 = vld [vmem:[%s4644_s0 + $0x124] sm:$0xf] }
  0xb1   : > { %v1305_v8 = vadd.f32 %v1304_v7, %v1136_v6  ;;  %1174 = vmatmul.bf16.gmra.mxu0 %v2640_v2 }
  0xb2   : > { %1343 = vmatmul.bf16.gmra.mxu1 %v2644_v4  ;;  %1423 = vmatmul.bf16.vlgmr.msrb.gmra.mxu3 %v2836_v5 }
  0xb3   : > { %v1474_v9 = vadd.f32 %v1473_v50, %v1305_v8 }
  0xb5   : > { %1635 = vst [vmem:[#allocation2 + $0xb0] sm:$0xff] %v1474_v9  ;;  %v3770_v12 = vpop.f32.mrf.mxu3  ;;  %v1480_v13 = vpop.f32.mrf.mxu2  ;;  %v1772_v26 = vmul.f32 %v1474_v9, %v1474_v9 }
  0xb6   : > { %v1137_v14 = vpop.f32.mrf.mxu0 }
  0xb7   : > { %v1138_v16 = vadd.f32 %v3742_v58, %v1137_v14  ;;  %v1306_v17 = vpop.f32.mrf.mxu1 }
  0xb9   : > { %v1307_v18 = vadd.f32 %v1306_v17, %v1138_v16 }
  0xba   : > { %3007 = vmatmul.msk.bf16.gmra.mxu2 %vm1029_vm0, %v2672_v15 }
  0xbb   : > { %v1476_v22 = vadd.f32 %v1475_v56, %v1307_v18  ;;  %v2665_v56 = vld [vmem:[%s4644_s0 + $0xfc] sm:$0xf0] }
  0xbc   : > { %v2668_v2 = vor.u32 %v3064_v54, %v2665_v56  ;;  %v2687_v56 = vld [vmem:[%s4644_s0 + $0x120] sm:$0xf] }
  0xbd   : > { %1636 = vst [vmem:[#allocation2 + $0x1b0] sm:$0xff] %v1476_v22  ;;  %v1700_v27 = vadd.f32 %v1476_v22, %v1474_v9  ;;  %v1773_v28 = vmul.f32 %v1476_v22, %v1476_v22  ;;  %v3792_v29 = vpop.f32.mrf.mxu3  ;;  %v1483_v30 = vpop.f32.mrf.mxu2  ;;  %v2695_v9 = vld [vmem:[%s4644_s0 + $0x128] sm:$0xf] }
  0xbe   : > { %v1140_v32 = vpop.f32.mrf.mxu0  ;;  %v2696_v17 = vor.u32 %v3072_v10, %v2695_v9  ;;  %v2675_v22 = vld [vmem:[%s4644_s0 + $0x108] sm:$0xf] }
  0xbf   : > { %v1836_v35 = vadd.f32 %v1773_v28, %v1772_v26  ;;  %v1141_v36 = vadd.f32 %v3742_v58, %v1140_v32  ;;  %v1309_v37 = vpop.f32.mrf.mxu1  ;;  %v2677_v26 = vld [vmem:[%s4644_s0 + $0x114] sm:$0xf0] }
  0xc0   : > { %v2869_v28 = vld [vmem:[%s4644_s0 + $0x294] sm:$0xf0] }
  0xc1   : > { %v1310_v38 = vadd.f32 %v1309_v37, %v1141_v36  ;;  %1179 = vmatmul.bf16.gmra.mxu0 %v2652_v31  ;;  %v2680_v36 = vor.u32 %v3067_v24, %v2677_v26 }
  0xc2   : > { %1348 = vmatmul.bf16.gmra.mxu1 %v2656_v33  ;;  %1428 = vmatmul.bf16.gmra.mxu3 %v2848_v34  ;;  %v2676_v34 = vor.u32 %v3068_v23, %v2675_v22 }
  0xc3   : > { %v1479_v39 = vadd.f32 %v1478_v1, %v1310_v38 }
  0xc5   : > { %1637 = vst [vmem:[#allocation2 + $0xd8] sm:$0xff] %v1479_v39  ;;  %v1701_v42 = vadd.f32 %v1700_v27, %v1479_v39  ;;  %v1774_v43 = vmul.f32 %v1479_v39, %v1479_v39  ;;  %v3801_v44 = vpop.f32.mrf.mxu3  ;;  %v1485_v45 = vpop.f32.mrf.mxu2  ;;  %v3115_v27 = vld [vmem:[%s4644_s0 + $0x28c] sm:$0xf] }
  0xc6   : > { %v1142_v46 = vpop.f32.mrf.mxu0  ;;  %v2872_v37 = vor.u32 %v3115_v27, %v2869_v28  ;;  %v2699_v28 = vld [vmem:[%s4644_s0 + $0x138] sm:$0xf] }
  0xc7   : > { %v1837_v48 = vadd.f32 %v1836_v35, %v1774_v43  ;;  %v1143_v49 = vadd.f32 %v3742_v58, %v1142_v46  ;;  %v1311_v50 = vpop.f32.mrf.mxu1  ;;  %v2707_v43 = vld [vmem:[%s4644_s0 + $0x140] sm:$0xf] }
  0xc9   : > { %v1312_v51 = vadd.f32 %v1311_v50, %v1143_v49 }
  0xca   : > { %3008 = vmatmul.msk.bf16.gmra.mxu2 %vm1029_vm0, %v2684_v47 }
  0xcb   : > { %v1481_v55 = vadd.f32 %v1480_v13, %v1312_v51 }
  0xcd   : > { %1638 = vst [vmem:[#allocation2 + $0x18] sm:$0xff] %v1481_v55  ;;  %v1702_v60 = vadd.f32 %v1701_v42, %v1481_v55  ;;  %v1775_v61 = vmul.f32 %v1481_v55, %v1481_v55  ;;  %v3823_v62 = vpop.f32.mrf.mxu3  ;;  %v1488_v63 = vpop.f32.mrf.mxu2 }
  0xce   : > { %v1145_v1 = vpop.f32.mrf.mxu0 }
  0xcf   : > { %v1838_v4 = vadd.f32 %v1837_v48, %v1775_v61  ;;  %v1146_v5 = vadd.f32 %v3742_v58, %v1145_v1  ;;  %v1314_v6 = vpop.f32.mrf.mxu1  ;;  %v2689_v61 = vld [vmem:[%s4644_s0 + $0x12c] sm:$0xf0] }
  0xd1   : > { %v1315_v7 = vadd.f32 %v1314_v6, %v1146_v5  ;;  %1184 = vmatmul.bf16.gmra.mxu0 %v2664_v0  ;;  %v2881_v0 = vld [vmem:[%s4644_s0 + $0x2ac] sm:$0xf0]  ;;  %v2688_v5 = vor.u32 %v3071_v57, %v2687_v56 }
  0xd2   : > { %1353 = vmatmul.bf16.gmra.mxu1 %v2668_v2  ;;  %1433 = vmatmul.bf16.gmra.mxu3 %v2860_v3 }
  0xd3   : > { %v1484_v8 = vadd.f32 %v1483_v30, %v1315_v7  ;;  %v2692_v7 = vor.u32 %v3070_v59, %v2689_v61 }
  0xd5   : > { %1639 = vst [vmem:[#allocation2 + $0x50] sm:$0xff] %v1484_v8  ;;  %v1703_v11 = vadd.f32 %v1702_v60, %v1484_v8  ;;  %v1776_v13 = vmul.f32 %v1484_v8, %v1484_v8  ;;  %v3832_v14 = vpop.f32.mrf.mxu3  ;;  %v1490_v15 = vpop.f32.mrf.mxu2 }
  0xd6   : > { %v1147_v16 = vpop.f32.mrf.mxu0 }
  0xd7   : > { %v1839_v18 = vadd.f32 %v1838_v4, %v1776_v13  ;;  %v1148_v19 = vadd.f32 %v3742_v58, %v1147_v16  ;;  %v1316_v20 = vpop.f32.mrf.mxu1  ;;  %v2719_v16 = vld [vmem:[%s4644_s0 + $0x158] sm:$0xf] }
  0xd9   : > { %v1317_v21 = vadd.f32 %v1316_v20, %v1148_v19 }
  0xda   : > { %3009 = vmatmul.msk.bf16.gmra.mxu2 %vm1029_vm0, %v2696_v17  ;;  %v3078_v17 = vld [vmem:[%s4644_s0 + $0x160] sm:$0xf0] }
  0xdb   : > { %v1486_v25 = vadd.f32 %v1485_v45, %v1317_v21  ;;  %v3075_v45 = vld [vmem:[%s4644_s0 + $0x148] sm:$0xf0]  ;;  %v2720_v23 = vor.u32 %v3078_v17, %v2719_v16 }
  0xdc   : > { %v2708_v51 = vor.u32 %v3075_v45, %v2707_v43 }
  0xdd   : > { %1640 = vst [vmem:[#allocation2 + $0x168] sm:$0xff] %v1486_v25  ;;  %v1704_v30 = vadd.f32 %v1703_v11, %v1486_v25  ;;  %v1777_v31 = vmul.f32 %v1486_v25, %v1486_v25  ;;  %v3854_v32 = vpop.f32.mrf.mxu3  ;;  %v1493_v33 = vpop.f32.mrf.mxu2 }
  0xde   : > { %v1150_v35 = vpop.f32.mrf.mxu0 }
  0xdf   : > { %v1840_v38 = vadd.f32 %v1839_v18, %v1777_v31  ;;  %v1151_v39 = vadd.f32 %v3742_v58, %v1150_v35  ;;  %v1319_v40 = vpop.f32.mrf.mxu1  ;;  %v3073_v31 = vld [vmem:[%s4644_s0 + $0x13c] sm:$0xf] }
  0xe0   : > { %v3121_v35 = vld [vmem:[%s4644_s0 + $0x2bc] sm:$0xf] }
  0xe1   : > { %v1320_v41 = vadd.f32 %v1319_v40, %v1151_v39  ;;  %1189 = vmatmul.bf16.gmra.mxu0 %v2676_v34  ;;  %v2701_v34 = vld [vmem:[%s4644_s0 + $0x144] sm:$0xf0] }
  0xe2   : > { %1358 = vmatmul.bf16.gmra.mxu1 %v2680_v36  ;;  %1438 = vmatmul.bf16.gmra.mxu3 %v2872_v37  ;;  %v2893_v36 = vld [vmem:[%s4644_s0 + $0x2c4] sm:$0xf0]  ;;  %v2704_v43 = vor.u32 %v3073_v31, %v2701_v34 }
  0xe3   : > { %v1489_v42 = vadd.f32 %v1488_v63, %v1320_v41  ;;  %v3118_v63 = vld [vmem:[%s4644_s0 + $0x2a4] sm:$0xf]  ;;  %v2896_v45 = vor.u32 %v3121_v35, %v2893_v36 }
  0xe4   : > { %v2884_v8 = vor.u32 %v3118_v63, %v2881_v0 }
  0xe5   : > { %1641 = vst [vmem:[#allocation2 + $0x130] sm:$0xff] %v1489_v42  ;;  %v1705_v46 = vadd.f32 %v1704_v30, %v1489_v42  ;;  %v1778_v47 = vmul.f32 %v1489_v42, %v1489_v42  ;;  %v3863_v48 = vpop.f32.mrf.mxu3  ;;  %v1495_v49 = vpop.f32.mrf.mxu2  ;;  %v3074_v30 = vld [vmem:[%s4644_s0 + $0x140] sm:$0xf0] }
  0xe6   : > { %v1152_v50 = vpop.f32.mrf.mxu0  ;;  %v2700_v41 = vor.u32 %v3074_v30, %v2699_v28 }
  0xe7   : > { %v1841_v52 = vadd.f32 %v1840_v38, %v1778_v47  ;;  %v1153_v53 = vadd.f32 %v3742_v58, %v1152_v50  ;;  %v1321_v54 = vpop.f32.mrf.mxu1 }
  0xe9   : > { %v1322_v55 = vadd.f32 %v1321_v54, %v1153_v53  ;;  %v3081_v53 = vld [vmem:[%s4644_s0 + $0x178] sm:$0xf0] }
  0xea   : > { %3010 = vmatmul.msk.bf16.gmra.mxu2 %vm1029_vm0, %v2708_v51 }
  0xeb   : > { %v1491_v60 = vadd.f32 %v1490_v15, %v1322_v55 }
  0xed   : > { %1642 = vst [vmem:[#allocation2 + $0x48] sm:$0xff] %v1491_v60  ;;  %v1706_v1 = vadd.f32 %v1705_v46, %v1491_v60  ;;  %v1779_v2 = vmul.f32 %v1491_v60, %v1491_v60  ;;  %v3885_v3 = vpop.f32.mrf.mxu3  ;;  %v1498_v4 = vpop.f32.mrf.mxu2 }
  0xee   : > { %v1155_v6 = vpop.f32.mrf.mxu0 }
  0xef   : > { %v1842_v9 = vadd.f32 %v1841_v52, %v1779_v2  ;;  %v1156_v10 = vadd.f32 %v3742_v58, %v1155_v6  ;;  %v1324_v11 = vpop.f32.mrf.mxu1  ;;  %v2731_v52 = vld [vmem:[%s4644_s0 + $0x170] sm:$0xf] }
  0xf0   : > { %v2732_v60 = vor.u32 %v3081_v53, %v2731_v52  ;;  %v2711_v2 = vld [vmem:[%s4644_s0 + $0x150] sm:$0xf] }
  0xf1   : > { %v1325_v13 = vadd.f32 %v1324_v11, %v1156_v10  ;;  %1194 = vmatmul.bf16.gmra.mxu0 %v2688_v5  ;;  %v3076_v5 = vld [vmem:[%s4644_s0 + $0x154] sm:$0xf] }
  0xf2   : > { %1363 = vmatmul.bf16.gmra.mxu1 %v2692_v7  ;;  %1443 = vmatmul.bf16.gmra.mxu3 %v2884_v8  ;;  %v2713_v7 = vld [vmem:[%s4644_s0 + $0x15c] sm:$0xf0]  ;;  %v3124_v8 = vld [vmem:[%s4644_s0 + $0x2d4] sm:$0xf] }
  0xf3   : > { %v1494_v15 = vadd.f32 %v1493_v33, %v1325_v13 }
  0xf5   : > { %1643 = vst [vmem:[#allocation2 + $0x180] sm:$0xff] %v1494_v15  ;;  %v1707_v18 = vadd.f32 %v1706_v1, %v1494_v15  ;;  %v1780_v19 = vmul.f32 %v1494_v15, %v1494_v15  ;;  %v3894_v20 = vpop.f32.mrf.mxu3  ;;  %v1500_v21 = vpop.f32.mrf.mxu2 }
  0xf6   : > { %v1157_v22 = vpop.f32.mrf.mxu0 }
  0xf7   : > { %v1843_v24 = vadd.f32 %v1842_v9, %v1780_v19  ;;  %v1158_v25 = vadd.f32 %v3742_v58, %v1157_v22  ;;  %v1326_v26 = vpop.f32.mrf.mxu1  ;;  %v2905_v9 = vld [vmem:[%s4644_s0 + $0x2dc] sm:$0xf0] }
  0xf8   : > { %v2908_v19 = vor.u32 %v3124_v8, %v2905_v9 }
  0xf9   : > { %v1327_v27 = vadd.f32 %v1326_v26, %v1158_v25  ;;  %v2743_v26 = vld [vmem:[%s4644_s0 + $0x188] sm:$0xf] }
  0xfa   : > { %3011 = vmatmul.msk.bf16.gmra.mxu2 %vm1029_vm0, %v2720_v23 }
  0xfb   : > { %v1496_v33 = vadd.f32 %v1495_v49, %v1327_v27  ;;  %v3084_v27 = vld [vmem:[%s4644_s0 + $0x190] sm:$0xf0] }
  0xfc   : > { %v2744_v35 = vor.u32 %v3084_v27, %v2743_v26 }
  0xfd   : > { %1644 = vst [vmem:[#allocation2 + $0x110] sm:$0xff] %v1496_v33  ;;  %v1708_v37 = vadd.f32 %v1707_v18, %v1496_v33  ;;  %v1781_v38 = vmul.f32 %v1496_v33, %v1496_v33  ;;  %v3916_v39 = vpop.f32.mrf.mxu3  ;;  %v1503_v40 = vpop.f32.mrf.mxu2  ;;  %v2716_v18 = vor.u32 %v3076_v5, %v2713_v7 }
  0xfe   : > { %v1160_v42 = vpop.f32.mrf.mxu0 }
  0xff   : > { %v1844_v46 = vadd.f32 %v1843_v24, %v1781_v38  ;;  %v1161_v47 = vadd.f32 %v3742_v58, %v1160_v42  ;;  %v1329_v49 = vpop.f32.mrf.mxu1  ;;  %v3080_v42 = vld [vmem:[%s4644_s0 + $0x170] sm:$0xf0] }
 0x101   : > { %v1330_v50 = vadd.f32 %v1329_v49, %v1161_v47  ;;  %1199 = vmatmul.bf16.gmra.mxu0 %v2700_v41  ;;  %v2723_v41 = vld [vmem:[%s4644_s0 + $0x168] sm:$0xf]  ;;  %v3127_v47 = vld [vmem:[%s4644_s0 + $0x2ec] sm:$0xf]  ;;  %v2917_v49 = vld [vmem:[%s4644_s0 + $0x2f4] sm:$0xf0] }
 0x102   : > { %1368 = vmatmul.bf16.gmra.mxu1 %v2704_v43  ;;  %1448 = vmatmul.bf16.gmra.mxu3 %v2896_v45  ;;  %v3079_v43 = vld [vmem:[%s4644_s0 + $0x16c] sm:$0xf] }
 0x103   : > { %v1499_v51 = vadd.f32 %v1498_v4, %v1330_v50  ;;  %v3077_v4 = vld [vmem:[%s4644_s0 + $0x158] sm:$0xf0] }
 0x104   : > { %v2712_v16 = vor.u32 %v3077_v4, %v2711_v2  ;;  %v2755_v2 = vld [vmem:[%s4644_s0 + $0x1a0] sm:$0xf]  ;;  %v3087_v4 = vld [vmem:[%s4644_s0 + $0x1a8] sm:$0xf0] }
 0x105   : > { %1645 = vst [vmem:[#allocation2 + $0x118] sm:$0xff] %v1499_v51  ;;  %v1709_v54 = vadd.f32 %v1708_v37, %v1499_v51  ;;  %v1782_v55 = vmul.f32 %v1499_v51, %v1499_v51  ;;  %v3925_v56 = vpop.f32.mrf.mxu3  ;;  %v1505_v57 = vpop.f32.mrf.mxu2 }
 0x106   : > { %v1162_v59 = vpop.f32.mrf.mxu0 }
 0x107   : > { %v1845_v61 = vadd.f32 %v1844_v46, %v1782_v55  ;;  %v1163_v63 = vadd.f32 %v3742_v58, %v1162_v59  ;;  %v1331_v0 = vpop.f32.mrf.mxu1  ;;  %v2725_v46 = vld [vmem:[%s4644_s0 + $0x174] sm:$0xf0]  ;;  %v2920_v59 = vor.u32 %v3127_v47, %v2917_v49 }
 0x109   : > { %v1332_v1 = vadd.f32 %v1331_v0, %v1163_v63 }
 0x10a   : > { %3012 = vmatmul.msk.bf16.gmra.mxu2 %vm1029_vm0, %v2732_v60 }
 0x10b   : > { %v1501_v6 = vadd.f32 %v1500_v21, %v1332_v1 }
 0x10d   : > { %1646 = vst [vmem:[#allocation2 + $0x98] sm:$0xff] %v1501_v6  ;;  %v1710_v10 = vadd.f32 %v1709_v54, %v1501_v6  ;;  %v1783_v11 = vmul.f32 %v1501_v6, %v1501_v6  ;;  %v3947_v13 = vpop.f32.mrf.mxu3  ;;  %v1508_v15 = vpop.f32.mrf.mxu2  ;;  %v2724_v54 = vor.u32 %v3080_v42, %v2723_v41 }
 0x10e   : > { %v1165_v17 = vpop.f32.mrf.mxu0 }
 0x10f   : > { %v1846_v21 = vadd.f32 %v1845_v61, %v1783_v11  ;;  %v1166_v22 = vadd.f32 %v3742_v58, %v1165_v17  ;;  %v1334_v23 = vpop.f32.mrf.mxu1 }
 0x111   : > { %v1335_v24 = vadd.f32 %v1334_v23, %v1166_v22  ;;  %1204 = vmatmul.bf16.gmra.mxu0 %v2712_v16  ;;  %v2737_v23 = vld [vmem:[%s4644_s0 + $0x18c] sm:$0xf0] }
 0x112   : > { %1373 = vmatmul.bf16.gmra.mxu1 %v2716_v18  ;;  %1453 = vmatmul.bf16.gmra.mxu3 %v2908_v19  ;;  %v2735_v18 = vld [vmem:[%s4644_s0 + $0x180] sm:$0xf]  ;;  %v3083_v19 = vld [vmem:[%s4644_s0 + $0x188] sm:$0xf0] }
 0x113   : > { %v1504_v25 = vadd.f32 %v1503_v40, %v1335_v24  ;;  %v2863_v24 = vld [vmem:[%s4644_s0 + $0x278] sm:$0xf] }
 0x115   : > { %1647 = vst [vmem:[#allocation2 + $0x120] sm:$0xff] %v1504_v25  ;;  %v1711_v28 = vadd.f32 %v1710_v10, %v1504_v25  ;;  %v1784_v30 = vmul.f32 %v1504_v25, %v1504_v25  ;;  %v3956_v31 = vpop.f32.mrf.mxu3  ;;  %v1510_v33 = vpop.f32.mrf.mxu2  ;;  %v2756_v10 = vor.u32 %v3087_v4, %v2755_v2  ;;  %v3114_v25 = vld [vmem:[%s4644_s0 + $0x280] sm:$0xf0]  ;;  %v2749_v2 = vld [vmem:[%s4644_s0 + $0x1a4] sm:$0xf0] }
 0x116   : > { %v1167_v34 = vpop.f32.mrf.mxu0  ;;  %v2875_v4 = vld [vmem:[%s4644_s0 + $0x290] sm:$0xf] }
 0x117   : > { %v1847_v36 = vadd.f32 %v1846_v21, %v1784_v30  ;;  %v1168_v37 = vadd.f32 %v3742_v58, %v1167_v34  ;;  %v1336_v38 = vpop.f32.mrf.mxu1  ;;  %v3082_v21 = vld [vmem:[%s4644_s0 + $0x184] sm:$0xf]  ;;  %v2736_v34 = vor.u32 %v3083_v19, %v2735_v18 }
 0x119   : > { %v1337_v40 = vadd.f32 %v1336_v38, %v1168_v37 }
 0x11a   : > { %3013 = vmatmul.msk.bf16.gmra.mxu2 %vm1029_vm0, %v2744_v35  ;;  %v2740_v35 = vor.u32 %v3082_v21, %v2737_v23 }
 0x11b   : > { %v1506_v45 = vadd.f32 %v1505_v57, %v1337_v40  ;;  %v2728_v57 = vor.u32 %v3079_v43, %v2725_v46  ;;  %v2767_v43 = vld [vmem:[%s4644_s0 + $0x1b8] sm:$0xf]  ;;  %v1256_v46 = vadd.f32 %v3742_v58, %v3770_v12 }
 0x11c   : > { %v2747_v12 = vld [vmem:[%s4644_s0 + $0x198] sm:$0xf] }
 0x11d   : > { %1648 = vst [vmem:[#allocation2 + $0x150] sm:$0xff] %v1506_v45  ;;  %v1712_v50 = vadd.f32 %v1711_v28, %v1506_v45  ;;  %v1785_v51 = vmul.f32 %v1506_v45, %v1506_v45  ;;  %v3978_v52 = vpop.f32.mrf.mxu3  ;;  %v1513_v53 = vpop.f32.mrf.mxu2  ;;  %v3090_v45 = vld [vmem:[%s4644_s0 + $0x1c0] sm:$0xf0] }
 0x11e   : > { %v1170_v55 = vpop.f32.mrf.mxu0 }
 0x11f   : > { %v1848_v60 = vadd.f32 %v1847_v36, %v1785_v51  ;;  %v1171_v61 = vadd.f32 %v3742_v58, %v1170_v55  ;;  %v1339_v63 = vpop.f32.mrf.mxu1  ;;  %v2864_v36 = vor.u32 %v3114_v25, %v2863_v24  ;;  %v2779_v25 = vld [vmem:[%s4644_s0 + $0x1d0] sm:$0xf] }
 0x121   : > { %v1340_v0 = vadd.f32 %v1339_v63, %v1171_v61  ;;  %1209 = vmatmul.bf16.gmra.mxu0 %v2724_v54  ;;  %v3086_v63 = vld [vmem:[%s4644_s0 + $0x1a0] sm:$0xf0] }
 0x122   : > { %1378 = vmatmul.bf16.gmra.mxu1 %v2728_v57  ;;  %1458 = vmatmul.bf16.gmra.mxu3 %v2920_v59 }
 0x123   : > { %v1509_v1 = vadd.f32 %v1508_v15, %v1340_v0  ;;  %v3085_v0 = vld [vmem:[%s4644_s0 + $0x19c] sm:$0xf] }
 0x124   : > { %v2752_v18 = vor.u32 %v3085_v0, %v2749_v2 }
 0x125   : > { %1649 = vst [vmem:[#allocation2 + $0x108] sm:$0xff] %v1509_v1  ;;  %v1713_v5 = vadd.f32 %v1712_v50, %v1509_v1  ;;  %v1786_v6 = vmul.f32 %v1509_v1, %v1509_v1  ;;  %v3987_v7 = vpop.f32.mrf.mxu3  ;;  %v1515_v8 = vpop.f32.mrf.mxu2 }
 0x126   : > { %v1172_v9 = vpop.f32.mrf.mxu0 }
 0x127   : > { %v1849_v11 = vadd.f32 %v1848_v60, %v1786_v6  ;;  %v1173_v16 = vadd.f32 %v3742_v58, %v1172_v9  ;;  %v1341_v15 = vpop.f32.mrf.mxu1  ;;  %v1258_v6 = vadd.f32 %v3742_v58, %v3792_v29 }
 0x129   : > { %v1342_v17 = vadd.f32 %v1341_v15, %v1173_v16  ;;  %v2748_v16 = vor.u32 %v3086_v63, %v2747_v12 }
 0x12a   : > { %3014 = vmatmul.msk.bf16.gmra.mxu2 %vm1029_vm0, %v2756_v10 }
 0x12b   : > { %v1511_v22 = vadd.f32 %v1510_v33, %v1342_v17 }
 0x12d   : > { %1650 = vst [vmem:[#allocation2 + $0x60] sm:$0xff] %v1511_v22  ;;  %v1714_v26 = vadd.f32 %v1713_v5, %v1511_v22  ;;  %v1787_v27 = vmul.f32 %v1511_v22, %v1511_v22  ;;  %v4009_v28 = vpop.f32.mrf.mxu3  ;;  %v1518_v30 = vpop.f32.mrf.mxu2  ;;  %v3117_v5 = vld [vmem:[%s4644_s0 + $0x298] sm:$0xf0] }
 0x12e   : > { %v1175_v33 = vpop.f32.mrf.mxu0  ;;  %v2876_v19 = vor.u32 %v3117_v5, %v2875_v4 }
 0x12f   : > { %v1850_v37 = vadd.f32 %v1849_v11, %v1787_v27  ;;  %v1176_v38 = vadd.f32 %v3742_v58, %v1175_v33  ;;  %v1344_v40 = vpop.f32.mrf.mxu1  ;;  %v1261_v27 = vadd.f32 %v3742_v58, %v3801_v44  ;;  %v2759_v44 = vld [vmem:[%s4644_s0 + $0x1b0] sm:$0xf] }
 0x131   : > { %v1345_v41 = vadd.f32 %v1344_v40, %v1176_v38  ;;  %1214 = vmatmul.bf16.gmra.mxu0 %v2736_v34 }
 0x132   : > { %1383 = vmatmul.bf16.gmra.mxu1 %v2740_v35  ;;  %3023 = vmatmul.msk.bf16.vlgmr.msra.gmra.mxu3 %vm1029_vm0, %v2864_v36 }
 0x133   : > { %v1514_v42 = vadd.f32 %v1513_v53, %v1345_v41  ;;  %v2768_v53 = vor.u32 %v3090_v45, %v2767_v43  ;;  %v3089_v45 = vld [vmem:[%s4644_s0 + $0x1b8] sm:$0xf0] }
 0x135   : > { %1651 = vst [vmem:[#allocation2 + $0xe0] sm:$0xff] %v1514_v42  ;;  %v1715_v47 = vadd.f32 %v1714_v26, %v1514_v42  ;;  %v1788_v49 = vmul.f32 %v1514_v42, %v1514_v42  ;;  %v1424_v50 = vpop.f32.mrf.mxu3  ;;  %v1520_v51 = vpop.f32.mrf.mxu2  ;;  %v3093_v26 = vld [vmem:[%s4644_s0 + $0x1d8] sm:$0xf0] }
 0x136   : > { %v4021_v54 = vadd.f32 %v1424_v50, %v1256_v46  ;;  %v1177_v55 = vpop.f32.mrf.mxu0  ;;  %v3088_v46 = vld [vmem:[%s4644_s0 + $0x1b4] sm:$0xf]  ;;  %v2887_v50 = vld [vmem:[%s4644_s0 + $0x2a8] sm:$0xf] }
 0x137   : > { %v1851_v57 = vadd.f32 %v1850_v37, %v1788_v49  ;;  %v1178_v59 = vadd.f32 %v3742_v58, %v1177_v55  ;;  %v1346_v60 = vpop.f32.mrf.mxu1  ;;  %v2761_v49 = vld [vmem:[%s4644_s0 + $0x1bc] sm:$0xf0]  ;;  %v3120_v55 = vld [vmem:[%s4644_s0 + $0x2b0] sm:$0xf0] }
 0x138   : > { %v2764_v0 = vor.u32 %v3088_v46, %v2761_v49 }
 0x139   : > { %v1347_v61 = vadd.f32 %v1346_v60, %v1178_v59 }
 0x13a   : > { %3015 = vmatmul.msk.bf16.gmra.mxu2 %vm1029_vm0, %v2768_v53  ;;  %v1263_v53 = vadd.f32 %v3742_v58, %v3823_v62 }
 0x13b   : > { %v1516_v1 = vadd.f32 %v1515_v8, %v1347_v61  ;;  %v2760_v61 = vor.u32 %v3089_v45, %v2759_v44 }
 0x13d   : > { %1652 = vst [vmem:[#allocation2 + $0x188] sm:$0xff] %v1516_v1  ;;  %v1716_v9 = vadd.f32 %v1715_v47, %v1516_v1  ;;  %v1789_v10 = vmul.f32 %v1516_v1, %v1516_v1  ;;  %v1426_v11 = vpop.f32.mrf.mxu3  ;;  %v1523_v8 = vpop.f32.mrf.mxu2  ;;  %v2888_v1 = vor.u32 %v3120_v55, %v2887_v50 }
 0x13e   : > { %v4045_v15 = vadd.f32 %v1426_v11, %v1258_v6  ;;  %v1180_v17 = vpop.f32.mrf.mxu0  ;;  %v1266_v11 = vadd.f32 %v3742_v58, %v3832_v14  ;;  %v2771_v14 = vld [vmem:[%s4644_s0 + $0x1c8] sm:$0xf] }
 0x13f   : > { %v1852_v21 = vadd.f32 %v1851_v57, %v1789_v10  ;;  %v1181_v22 = vadd.f32 %v3742_v58, %v1180_v17  ;;  %v1349_v23 = vpop.f32.mrf.mxu1  ;;  %v3096_v10 = vld [vmem:[%s4644_s0 + $0x1f0] sm:$0xf0] }
 0x141   : > { %v1350_v24 = vadd.f32 %v1349_v23, %v1181_v22  ;;  %1219 = vmatmul.bf16.gmra.mxu0 %v2748_v16 }
 0x142   : > { %1388 = vmatmul.bf16.gmra.mxu1 %v2752_v18  ;;  %3024 = vmatmul.msk.bf16.gmra.mxu3 %vm1029_vm0, %v2876_v19 }
 0x143   : > { %v1519_v29 = vadd.f32 %v1518_v30, %v1350_v24  ;;  %v2780_v30 = vor.u32 %v3093_v26, %v2779_v25  ;;  %v3092_v26 = vld [vmem:[%s4644_s0 + $0x1d0] sm:$0xf0] }
 0x145   : > { %1653 = vst [vmem:[#allocation2 + $0x138] sm:$0xff] %v1519_v29  ;;  %v1717_v34 = vadd.f32 %v1716_v9, %v1519_v29  ;;  %v1790_v33 = vmul.f32 %v1519_v29, %v1519_v29  ;;  %v1429_v35 = vpop.f32.mrf.mxu3  ;;  %v1525_v36 = vpop.f32.mrf.mxu2  ;;  %v2791_v9 = vld [vmem:[%s4644_s0 + $0x1e8] sm:$0xf] }
 0x146   : > { %v4057_v37 = vadd.f32 %v1429_v35, %v1261_v27  ;;  %v1182_v38 = vpop.f32.mrf.mxu0  ;;  %v3091_v27 = vld [vmem:[%s4644_s0 + $0x1cc] sm:$0xf]  ;;  %v2899_v35 = vld [vmem:[%s4644_s0 + $0x2c0] sm:$0xf] }
 0x147   : > { %v1853_v40 = vadd.f32 %v1852_v21, %v1790_v33  ;;  %v1183_v41 = vadd.f32 %v3742_v58, %v1182_v38  ;;  %v1351_v42 = vpop.f32.mrf.mxu1  ;;  %v2773_v33 = vld [vmem:[%s4644_s0 + $0x1d4] sm:$0xf0]  ;;  %v3123_v38 = vld [vmem:[%s4644_s0 + $0x2c8] sm:$0xf0] }
 0x148   : > { %v2776_v46 = vor.u32 %v3091_v27, %v2773_v33 }
 0x149   : > { %v1352_v43 = vadd.f32 %v1351_v42, %v1183_v41 }
 0x14a   : > { %3016 = vmatmul.msk.bf16.gmra.mxu2 %vm1029_vm0, %v2780_v30  ;;  %v1268_v30 = vadd.f32 %v3742_v58, %v3854_v32 }
 0x14b   : > { %v1521_v47 = vadd.f32 %v1520_v51, %v1352_v43  ;;  %v2772_v43 = vor.u32 %v3092_v26, %v2771_v14 }
 0x14d   : > { %1654 = vst [vmem:[#allocation2 + $0x140] sm:$0xff] %v1521_v47  ;;  %v1718_v57 = vadd.f32 %v1717_v34, %v1521_v47  ;;  %v1791_v59 = vmul.f32 %v1521_v47, %v1521_v47  ;;  %v1431_v60 = vpop.f32.mrf.mxu3  ;;  %v1528_v51 = vpop.f32.mrf.mxu2  ;;  %v2900_v47 = vor.u32 %v3123_v38, %v2899_v35 }
 0x14e   : > { %v4081_v12 = vadd.f32 %v1431_v60, %v1263_v53  ;;  %v1185_v63 = vpop.f32.mrf.mxu0  ;;  %v1271_v60 = vadd.f32 %v3742_v58, %v3863_v48  ;;  %v2783_v48 = vld [vmem:[%s4644_s0 + $0x1e0] sm:$0xf] }
 0x14f   : > { %v1854_v2 = vadd.f32 %v1853_v40, %v1791_v59  ;;  %v1186_v4 = vadd.f32 %v3742_v58, %v1185_v63  ;;  %v1354_v5 = vpop.f32.mrf.mxu1  ;;  %v3099_v59 = vld [vmem:[%s4644_s0 + $0x208] sm:$0xf0] }
 0x151   : > { %v1355_v6 = vadd.f32 %v1354_v5, %v1186_v4  ;;  %1224 = vmatmul.bf16.gmra.mxu0 %v2760_v61 }
 0x152   : > { %1393 = vmatmul.bf16.gmra.mxu1 %v2764_v0  ;;  %3025 = vmatmul.msk.bf16.gmra.mxu3 %vm1029_vm0, %v2888_v1 }
 0x153   : > { %v1524_v62 = vadd.f32 %v1523_v8, %v1355_v6  ;;  %v2792_v8 = vor.u32 %v3096_v10, %v2791_v9  ;;  %v3095_v10 = vld [vmem:[%s4644_s0 + $0x1e8] sm:$0xf0] }
 0x155   : > { %1655 = vst [vmem:[#allocation2 + $0x80] sm:$0xff] %v1524_v62  ;;  %v1719_v16 = vadd.f32 %v1718_v57, %v1524_v62  ;;  %v1792_v17 = vmul.f32 %v1524_v62, %v1524_v62  ;;  %v1434_v18 = vpop.f32.mrf.mxu3  ;;  %v1530_v19 = vpop.f32.mrf.mxu2  ;;  %v2803_v57 = vld [vmem:[%s4644_s0 + $0x200] sm:$0xf] }
 0x156   : > { %v4093_v21 = vadd.f32 %v1434_v18, %v1266_v11  ;;  %v1187_v22 = vpop.f32.mrf.mxu0  ;;  %v3094_v11 = vld [vmem:[%s4644_s0 + $0x1e4] sm:$0xf]  ;;  %v2911_v18 = vld [vmem:[%s4644_s0 + $0x2d8] sm:$0xf] }
 0x157   : > { %v1855_v23 = vadd.f32 %v1854_v2, %v1792_v17  ;;  %v1188_v24 = vadd.f32 %v3742_v58, %v1187_v22  ;;  %v1356_v29 = vpop.f32.mrf.mxu1  ;;  %v2785_v17 = vld [vmem:[%s4644_s0 + $0x1ec] sm:$0xf0]  ;;  %v3126_v22 = vld [vmem:[%s4644_s0 + $0x2e0] sm:$0xf0] }
 0x158   : > { %v2788_v27 = vor.u32 %v3094_v11, %v2785_v17 }
 0x159   : > { %v1357_v25 = vadd.f32 %v1356_v29, %v1188_v24 }
 0x15a   : > { %3017 = vmatmul.msk.bf16.gmra.mxu2 %vm1029_vm0, %v2792_v8  ;;  %v1273_v8 = vadd.f32 %v3742_v58, %v3885_v3 }
 0x15b   : > { %v1526_v34 = vadd.f32 %v1525_v36, %v1357_v25  ;;  %v2784_v25 = vor.u32 %v3095_v10, %v2783_v48 }
 0x15d   : > { %1656 = vst [vmem:[#allocation2 + $0x1a8] sm:$0xff] %v1526_v34  ;;  %v1720_v40 = vadd.f32 %v1719_v16, %v1526_v34  ;;  %v1793_v41 = vmul.f32 %v1526_v34, %v1526_v34  ;;  %v1436_v42 = vpop.f32.mrf.mxu3  ;;  %v1533_v36 = vpop.f32.mrf.mxu2  ;;  %v2912_v34 = vor.u32 %v3126_v22, %v2911_v18 }
 0x15e   : > { %v4117_v44 = vadd.f32 %v1436_v42, %v1268_v30  ;;  %v1190_v45 = vpop.f32.mrf.mxu0  ;;  %v1276_v42 = vadd.f32 %v3742_v58, %v3894_v20  ;;  %v2795_v20 = vld [vmem:[%s4644_s0 + $0x1f8] sm:$0xf] }
 0x15f   : > { %v1856_v49 = vadd.f32 %v1855_v23, %v1793_v41  ;;  %v1191_v50 = vadd.f32 %v3742_v58, %v1190_v45  ;;  %v1359_v55 = vpop.f32.mrf.mxu1  ;;  %v3102_v41 = vld [vmem:[%s4644_s0 + $0x220] sm:$0xf0] }
 0x161   : > { %v1360_v53 = vadd.f32 %v1359_v55, %v1191_v50  ;;  %1229 = vmatmul.bf16.gmra.mxu0 %v2772_v43 }
 0x162   : > { %1398 = vmatmul.bf16.gmra.mxu1 %v2776_v46  ;;  %3026 = vmatmul.msk.bf16.gmra.mxu3 %vm1029_vm0, %v2900_v47 }
 0x163   : > { %v1529_v32 = vadd.f32 %v1528_v51, %v1360_v53  ;;  %v2804_v51 = vor.u32 %v3099_v59, %v2803_v57  ;;  %v3098_v59 = vld [vmem:[%s4644_s0 + $0x200] sm:$0xf0] }
 0x165   : > { %1657 = vst [vmem:[#allocation2 + $0x1b8] sm:$0xff] %v1529_v32  ;;  %v1721_v61 = vadd.f32 %v1720_v40, %v1529_v32  ;;  %v1794_v63 = vmul.f32 %v1529_v32, %v1529_v32  ;;  %v1439_v0 = vpop.f32.mrf.mxu3  ;;  %v1535_v1 = vpop.f32.mrf.mxu2  ;;  %v2815_v40 = vld [vmem:[%s4644_s0 + $0x218] sm:$0xf] }
 0x166   : > { %v4129_v2 = vadd.f32 %v1439_v0, %v1271_v60  ;;  %v1192_v4 = vpop.f32.mrf.mxu0  ;;  %v3097_v60 = vld [vmem:[%s4644_s0 + $0x1fc] sm:$0xf] }
 0x167   : > { %v1857_v5 = vadd.f32 %v1856_v49, %v1794_v63  ;;  %v1193_v6 = vadd.f32 %v3742_v58, %v1192_v4  ;;  %v1361_v62 = vpop.f32.mrf.mxu1  ;;  %v2923_v63 = vld [vmem:[%s4644_s0 + $0x2f0] sm:$0xf]  ;;  %v3129_v0 = vld [vmem:[%s4644_s0 + $0x2f8] sm:$0xf0]  ;;  %v4190_v4 = vld [vmem:[%s4646_s2] ss:$0 sm:$0xff] }
 0x169   : > { %v1362_v9 = vadd.f32 %v1361_v62, %v1193_v6 }
 0x16a   : > { %3018 = vmatmul.msk.bf16.gmra.mxu2 %vm1029_vm0, %v2804_v51 }
 0x16b   : > { %v1531_v16 = vadd.f32 %v1530_v19, %v1362_v9  ;;  %v2796_v9 = vor.u32 %v3098_v59, %v2795_v20 }
 0x16d   : > { %1658 = vst [vmem:[#allocation2 + $0x28] sm:$0xff] %v1531_v16  ;;  %v1722_v23 = vadd.f32 %v1721_v61, %v1531_v16  ;;  %v1795_v24 = vmul.f32 %v1531_v16, %v1531_v16  ;;  %v1441_v29 = vpop.f32.mrf.mxu3  ;;  %v1538_v19 = vpop.f32.mrf.mxu2  ;;  %v2924_v16 = vor.u32 %v3129_v0, %v2923_v63  ;;  %v3108_v0 = vld [vmem:[%s4644_s0 + $0x250] sm:$0xf0] }
 0x16e   : > { %v4153_v14 = vadd.f32 %v1441_v29, %v1273_v8  ;;  %v1195_v26 = vpop.f32.mrf.mxu0  ;;  %v1281_v29 = vadd.f32 %v4190_v4, %v3925_v56  ;;  %v2807_v56 = vld [vmem:[%s4644_s0 + $0x210] sm:$0xf] }
 0x16f   : > { %v1858_v33 = vadd.f32 %v1857_v5, %v1795_v24  ;;  %v1196_v35 = vadd.f32 %v3742_v58, %v1195_v26  ;;  %v1364_v38 = vpop.f32.mrf.mxu1  ;;  %v3105_v24 = vld [vmem:[%s4644_s0 + $0x238] sm:$0xf0] }
 0x171   : > { %v1365_v30 = vadd.f32 %v1364_v38, %v1196_v35  ;;  %1234 = vmatmul.bf16.gmra.mxu0 %v2784_v25 }
 0x172   : > { %1403 = vmatmul.bf16.gmra.mxu1 %v2788_v27  ;;  %3027 = vmatmul.msk.bf16.gmra.mxu3 %vm1029_vm0, %v2912_v34 }
 0x173   : > { %v1534_v3 = vadd.f32 %v1533_v36, %v1365_v30  ;;  %v2816_v36 = vor.u32 %v3102_v41, %v2815_v40  ;;  %v3101_v41 = vld [vmem:[%s4644_s0 + $0x218] sm:$0xf0] }
 0x175   : > { %1659 = vst [vmem:[#allocation2 + $0x1e8] sm:$0xff] %v1534_v3  ;;  %v1723_v43 = vadd.f32 %v1722_v23, %v1534_v3  ;;  %v1796_v45 = vmul.f32 %v1534_v3, %v1534_v3  ;;  %v1444_v46 = vpop.f32.mrf.mxu3  ;;  %v1540_v47 = vpop.f32.mrf.mxu2  ;;  %v2827_v23 = vld [vmem:[%s4644_s0 + $0x230] sm:$0xf] }
 0x176   : > { %v4165_v49 = vadd.f32 %v1444_v46, %v1276_v42  ;;  %v1197_v50 = vpop.f32.mrf.mxu0  ;;  %v1283_v46 = vadd.f32 %v4190_v4, %v3947_v13  ;;  %v2839_v13 = vld [vmem:[%s4644_s0 + $0x248] sm:$0xf] }
 0x177   : > { %v1859_v55 = vadd.f32 %v1858_v33, %v1796_v45  ;;  %v1198_v53 = vadd.f32 %v3742_v58, %v1197_v50  ;;  %v1366_v32 = vpop.f32.mrf.mxu1  ;;  %v2797_v58 = vld [vmem:[%s4644_s0 + $0x204] sm:$0xf0]  ;;  %v2809_v45 = vld [vmem:[%s4644_s0 + $0x21c] sm:$0xf0] }
 0x178   : > { %v2800_v11 = vor.u32 %v3097_v60, %v2797_v58 }
 0x179   : > { %v1367_v57 = vadd.f32 %v1366_v32, %v1198_v53  ;;  %v2808_v32 = vor.u32 %v3101_v41, %v2807_v56 }
 0x17a   : > { %3019 = vmatmul.msk.bf16.gmra.mxu2 %vm1029_vm0, %v2816_v36 }
 0x17b   : > { %v1536_v61 = vadd.f32 %v1535_v1, %v1367_v57  ;;  %v1278_v1 = vadd.f32 %v4190_v4, %v3916_v39 }
 0x17d   : > { %1660 = vst [vmem:[#allocation2 + $0xf8] sm:$0xff] %v1536_v61  ;;  %v1724_v51 = vadd.f32 %v1723_v43, %v1536_v61  ;;  %v1797_v5 = vmul.f32 %v1536_v61, %v1536_v61  ;;  %v1446_v6 = vpop.f32.mrf.mxu3  ;;  %v1543_v62 = vpop.f32.mrf.mxu2  ;;  %v3100_v43 = vld [vmem:[%s4644_s0 + $0x214] sm:$0xf] }
 0x17e   : > { %v4194_v48 = vadd.f32 %v1446_v6, %v1278_v1  ;;  %v1200_v10 = vpop.f32.mrf.mxu0  ;;  %v2812_v20 = vor.u32 %v3100_v43, %v2809_v45  ;;  %v1286_v1 = vadd.f32 %v4190_v4, %v3956_v31  ;;  %v2819_v31 = vld [vmem:[%s4644_s0 + $0x228] sm:$0xf]  ;;  %v3111_v43 = vld [vmem:[%s4644_s0 + $0x268] sm:$0xf0]  ;;  %v1291_v45 = vadd.f32 %v4190_v4, %v3987_v7 }
 0x17f   : > { %v1860_v17 = vadd.f32 %v1859_v55, %v1797_v5  ;;  %v1201_v18 = vadd.f32 %v4190_v4, %v1200_v10  ;;  %v1369_v22 = vpop.f32.mrf.mxu1  ;;  %v1293_v7 = vadd.f32 %v4190_v4, %v4009_v28 }
 0x181   : > { %v1370_v8 = vadd.f32 %v1369_v22, %v1201_v18  ;;  %1239 = vmatmul.bf16.gmra.mxu0 %v2796_v9 }
 0x182   : > { %1408 = vmatmul.bf16.gmra.mxu1 %v2800_v11  ;;  %3028 = vmatmul.msk.bf16.gmra.mxu3 %vm1029_vm0, %v2924_v16 }
 0x183   : > { %v1539_v39 = vadd.f32 %v1538_v19, %v1370_v8  ;;  %v2828_v19 = vor.u32 %v3105_v24, %v2827_v23  ;;  %v3104_v8 = vld [vmem:[%s4644_s0 + $0x230] sm:$0xf0]  ;;  %v3103_v23 = vld [vmem:[%s4644_s0 + $0x22c] sm:$0xf]  ;;  %v2821_v24 = vld [vmem:[%s4644_s0 + $0x234] sm:$0xf0] }
 0x185   : > { %1661 = vst [vmem:[#allocation2 + $0x160] sm:$0xff] %v1539_v39  ;;  %v1725_v25 = vadd.f32 %v1724_v51, %v1539_v39  ;;  %v1798_v26 = vmul.f32 %v1539_v39, %v1539_v39  ;;  %v1449_v27 = vpop.f32.mrf.mxu3  ;;  %v1545_v34 = vpop.f32.mrf.mxu2 }
 0x186   : > { %v4206_v33 = vadd.f32 %v1449_v27, %v1281_v29  ;;  %v1202_v35 = vpop.f32.mrf.mxu0  ;;  %v1288_v29 = vadd.f32 %v4190_v4, %v3978_v52  ;;  %v2851_v52 = vld [vmem:[%s4644_s0 + $0x260] sm:$0xf] }
 0x187   : > { %v1861_v38 = vadd.f32 %v1860_v17, %v1798_v26  ;;  %v1203_v30 = vadd.f32 %v4190_v4, %v1202_v35  ;;  %v1371_v3 = vpop.f32.mrf.mxu1 }
 0x189   : > { %v1372_v40 = vadd.f32 %v1371_v3, %v1203_v30  ;;  %v2824_v30 = vor.u32 %v3103_v23, %v2821_v24 }
 0x18a   : > { %3020 = vmatmul.msk.bf16.gmra.mxu2 %vm1029_vm0, %v2828_v19  ;;  %v2820_v19 = vor.u32 %v3104_v8, %v2819_v31 }
 0x18b   : > { %v1541_v42 = vadd.f32 %v1540_v47, %v1372_v40 }
 0x18d   : > { %1662 = vst [vmem:[#allocation2 + $0x30] sm:$0xff] %v1541_v42  ;;  %v1726_v50 = vadd.f32 %v1725_v25, %v1541_v42  ;;  %v1799_v36 = vmul.f32 %v1541_v42, %v1541_v42  ;;  %v1451_v55 = vpop.f32.mrf.mxu3  ;;  %v1548_v53 = vpop.f32.mrf.mxu2 }
 0x18e   : > { %v4224_v57 = vadd.f32 %v1451_v55, %v1283_v46  ;;  %v1205_v47 = vpop.f32.mrf.mxu0 }
 0x18f   : > { %v1862_v59 = vadd.f32 %v1861_v38, %v1799_v36  ;;  %v1206_v60 = vadd.f32 %v4190_v4, %v1205_v47  ;;  %v1374_v61 = vpop.f32.mrf.mxu1 }
 0x191   : > { %v1375_v58 = vadd.f32 %v1374_v61, %v1206_v60  ;;  %1244 = vmatmul.bf16.gmra.mxu0 %v2808_v32 }
 0x192   : > { %1413 = vmatmul.bf16.gmra.mxu1 %v2812_v20 }
 0x193   : > { %v1544_v63 = vadd.f32 %v1543_v62, %v1375_v58  ;;  %v2840_v62 = vor.u32 %v3108_v0, %v2839_v13 }
 0x195   : > { %1663 = vst [vmem:[#allocation2 + $0x1e0] sm:$0xff] %v1544_v63  ;;  %v1727_v51 = vadd.f32 %v1726_v50, %v1544_v63  ;;  %v1800_v5 = vmul.f32 %v1544_v63, %v1544_v63  ;;  %v1454_v6 = vpop.f32.mrf.mxu3  ;;  %v1550_v9 = vpop.f32.mrf.mxu2 }
 0x196   : > { %v4235_v10 = vadd.f32 %v1454_v6, %v1286_v1  ;;  %v1207_v11 = vpop.f32.mrf.mxu0 }
 0x197   : > { %v1863_v16 = vadd.f32 %v1862_v59, %v1800_v5  ;;  %v1208_v17 = vadd.f32 %v4190_v4, %v1207_v11  ;;  %v1376_v18 = vpop.f32.mrf.mxu1 }
 0x199   : > { %v1377_v22 = vadd.f32 %v1376_v18, %v1208_v17 }
 0x19a   : > { %3021 = vmatmul.msk.bf16.gmra.mxu2 %vm1029_vm0, %v2840_v62 }
 0x19b   : > { %v1546_v39 = vadd.f32 %v1545_v34, %v1377_v22 }
 0x19d   : > { %1664 = vst [vmem:[#allocation2] sm:$0xff] %v1546_v39  ;;  %v1728_v25 = vadd.f32 %v1727_v51, %v1546_v39  ;;  %v1801_v26 = vmul.f32 %v1546_v39, %v1546_v39  ;;  %v1456_v27 = vpop.f32.mrf.mxu3  ;;  %v1553_v35 = vpop.f32.mrf.mxu2 }
 0x19e   : > { %v4253_v38 = vadd.f32 %v1456_v27, %v1288_v29  ;;  %v1210_v34 = vpop.f32.mrf.mxu0 }
 0x19f   : > { %v1864_v3 = vadd.f32 %v1863_v16, %v1801_v26  ;;  %v1211_v40 = vadd.f32 %v4190_v4, %v1210_v34  ;;  %v1379_v56 = vpop.f32.mrf.mxu1 }
 0x1a1   : > { %v1380_v41 = vadd.f32 %v1379_v56, %v1211_v40  ;;  %1249 = vmatmul.bf16.gmra.mxu0 %v2820_v19 }
 0x1a2   : > { %1418 = vmatmul.bf16.gmra.mxu1 %v2824_v30 }
 0x1a3   : > { %v1549_v42 = vadd.f32 %v1548_v53, %v1380_v41  ;;  %v2852_v53 = vor.u32 %v3111_v43, %v2851_v52 }
 0x1a5   : > { %1665 = vst [vmem:[#allocation2 + $0xf0] sm:$0xff] %v1549_v42  ;;  %v1729_v46 = vadd.f32 %v1728_v25, %v1549_v42  ;;  %v1802_v50 = vmul.f32 %v1549_v42, %v1549_v42  ;;  %v1459_v36 = vpop.f32.mrf.mxu3  ;;  %v1555_v55 = vpop.f32.mrf.mxu2 }
 0x1a6   : > { %v4264_v32 = vadd.f32 %v1459_v36, %v1291_v45  ;;  %v1212_v47 = vpop.f32.mrf.mxu0 }
 0x1a7   : > { %v1865_v20 = vadd.f32 %v1864_v3, %v1802_v50  ;;  %v1213_v59 = vadd.f32 %v4190_v4, %v1212_v47  ;;  %v1381_v60 = vpop.f32.mrf.mxu1 }
 0x1a9   : > { %v1382_v61 = vadd.f32 %v1381_v60, %v1213_v59 }
 0x1aa   : > { %3022 = vmatmul.msk.bf16.gmra.mxu2 %vm1029_vm0, %v2852_v53 }
 0x1ab   : > { %v1551_v58 = vadd.f32 %v1550_v9, %v1382_v61 }
 0x1ad   : > { %1666 = vst [vmem:[#allocation2 + $0x8] sm:$0xff] %v1551_v58  ;;  %v1730_v63 = vadd.f32 %v1729_v46, %v1551_v58  ;;  %v1803_v13 = vmul.f32 %v1551_v58, %v1551_v58  ;;  %v1461_v0 = vpop.f32.mrf.mxu3  ;;  %v1558_v1 = vpop.f32.mrf.mxu2 }
 0x1ae   : > { %v4270_v51 = vadd.f32 %v1461_v0, %v1293_v7  ;;  %v1215_v5 = vpop.f32.mrf.mxu0 }
 0x1af   : > { %v1866_v6 = vadd.f32 %v1865_v20, %v1803_v13  ;;  %v1216_v11 = vadd.f32 %v4190_v4, %v1215_v5  ;;  %v1384_v62 = vpop.f32.mrf.mxu1 }
 0x1b1   : > { %v1385_v16 = vadd.f32 %v1384_v62, %v1216_v11 }
 0x1b3   : > { %v1554_v17 = vadd.f32 %v1553_v35, %v1385_v16 }
 0x1b5   : > { %1667 = vst [vmem:[#allocation2 + $0x148] sm:$0xff] %v1554_v17  ;;  %v1731_v18 = vadd.f32 %v1730_v63, %v1554_v17  ;;  %v1804_v9 = vmul.f32 %v1554_v17, %v1554_v17  ;;  %v1560_v22 = vpop.f32.mrf.mxu2  ;;  %v1603_v31 = vpop.f32.mrf.mxu3 }
 0x1b6   : > { %v4274_v28 = vadd.f32 %v1603_v31, %v4093_v21  ;;  %v1217_v8 = vpop.f32.mrf.mxu0 }
 0x1b7   : > { %v1867_v39 = vadd.f32 %v1866_v6, %v1804_v9  ;;  %v1218_v23 = vadd.f32 %v4190_v4, %v1217_v8  ;;  %v1386_v24 = vpop.f32.mrf.mxu1 }
 0x1b8   : > { %1687 = vst [vmem:[#allocation2 + $0x170] sm:$0xff] %v4274_v28 }
 0x1b9   : > { %v1387_v29 = vadd.f32 %v1386_v24, %v1218_v23 }
 0x1bb   : > { %v1556_v25 = vadd.f32 %v1555_v55, %v1387_v29 }
 0x1bd   : > { %1668 = vst [vmem:[#allocation2 + $0x1d0] sm:$0xff] %v1556_v25  ;;  %v1732_v26 = vadd.f32 %v1731_v18, %v1556_v25  ;;  %v1805_v27 = vmul.f32 %v1556_v25, %v1556_v25  ;;  %v1563_v35 = vpop.f32.mrf.mxu2  ;;  %v1605_v19 = vpop.f32.mrf.mxu3 }
 0x1be   : > { %v4279_v34 = vadd.f32 %v1605_v19, %v4117_v44  ;;  %v1220_v30 = vpop.f32.mrf.mxu0 }
 0x1bf   : > { %v1868_v21 = vadd.f32 %v1867_v39, %v1805_v27  ;;  %v1221_v3 = vadd.f32 %v4190_v4, %v1220_v30  ;;  %v1389_v40 = vpop.f32.mrf.mxu1 }
 0x1c0   : > { %1688 = vst [vmem:[#allocation2 + $0x178] sm:$0xff] %v4279_v34 }
 0x1c1   : > { %v1390_v56 = vadd.f32 %v1389_v40, %v1221_v3 }
 0x1c3   : > { %v1559_v41 = vadd.f32 %v1558_v1, %v1390_v56 }
 0x1c5   : > { %1669 = vst [vmem:[#allocation2 + $0x100] sm:$0xff] %v1559_v41  ;;  %v1733_v42 = vadd.f32 %v1732_v26, %v1559_v41  ;;  %v1806_v52 = vmul.f32 %v1559_v41, %v1559_v41  ;;  %v1565_v43 = vpop.f32.mrf.mxu2  ;;  %v1608_v45 = vpop.f32.mrf.mxu3 }
 0x1c6   : > { %v4284_v46 = vadd.f32 %v1608_v45, %v4129_v2  ;;  %v1222_v50 = vpop.f32.mrf.mxu0 }
 0x1c7   : > { %v1869_v44 = vadd.f32 %v1868_v21, %v1806_v52  ;;  %v1223_v36 = vadd.f32 %v4190_v4, %v1222_v50  ;;  %v1391_v55 = vpop.f32.mrf.mxu1 }
 0x1c8   : > { %1689 = vst [vmem:[#allocation2 + $0x68] sm:$0xff] %v4284_v46 }
 0x1c9   : > { %v1392_v47 = vadd.f32 %v1391_v55, %v1223_v36 }
 0x1cb   : > { %v1561_v53 = vadd.f32 %v1560_v22, %v1392_v47 }
 0x1cd   : > { %1670 = vst [vmem:[#allocation2 + $0xc8] sm:$0xff] %v1561_v53  ;;  %v1734_v20 = vadd.f32 %v1733_v42, %v1561_v53  ;;  %v1807_v59 = vmul.f32 %v1561_v53, %v1561_v53  ;;  %v1568_v60 = vpop.f32.mrf.mxu2  ;;  %v1610_v61 = vpop.f32.mrf.mxu3 }
 0x1ce   : > { %v4289_v58 = vadd.f32 %v1610_v61, %v4153_v14  ;;  %v1225_v7 = vpop.f32.mrf.mxu0 }
 0x1cf   : > { %v1870_v2 = vadd.f32 %v1869_v44, %v1807_v59  ;;  %v1226_v63 = vadd.f32 %v4190_v4, %v1225_v7  ;;  %v1394_v13 = vpop.f32.mrf.mxu1 }
 0x1d0   : > { %1690 = vst [vmem:[#allocation2 + $0x190] sm:$0xff] %v4289_v58 }
 0x1d1   : > { %v1395_v0 = vadd.f32 %v1394_v13, %v1226_v63 }
 0x1d3   : > { %v1564_v1 = vadd.f32 %v1563_v35, %v1395_v0 }
 0x1d5   : > { %1671 = vst [vmem:[#allocation2 + $0x40] sm:$0xff] %v1564_v1  ;;  %v1735_v5 = vadd.f32 %v1734_v20, %v1564_v1  ;;  %v1808_v6 = vmul.f32 %v1564_v1, %v1564_v1  ;;  %v1570_v11 = vpop.f32.mrf.mxu2  ;;  %v1613_v62 = vpop.f32.mrf.mxu3 }
 0x1d6   : > { %v4294_v16 = vadd.f32 %v1613_v62, %v4165_v49  ;;  %v1227_v17 = vpop.f32.mrf.mxu0 }
 0x1d7   : > { %v1871_v14 = vadd.f32 %v1870_v2, %v1808_v6  ;;  %v1228_v18 = vadd.f32 %v4190_v4, %v1227_v17  ;;  %v1396_v9 = vpop.f32.mrf.mxu1 }
 0x1d8   : > { %1691 = vst [vmem:[#allocation2 + $0x198] sm:$0xff] %v4294_v16 }
 0x1d9   : > { %v1397_v22 = vadd.f32 %v1396_v9, %v1228_v18 }
 0x1db   : > { %v1566_v31 = vadd.f32 %v1565_v43, %v1397_v22 }
 0x1dd   : > { %1672 = vst [vmem:[#allocation2 + $0x1f8] sm:$0xff] %v1566_v31  ;;  %v4298_v8 = vadd.f32 %v1735_v5, %v1566_v31  ;;  %v1809_v39 = vmul.f32 %v1566_v31, %v1566_v31  ;;  %v1573_v23 = vpop.f32.mrf.mxu2  ;;  %v1615_v24 = vpop.f32.mrf.mxu3 }
 0x1de   : > { %v4301_v29 = vadd.f32 %v1615_v24, %v4194_v48  ;;  %v1230_v49 = vpop.f32.mrf.mxu0 }
 0x1df   : > { %v4303_v25 = vadd.f32 %v1871_v14, %v1809_v39  ;;  %v1231_v26 = vadd.f32 %v4190_v4, %v1230_v49  ;;  %v1399_v27 = vpop.f32.mrf.mxu1 }
 0x1e0   : > { %1692 = vst [vmem:[#allocation2 + $0x38] sm:$0xff] %v4301_v29 }
 0x1e1   : > { %v1400_v35 = vadd.f32 %v1399_v27, %v1231_v26 }
 0x1e3   : > { %v4307_v19 = vadd.f32 %v1568_v60, %v1400_v35 }
 0x1e5   : > { %1673 = vst [vmem:[#allocation2 + $0x20] sm:$0xff] %v4307_v19  ;;  %v1575_v30 = vpop.f32.mrf.mxu2  ;;  %v1618_v21 = vpop.f32.mrf.mxu3 }
 0x1e6   : > { %v4311_v3 = vadd.f32 %v1618_v21, %v4206_v33  ;;  %v1232_v48 = vpop.f32.mrf.mxu0  ;;  %v3412_v21 = vmov 0.0  }
 0x1e7   : > { %v1233_v40 = vadd.f32 %v4190_v4, %v1232_v48  ;;  %v1401_v56 = vpop.f32.mrf.mxu1  ;;  %271 = vst [vmem:[#allocation3] sm:$0x1] %v3412_v21 }
 0x1e8   : > { %1693 = vst [vmem:[#allocation2 + $0xc0] sm:$0xff] %v4311_v3 }
 0x1e9   : > { %v1402_v41 = vadd.f32 %v1401_v56, %v1233_v40  ;;  %272 = vst [vmem:[#allocation4] sm:$0x1] %v3412_v21 }
 0x1eb   : > { %v4315_v42 = vadd.f32 %v1570_v11, %v1402_v41  ;;  %v1737_v41 = vadd.f32 %v4298_v8, %v4307_v19 }
 0x1ed   : > { %1674 = vst [vmem:[#allocation2 + $0x128] sm:$0xff] %v4315_v42  ;;  %v1578_v52 = vpop.f32.mrf.mxu2  ;;  %v1620_v43 = vpop.f32.mrf.mxu3 }
 0x1ee   : > { %v4319_v45 = vadd.f32 %v1620_v43, %v4224_v57  ;;  %v1235_v50 = vpop.f32.mrf.mxu0 }
 0x1ef   : > { %v1236_v33 = vadd.f32 %v4190_v4, %v1235_v50  ;;  %v1404_v44 = vpop.f32.mrf.mxu1 }
 0x1f0   : > { %1694 = vst [vmem:[#allocation2 + $0x1c0] sm:$0xff] %v4319_v45 }
 0x1f1   : > { %v1405_v36 = vadd.f32 %v1404_v44, %v1236_v33  ;;  %v1738_v33 = vadd.f32 %v1737_v41, %v4315_v42 }
 0x1f3   : > { %v1574_v55 = vadd.f32 %v1573_v23, %v1405_v36 }
 0x1f5   : > { %1675 = vst [vmem:[#allocation2 + $0x1a0] sm:$0xff] %v1574_v55  ;;  %v1580_v47 = vpop.f32.mrf.mxu2  ;;  %v1623_v53 = vpop.f32.mrf.mxu3  ;;  %v1812_v44 = vmul.f32 %v1574_v55, %v1574_v55 }
 0x1f6   : > { %v4324_v20 = vadd.f32 %v1623_v53, %v4235_v10  ;;  %v1237_v59 = vpop.f32.mrf.mxu0 }
 0x1f7   : > { %v1238_v60 = vadd.f32 %v4190_v4, %v1237_v59  ;;  %v1406_v61 = vpop.f32.mrf.mxu1 }
 0x1f8   : > { %1695 = vst [vmem:[#allocation2 + $0x158] sm:$0xff] %v4324_v20 }
 0x1f9   : > { %v1407_v57 = vadd.f32 %v1406_v61, %v1238_v60  ;;  %v1739_v60 = vadd.f32 %v1738_v33, %v1574_v55 }
 0x1fb   : > { %v1576_v7 = vadd.f32 %v1575_v30, %v1407_v57 }
 0x1fd   : > { %1676 = vst [vmem:[#allocation2 + $0x1f0] sm:$0xff] %v1576_v7  ;;  %v1583_v2 = vpop.f32.mrf.mxu2  ;;  %v1625_v63 = vpop.f32.mrf.mxu3  ;;  %v1813_v61 = vmul.f32 %v1576_v7, %v1576_v7 }
 0x1fe   : > { %v4329_v13 = vadd.f32 %v1625_v63, %v4253_v38  ;;  %v1240_v0 = vpop.f32.mrf.mxu0 }
 0x1ff   : > { %v1241_v1 = vadd.f32 %v4190_v4, %v1240_v0  ;;  %v1409_v5 = vpop.f32.mrf.mxu1 }
 0x200   : > { %1696 = vst [vmem:[#allocation2 + $0x10] sm:$0xff] %v4329_v13 }
 0x201   : > { %v1410_v10 = vadd.f32 %v1409_v5, %v1241_v1 }
 0x203   : > { %v1579_v6 = vadd.f32 %v1578_v52, %v1410_v10  ;;  %v1811_v52 = vmul.f32 %v4315_v42, %v4315_v42 }
 0x205   : > { %1677 = vst [vmem:[#allocation2 + $0xe8] sm:$0xff] %v1579_v6  ;;  %v1585_v11 = vpop.f32.mrf.mxu2  ;;  %v1628_v62 = vpop.f32.mrf.mxu3  ;;  %v1814_v63 = vmul.f32 %v1579_v6, %v1579_v6 }
 0x206   : > { %v4334_v17 = vadd.f32 %v1628_v62, %v4264_v32  ;;  %v1242_v14 = vpop.f32.mrf.mxu0 }
 0x207   : > { %v1243_v18 = vadd.f32 %v4190_v4, %v1242_v14  ;;  %v1411_v9 = vpop.f32.mrf.mxu1 }
 0x208   : > { %1697 = vst [vmem:[#allocation2 + $0x58] sm:$0xff] %v4334_v17 }
 0x209   : > { %v1412_v38 = vadd.f32 %v1411_v9, %v1243_v18 }
 0x20b   : > { %v1581_v22 = vadd.f32 %v1580_v47, %v1412_v38 }
 0x20d   : > { %1678 = vst [vmem:[#allocation2 + $0x78] sm:$0xff] %v1581_v22  ;;  %v1588_v31 = vpop.f32.mrf.mxu2  ;;  %v1630_v39 = vpop.f32.mrf.mxu3  ;;  %v1815_v42 = vmul.f32 %v1581_v22, %v1581_v22 }
 0x20e   : > { %v4339_v23 = vadd.f32 %v1630_v39, %v4270_v51  ;;  %v1245_v24 = vpop.f32.mrf.mxu0  ;;  %v1810_v51 = vmul.f32 %v4307_v19, %v4307_v19 }
 0x20f   : > { %v1246_v49 = vadd.f32 %v4190_v4, %v1245_v24  ;;  %v1414_v26 = vpop.f32.mrf.mxu1 }
 0x210   : > { %1698 = vst [vmem:[#allocation2 + $0xa0] sm:$0xff] %v4339_v23  ;;  %v1873_v50 = vadd.f32 %v4303_v25, %v1810_v51 }
 0x211   : > { %v1415_v32 = vadd.f32 %v1414_v26, %v1246_v49 }
 0x212   : > { %v1874_v59 = vadd.f32 %v1873_v50, %v1811_v52 }
 0x213   : > { %v1584_v27 = vadd.f32 %v1583_v2, %v1415_v32  ;;  %v1740_v2 = vadd.f32 %v1739_v60, %v1576_v7 }
 0x214   : > { %v1875_v19 = vadd.f32 %v1874_v59, %v1812_v44 }
 0x215   : > { %1679 = vst [vmem:[#allocation2 + $0x70] sm:$0xff] %v1584_v27  ;;  %v1590_v35 = vpop.f32.mrf.mxu2  ;;  %v1741_v1 = vadd.f32 %v1740_v2, %v1579_v6  ;;  %v1816_v62 = vmul.f32 %v1584_v27, %v1584_v27 }
 0x216   : > { %v1247_v30 = vpop.f32.mrf.mxu0  ;;  %v1876_v25 = vadd.f32 %v1875_v19, %v1813_v61  ;;  %v1825_v61 = vmul.f32 %v4279_v34, %v4279_v34  ;;  %v1826_v19 = vmul.f32 %v4284_v46, %v4284_v46 }
 0x217   : > { %v1248_v48 = vadd.f32 %v4190_v4, %v1247_v30  ;;  %v1416_v40 = vpop.f32.mrf.mxu1 }
 0x218   : > { %v1877_v10 = vadd.f32 %v1876_v25, %v1814_v63  ;;  %v1827_v63 = vmul.f32 %v4289_v58, %v4289_v58 }
 0x219   : > { %v1417_v56 = vadd.f32 %v1416_v40, %v1248_v48 }
 0x21a   : > { %v1878_v18 = vadd.f32 %v1877_v10, %v1815_v42 }
 0x21b   : > { %v1586_v43 = vadd.f32 %v1585_v11, %v1417_v56  ;;  %v1742_v11 = vadd.f32 %v1741_v1, %v1581_v22 }
 0x21c   : > { %v1879_v24 = vadd.f32 %v1878_v18, %v1816_v62 }
 0x21d   : > { %1680 = vst [vmem:[#allocation2 + $0x90] sm:$0xff] %v1586_v43  ;;  %v1593_v36 = vpop.f32.mrf.mxu2  ;;  %v1743_v9 = vadd.f32 %v1742_v11, %v1584_v27  ;;  %v1817_v38 = vmul.f32 %v1586_v43, %v1586_v43 }
 0x21e   : > { %v1594_v47 = vadd.f32 %v1593_v36, %v4021_v54  ;;  %v1250_v53 = vpop.f32.mrf.mxu0 }
 0x21f   : > { %v1251_v57 = vadd.f32 %v4190_v4, %v1250_v53  ;;  %v1419_v8 = vpop.f32.mrf.mxu1  ;;  %v1744_v49 = vadd.f32 %v1743_v9, %v1586_v43 }
 0x220   : > { %1683 = vst [vmem:[#allocation2 + $0xb8] sm:$0xff] %v1594_v47  ;;  %v1820_v27 = vmul.f32 %v1594_v47, %v1594_v47 }
 0x221   : > { %v1420_v0 = vadd.f32 %v1419_v8, %v1251_v57 }
 0x223   : > { %v1589_v5 = vadd.f32 %v1588_v31, %v1420_v0  ;;  %v1880_v31 = vadd.f32 %v1879_v24, %v1817_v38 }
 0x225   : > { %1681 = vst [vmem:[#allocation2 + $0x1d8] sm:$0xff] %v1589_v5  ;;  %v1595_v54 = vpop.f32.mrf.mxu2  ;;  %v1818_v6 = vmul.f32 %v1589_v5, %v1589_v5  ;;  %v1745_v32 = vadd.f32 %v1744_v49, %v1589_v5 }
 0x226   : > { %v1596_v55 = vadd.f32 %v1595_v54, %v4045_v15  ;;  %v1252_v14 = vpop.f32.mrf.mxu0 }
 0x227   : > { %v1253_v39 = vadd.f32 %v4190_v4, %v1252_v14  ;;  %v1421_v7 = vpop.f32.mrf.mxu1  ;;  %v1881_v30 = vadd.f32 %v1880_v31, %v1818_v6 }
 0x228   : > { %1684 = vst [vmem:[#allocation2 + $0x88] sm:$0xff] %v1596_v55  ;;  %v1821_v4 = vmul.f32 %v1596_v55, %v1596_v55 }
 0x229   : > { %v1422_v26 = vadd.f32 %v1421_v7, %v1253_v39 }
 0x22b   : > { %v1591_v22 = vadd.f32 %v1590_v35, %v1422_v26 }
 0x22d   : > { %1682 = vst [vmem:[#allocation2 + $0xd0] sm:$0xff] %v1591_v22  ;;  %v1746_v21 = vadd.f32 %v1745_v32, %v1591_v22  ;;  %v1819_v48 = vmul.f32 %v1591_v22, %v1591_v22  ;;  %v1598_v15 = vpop.f32.mrf.mxu2 }
 0x22e   : > { %v1599_v40 = vadd.f32 %v1598_v15, %v4057_v37  ;;  %v1824_v37 = vmul.f32 %v4274_v28, %v4274_v28  ;;  %v1699_v15 = vld [vmem:[#allocation3] sm:$0x1] }
 0x22f   : > { %v1882_v51 = vadd.f32 %v1881_v30, %v1819_v48  ;;  %v1747_v56 = vadd.f32 %v1746_v21, %v1594_v47 }
 0x230   : > { %1685 = vst [vmem:[#allocation2 + $0xa8] sm:$0xff] %v1599_v40  ;;  %v1822_v50 = vmul.f32 %v1599_v40, %v1599_v40 }
 0x231   : > { %v1748_v41 = vadd.f32 %v1747_v56, %v1596_v55  ;;  %v1883_v52 = vadd.f32 %v1882_v51, %v1820_v27  ;;  %v1771_v27 = vld [vmem:[#allocation4] sm:$0x1] }
 0x233   : > { %v1749_v43 = vadd.f32 %v1748_v41, %v1599_v40  ;;  %v1884_v33 = vadd.f32 %v1883_v52, %v1821_v4 }
 0x235   : > { %v1885_v44 = vadd.f32 %v1884_v33, %v1822_v50  ;;  %v1600_v36 = vpop.f32.mrf.mxu2 }
 0x236   : > { %v1601_v35 = vadd.f32 %v1600_v36, %v4081_v12 }
 0x238   : > { %1686 = vst [vmem:[#allocation2 + $0x1c8] sm:$0xff] %v1601_v35  ;;  %v1750_v53 = vadd.f32 %v1749_v43, %v1601_v35  ;;  %v1823_v59 = vmul.f32 %v1601_v35, %v1601_v35 }
 0x23a   : > { %v1751_v60 = vadd.f32 %v1750_v53, %v4274_v28  ;;  %v1886_v47 = vadd.f32 %v1885_v44, %v1823_v59  ;;  %v1828_v28 = vmul.f32 %v4294_v16, %v4294_v16 }
 0x23c   : > { %v1752_v57 = vadd.f32 %v1751_v60, %v4279_v34  ;;  %v1887_v8 = vadd.f32 %v1886_v47, %v1824_v37  ;;  %v1829_v34 = vmul.f32 %v4301_v29, %v4301_v29 }
 0x23e   : > { %v1753_v12 = vadd.f32 %v1752_v57, %v4284_v46  ;;  %v1888_v2 = vadd.f32 %v1887_v8, %v1825_v61  ;;  %v1830_v46 = vmul.f32 %v4311_v3, %v4311_v3 }
 0x240   : > { %v1754_v0 = vadd.f32 %v1753_v12, %v4289_v58  ;;  %v1889_v25 = vadd.f32 %v1888_v2, %v1826_v19  ;;  %v1831_v58 = vmul.f32 %v4319_v45, %v4319_v45 }
 0x242   : > { %v1755_v1 = vadd.f32 %v1754_v0, %v4294_v16  ;;  %v1890_v42 = vadd.f32 %v1889_v25, %v1827_v63  ;;  %v1832_v16 = vmul.f32 %v4324_v20, %v4324_v20 }
 0x244   : > { %v1756_v5 = vadd.f32 %v1755_v1, %v4301_v29  ;;  %v1891_v10 = vadd.f32 %v1890_v42, %v1828_v28  ;;  %v1833_v29 = vmul.f32 %v4329_v13, %v4329_v13 }
 0x246   : > { %v1757_v11 = vadd.f32 %v1756_v5, %v4311_v3  ;;  %v1892_v62 = vadd.f32 %v1891_v10, %v1829_v34  ;;  %v1834_v3 = vmul.f32 %v4334_v17, %v4334_v17 }
 0x248   : > { %v1758_v54 = vadd.f32 %v1757_v11, %v4319_v45  ;;  %v1893_v55 = vadd.f32 %v1892_v62, %v1830_v46  ;;  %v1835_v45 = vmul.f32 %v4339_v23, %v4339_v23 }
 0x24a   : > { %v1759_v14 = vadd.f32 %v1758_v54, %v4324_v20  ;;  %v1894_v18 = vadd.f32 %v1893_v55, %v1831_v58 }
 0x24c   : > { %v1760_v9 = vadd.f32 %v1759_v14, %v4329_v13  ;;  %v1895_v38 = vadd.f32 %v1894_v18, %v1832_v16 }
 0x24e   : > { %v1761_v39 = vadd.f32 %v1760_v9, %v4334_v17  ;;  %v1896_v7 = vadd.f32 %v1895_v38, %v1833_v29 }
 0x250   : > { %v1762_v24 = vadd.f32 %v1761_v39, %v4339_v23  ;;  %v1897_v49 = vadd.f32 %v1896_v7, %v1834_v3 }
 0x252   : > { %v1763_v20 = vrot.slane %v1762_v24, 4  ;;  %v1898_v6 = vadd.f32 %v1897_v49, %v1835_v45 }
 0x254   : > { %v1764_v26 = vadd.f32 %v1763_v20, %v1762_v24  ;;  %v1899_v31 = vrot.slane %v1898_v6, 4 }
 0x256   : > { %v1765_v32 = vrot.slane %v1764_v26, 2  ;;  %v1900_v22 = vadd.f32 %v1899_v31, %v1898_v6 }
 0x258   : > { %v1766_v13 = vadd.f32 %v1765_v32, %v1764_v26  ;;  %v1901_v30 = vrot.slane %v1900_v22, 2 }
 0x25a   : > { %v1767_v21 = vrot.slane %v1766_v13, 1  ;;  %v1902_v48 = vadd.f32 %v1901_v30, %v1900_v22 }
 0x25c   : > { %v1768_v40 = vadd.f32 %v1767_v21, %v1766_v13  ;;  %v1903_v17 = vrot.slane %v1902_v48, 1 }
 0x25e   : > { %v1769_v51 = vadd.f32 %v1768_v40, %v1699_v15  ;;  %v1904_v56 = vadd.f32 %v1903_v17, %v1902_v48 }
 0x260   : > { %1770 = vst [vmem:[#allocation3] sm:$0x1] %v1769_v51  ;;  %v1905_v4 = vadd.f32 %v1904_v56, %v1771_v27 }
 0x262   : > { %1906 = vst [vmem:[#allocation4] sm:$0x1] %v1905_v4 }
 0x263 PF: > { %p3029_p5 = scmp.ne.s32.totalorder %s3402_s18, 1 }
 0x265   : > { %1910 = sbr.rel (%p3029_p5) target bundleno = 750 (0x2ee), region = 52 }
 0x26a   : > { %v1915_v23 = vld [vmem:[#allocation3] sm:$0x1]  ;;  %v1917_v41 = vld [vmem:[#allocation4] sm:$0x1]  ;;  %v1942_v63 = vld [vmem:[#allocation2 + $0xb0] sm:$0xff] }
 0x26b   : > { %v1916_v52 = vmul.f32 0.001953125, %v1915_v23  ;;  %v1918_v43 = vmul.f32 0.001953125, %v1917_v41  ;;  %v1922_v47 = vld [vmem:[%s4647_s3] sm:$0x1]  ;;  %v1943_v0 = vld [vmem:[#allocation2 + $0x1b0] sm:$0xff]  ;;  %v1944_v25 = vld [vmem:[#allocation2 + $0xd8] sm:$0xff] }
 0x26c   : > { %v1936_v19 = vld [vmem:[%s4648_s4] sm:$0x1]  ;;  %v1945_v28 = vld [vmem:[#allocation2 + $0x18] sm:$0xff]  ;;  %v1946_v1 = vld [vmem:[#allocation2 + $0x50] sm:$0xff] }
 0x26d   : > { %v1919_v50 = vmul.f32 %v1916_v52, %v1916_v52  ;;  %v1947_v42 = vld [vmem:[#allocation2 + $0x168] sm:$0xff]  ;;  %v1948_v34 = vld [vmem:[#allocation2 + $0x130] sm:$0xff]  ;;  %v1950_v10 = vld [vmem:[#allocation2 + $0x180] sm:$0xff] }
 0x26e   : > { %v1949_v5 = vld [vmem:[#allocation2 + $0x48] sm:$0xff]  ;;  %v1951_v11 = vld [vmem:[#allocation2 + $0x110] sm:$0xff]  ;;  %v1952_v62 = vld [vmem:[#allocation2 + $0x118] sm:$0xff] }
 0x26f   : > { %v1920_v33 = vsub.f32 %v1918_v43, %v1919_v50  ;;  %v1953_v58 = vld [vmem:[#allocation2 + $0x98] sm:$0xff]  ;;  %v1954_v54 = vld [vmem:[#allocation2 + $0x120] sm:$0xff]  ;;  %v1955_v29 = vld [vmem:[#allocation2 + $0x150] sm:$0xff] }
 0x270   : > { %v1956_v9 = vld [vmem:[#allocation2 + $0x108] sm:$0xff]  ;;  %v1957_v38 = vld [vmem:[#allocation2 + $0x60] sm:$0xff] }
 0x271   : > { %v1921_v44 = vmax.f32 %v1920_v33, 0.0 }
 0x273   : > { %v1923_v36 = vadd.f32 1e-05, %v1921_v44 }
 0x275   : > { %3386 = vrsqrt.f32 %v1923_v36  ;;  %vm1930_vm1 = vweird.f32 %v1923_v36 }
 0x27b   : > { %v3387_v35 = vpop.eup %3386 }
 0x27c   : > { %v1925_v53 = vmul.f32 %v3387_v35, %v1923_v36  ;;  %vm1931_vm2 = vweird.f32 %v3387_v35 }
 0x27d   : > { %vm1932_vm3 = vmor %vm1930_vm1, %vm1931_vm2 }
 0x27e   : > { %v1926_v59 = vmul.f32 %v3387_v35, %v1925_v53 }
 0x280   : > { %v1927_v37 = vmul.f32 0.5, %v1926_v59 }
 0x282   : > { %v1928_v60 = vsub.f32 1.5, %v1927_v37 }
 0x284   : > { %v1929_v61 = vmul.f32 %v3387_v35, %v1928_v60 }
 0x286   : > { %v1933_v57 = vsel %vm1932_vm3, %v3387_v35, %v1929_v61 }
 0x287   : > { %v1934_v8 = vmul.f32 %v1933_v57, %v1922_v47 }
 0x289   : > { %1935 = vst [vmem:[#allocation5] sm:$0x1] %v1934_v8  ;;  %v1937_v12 = vmul.f32 %v1934_v8, %v1916_v52 }
 0x28b   : > { %v1938_v2 = vsub.f32 %v1936_v19, %v1937_v12 }
 0x28d   : > { %1939 = vst [vmem:[#allocation6] sm:$0x1] %v1938_v2 }
 0x290   : > { %v4401_v46 = vld [vmem:[#allocation5] ss:$0 sm:$0xff] }
 0x291   : > { %v2010_v55 = vmul.f32 %v4401_v46, %v1942_v63  ;;  %v2011_v16 = vmul.f32 %v4401_v46, %v1943_v0  ;;  %v2012_v14 = vmul.f32 %v4401_v46, %v1944_v25  ;;  %v2013_v18 = vmul.f32 %v4401_v46, %v1945_v28 }
 0x292   : > { %v2014_v3 = vmul.f32 %v4401_v46, %v1946_v1  ;;  %v2015_v39 = vmul.f32 %v4401_v46, %v1947_v42  ;;  %v2016_v7 = vmul.f32 %v4401_v46, %v1948_v34  ;;  %v2017_v45 = vmul.f32 %v4401_v46, %v1949_v5 }
 0x293   : > { %v2018_v49 = vmul.f32 %v4401_v46, %v1950_v10  ;;  %v2019_v20 = vmul.f32 %v4401_v46, %v1951_v11  ;;  %v2020_v6 = vmul.f32 %v4401_v46, %v1952_v62  ;;  %v2021_v26 = vmul.f32 %v4401_v46, %v1953_v58  ;;  %v1958_v62 = vld [vmem:[#allocation2 + $0xe0] sm:$0xff] }
 0x294   : > { %v4411_v24 = vld [vmem:[#allocation6] ss:$0 sm:$0xff]  ;;  %v2022_v31 = vmul.f32 %v4401_v46, %v1954_v54  ;;  %v2023_v32 = vmul.f32 %v4401_v46, %v1955_v29  ;;  %v4420_v22 = vmul.f32 %v4401_v46, %v1956_v9  ;;  %v4423_v13 = vmul.f32 %v4401_v46, %v1957_v38 }
 0x295   : > { %v2078_v30 = vadd.f32 %v4411_v24, %v2010_v55  ;;  %v2079_v21 = vadd.f32 %v4411_v24, %v2011_v16  ;;  %v2080_v48 = vadd.f32 %v4411_v24, %v2012_v14  ;;  %v2081_v15 = vadd.f32 %v4411_v24, %v2013_v18  ;;  %v1959_v16 = vld [vmem:[#allocation2 + $0x188] sm:$0xff] }
 0x296   : > { %v2082_v40 = vadd.f32 %v4411_v24, %v2014_v3  ;;  %v2083_v17 = vadd.f32 %v4411_v24, %v2015_v39  ;;  %v2084_v27 = vadd.f32 %v4411_v24, %v2016_v7  ;;  %v2085_v51 = vadd.f32 %v4411_v24, %v2017_v45  ;;  %v1960_v7 = vld [vmem:[#allocation2 + $0x138] sm:$0xff]  ;;  %v1961_v45 = vld [vmem:[#allocation2 + $0x140] sm:$0xff] }
 0x297   : > { %vm2142_vm4 = vcmp.ge.f32.partialorder %v2078_v30, 0.0  ;;  %vm2143_vm5 = vcmp.ge.f32.partialorder %v2079_v21, 0.0  ;;  %v2206_v56 = vmul.f32 0.01, %v2078_v30  ;;  %v2207_v4 = vmul.f32 0.01, %v2079_v21 }
 0x298   : > { %vm2144_vm6 = vcmp.ge.f32.partialorder %v2080_v48, 0.0  ;;  %vm2145_vm7 = vcmp.ge.f32.partialorder %v2081_v15, 0.0  ;;  %v2208_v23 = vmul.f32 0.01, %v2080_v48  ;;  %v2209_v41 = vmul.f32 0.01, %v2081_v15 }
 0x299   : > { %v2270_v52 = vsel %vm2142_vm4, %v2078_v30, %v2206_v56  ;;  %v2271_v43 = vsel %vm2143_vm5, %v2079_v21, %v2207_v4  ;;  %vm2146_vm8 = vcmp.ge.f32.partialorder %v2082_v40, 0.0  ;;  %vm2147_vm9 = vcmp.ge.f32.partialorder %v2083_v17, 0.0 }
 0x29a   : > { %v3151_v50 = vpack.c.bf16 %v2271_v43, %v2270_v52  ;;  %v2272_v33 = vsel %vm2144_vm6, %v2080_v48, %v2208_v23  ;;  %v2273_v44 = vsel %vm2145_vm7, %v2081_v15, %v2209_v41  ;;  %v2210_v36 = vmul.f32 0.01, %v2082_v40  ;;  %v1963_v15 = vld [vmem:[#allocation2 + $0x1a8] sm:$0xff] }
 0x29b   : > { %v3156_v35 = vpack.c.bf16 %v2273_v44, %v2272_v33  ;;  %v2211_v53 = vmul.f32 0.01, %v2083_v17  ;;  %vm2148_vm10 = vcmp.ge.f32.partialorder %v2084_v27, 0.0  ;;  %vm2149_vm11 = vcmp.ge.f32.partialorder %v2085_v51, 0.0  ;;  %v1965_v33 = vld [vmem:[#allocation2 + $0x28] sm:$0xff] }
 0x29c   : > { %3152 = vst [vmem:[%s4649_s5] sm:$0xff] %v3151_v50   ;;  %v2274_v59 = vsel %vm2146_vm8, %v2082_v40, %v2210_v36  ;;  %v2212_v37 = vmul.f32 0.01, %v2084_v27  ;;  %v2213_v60 = vmul.f32 0.01, %v2085_v51  ;;  %v2086_v47 = vadd.f32 %v4411_v24, %v2018_v49 }
 0x29d   : > { %3308 = vst [vmem:[%s4649_s5 + $0x8] sm:$0xff] %v3156_v35   ;;  %v2275_v61 = vsel %vm2147_vm9, %v2083_v17, %v2211_v53  ;;  %v2087_v57 = vadd.f32 %v4411_v24, %v2019_v20  ;;  %v2088_v8 = vadd.f32 %v4411_v24, %v2020_v6  ;;  %v2089_v19 = vadd.f32 %v4411_v24, %v2021_v26  ;;  %v1962_v26 = vld [vmem:[#allocation2 + $0x80] sm:$0xff] }
 0x29e   : > { %v3161_v12 = vpack.c.bf16 %v2275_v61, %v2274_v59  ;;  %v2276_v2 = vsel %vm2148_vm10, %v2084_v27, %v2212_v37  ;;  %v2277_v63 = vsel %vm2149_vm11, %v2085_v51, %v2213_v60  ;;  %vm2150_vm12 = vcmp.ge.f32.partialorder %v2086_v47, 0.0  ;;  %v1964_v51 = vld [vmem:[#allocation2 + $0x1b8] sm:$0xff]  ;;  %v1966_v60 = vld [vmem:[#allocation2 + $0x1e8] sm:$0xff] }
 0x29f   : > { %v3166_v0 = vpack.c.bf16 %v2277_v63, %v2276_v2  ;;  %vm2151_vm13 = vcmp.ge.f32.partialorder %v2087_v57, 0.0  ;;  %v2214_v25 = vmul.f32 0.01, %v2086_v47  ;;  %v2215_v28 = vmul.f32 0.01, %v2087_v57 }
 0x2a0   : > { %3309 = vst [vmem:[%s4649_s5 + $0x10] sm:$0xff] %v3161_v12   ;;  %vm2152_vm14 = vcmp.ge.f32.partialorder %v2088_v8, 0.0  ;;  %vm2153_vm15 = vcmp.ge.f32.partialorder %v2089_v19, 0.0  ;;  %v2216_v1 = vmul.f32 0.01, %v2088_v8  ;;  %v2090_v42 = vadd.f32 %v4411_v24, %v2022_v31 }
 0x2a1   : > { %3310 = vst [vmem:[%s4649_s5 + $0x18] sm:$0xff] %v3166_v0   ;;  %v2278_v34 = vsel %vm2150_vm12, %v2086_v47, %v2214_v25  ;;  %v2279_v5 = vsel %vm2151_vm13, %v2087_v57, %v2215_v28  ;;  %v2217_v10 = vmul.f32 0.01, %v2089_v19  ;;  %v2091_v11 = vadd.f32 %v4411_v24, %v2023_v32 }
 0x2a2   : > { %v3171_v58 = vpack.c.bf16 %v2279_v5, %v2278_v34  ;;  %v2280_v54 = vsel %vm2152_vm14, %v2088_v8, %v2216_v1  ;;  %vm2154_vm0 = vcmp.ge.f32.partialorder %v2090_v42, 0.0  ;;  %v2218_v55 = vmul.f32 0.01, %v2090_v42  ;;  %v1967_v8 = vld [vmem:[#allocation2 + $0xf8] sm:$0xff]  ;;  %v1968_v1 = vld [vmem:[#allocation2 + $0x160] sm:$0xff] }
 0x2a3   : > { %v2281_v14 = vsel %vm2153_vm15, %v2089_v19, %v2217_v10  ;;  %vm2155_vm1 = vcmp.ge.f32.partialorder %v2091_v11, 0.0  ;;  %v2219_v18 = vmul.f32 0.01, %v2091_v11  ;;  %v2092_v29 = vadd.f32 %v4411_v24, %v4420_v22 }
 0x2a4   : > { %3311 = vst [vmem:[%s4649_s5 + $0x20] sm:$0xff] %v3171_v58   ;;  %v3176_v9 = vpack.c.bf16 %v2281_v14, %v2280_v54  ;;  %v2282_v38 = vsel %vm2154_vm0, %v2090_v42, %v2218_v55  ;;  %v2093_v3 = vadd.f32 %v4411_v24, %v4423_v13  ;;  %v2026_v39 = vmul.f32 %v4401_v46, %v1958_v62  ;;  %v1969_v42 = vld [vmem:[#allocation2 + $0x30] sm:$0xff] }
 0x2a5   : > { %v2283_v49 = vsel %vm2155_vm1, %v2091_v11, %v2219_v18  ;;  %vm2156_vm2 = vcmp.ge.f32.partialorder %v2092_v29, 0.0  ;;  %v2220_v20 = vmul.f32 0.01, %v2092_v29  ;;  %v2027_v6 = vmul.f32 %v4401_v46, %v1959_v16  ;;  %v1970_v11 = vld [vmem:[#allocation2 + $0x1e0] sm:$0xff] }
 0x2a6   : > { %3312 = vst [vmem:[%s4649_s5 + $0x28] sm:$0xff] %v3176_v9   ;;  %v3181_v31 = vpack.c.bf16 %v2283_v49, %v2282_v38  ;;  %vm2157_vm3 = vcmp.ge.f32.partialorder %v2093_v3, 0.0  ;;  %v2221_v32 = vmul.f32 0.01, %v2093_v3  ;;  %v2094_v22 = vadd.f32 %v4411_v24, %v2026_v39  ;;  %v1972_v39 = vld [vmem:[#allocation2 + $0xf0] sm:$0xff] }
 0x2a7   : > { %v2284_v13 = vsel %vm2156_vm2, %v2092_v29, %v2220_v20  ;;  %v2095_v30 = vadd.f32 %v4411_v24, %v2027_v6  ;;  %v2028_v21 = vmul.f32 %v4401_v46, %v1960_v7  ;;  %v2029_v48 = vmul.f32 %v4401_v46, %v1961_v45  ;;  %v1971_v29 = vld [vmem:[#allocation2] sm:$0xff] }
 0x2a8   : > { %3313 = vst [vmem:[%s4649_s5 + $0x30] sm:$0xff] %v3181_v31   ;;  %v2285_v40 = vsel %vm2157_vm3, %v2093_v3, %v2221_v32  ;;  %vm2158_vm4 = vcmp.ge.f32.partialorder %v2094_v22, 0.0  ;;  %v2222_v17 = vmul.f32 0.01, %v2094_v22  ;;  %v2030_v27 = vmul.f32 %v4401_v46, %v1962_v26  ;;  %v1973_v32 = vld [vmem:[#allocation2 + $0x8] sm:$0xff] }
 0x2a9   : > { %v3186_v56 = vpack.c.bf16 %v2285_v40, %v2284_v13  ;;  %vm2159_vm5 = vcmp.ge.f32.partialorder %v2095_v30, 0.0  ;;  %v2223_v4 = vmul.f32 0.01, %v2095_v30  ;;  %v2096_v23 = vadd.f32 %v4411_v24, %v2028_v21  ;;  %v1974_v40 = vld [vmem:[#allocation2 + $0x148] sm:$0xff] }
 0x2aa   : > { %v2286_v41 = vsel %vm2158_vm4, %v2094_v22, %v2222_v17  ;;  %v2097_v52 = vadd.f32 %v4411_v24, %v2029_v48  ;;  %v2031_v43 = vmul.f32 %v4401_v46, %v1963_v15  ;;  %v2098_v50 = vadd.f32 %v4411_v24, %v2030_v27 }
 0x2ab   : > { %3314 = vst [vmem:[%s4649_s5 + $0x38] sm:$0xff] %v3186_v56   ;;  %v2287_v44 = vsel %vm2159_vm5, %v2095_v30, %v2223_v4  ;;  %vm2160_vm6 = vcmp.ge.f32.partialorder %v2096_v23, 0.0  ;;  %v2224_v36 = vmul.f32 0.01, %v2096_v23  ;;  %v2032_v35 = vmul.f32 %v4401_v46, %v1964_v51  ;;  %v1975_v56 = vld [vmem:[#allocation2 + $0x1d0] sm:$0xff] }
 0x2ac   : > { %v3191_v53 = vpack.c.bf16 %v2287_v44, %v2286_v41  ;;  %vm2161_vm7 = vcmp.ge.f32.partialorder %v2097_v52, 0.0  ;;  %v2225_v59 = vmul.f32 0.01, %v2097_v52  ;;  %v2099_v37 = vadd.f32 %v4411_v24, %v2031_v43  ;;  %v1976_v44 = vld [vmem:[#allocation2 + $0x100] sm:$0xff] }
 0x2ad   : > { %v2288_v47 = vsel %vm2160_vm6, %v2096_v23, %v2224_v36  ;;  %vm2162_vm8 = vcmp.ge.f32.partialorder %v2098_v50, 0.0  ;;  %v2226_v61 = vmul.f32 0.01, %v2098_v50  ;;  %v2033_v57 = vmul.f32 %v4401_v46, %v1965_v33  ;;  %v1977_v36 = vld [vmem:[#allocation2 + $0xc8] sm:$0xff] }
 0x2ae   : > { %3315 = vst [vmem:[%s4649_s5 + $0x40] sm:$0xff] %v3191_v53   ;;  %v2289_v19 = vsel %vm2161_vm7, %v2097_v52, %v2225_v59  ;;  %vm2163_vm9 = vcmp.ge.f32.partialorder %v2099_v37, 0.0  ;;  %v2227_v12 = vmul.f32 0.01, %v2099_v37  ;;  %v2100_v2 = vadd.f32 %v4411_v24, %v2032_v35 }
 0x2af   : > { %v3196_v63 = vpack.c.bf16 %v2289_v19, %v2288_v47  ;;  %v2290_v0 = vsel %vm2162_vm8, %v2098_v50, %v2226_v61  ;;  %v2101_v25 = vadd.f32 %v4411_v24, %v2033_v57  ;;  %v2034_v28 = vmul.f32 %v4401_v46, %v1966_v60 }
 0x2b0   : > { %v2291_v34 = vsel %vm2163_vm9, %v2099_v37, %v2227_v12  ;;  %vm2164_vm10 = vcmp.ge.f32.partialorder %v2100_v2, 0.0  ;;  %v2228_v5 = vmul.f32 0.01, %v2100_v2  ;;  %v2035_v10 = vmul.f32 %v4401_v46, %v1967_v8  ;;  %v1978_v37 = vld [vmem:[#allocation2 + $0x40] sm:$0xff] }
 0x2b1   : > { %3316 = vst [vmem:[%s4649_s5 + $0x48] sm:$0xff] %v3196_v63   ;;  %v3201_v62 = vpack.c.bf16 %v2291_v34, %v2290_v0  ;;  %vm2165_vm11 = vcmp.ge.f32.partialorder %v2101_v25, 0.0  ;;  %v2229_v58 = vmul.f32 0.01, %v2101_v25  ;;  %v2102_v54 = vadd.f32 %v4411_v24, %v2034_v28  ;;  %v1980_v28 = vld [vmem:[#allocation2 + $0x20] sm:$0xff] }
 0x2b2   : > { %v2292_v55 = vsel %vm2164_vm10, %v2100_v2, %v2228_v5  ;;  %v2103_v16 = vadd.f32 %v4411_v24, %v2035_v10  ;;  %v2036_v14 = vmul.f32 %v4401_v46, %v1968_v1  ;;  %v2037_v18 = vmul.f32 %v4401_v46, %v1969_v42  ;;  %v1979_v2 = vld [vmem:[#allocation2 + $0x1f8] sm:$0xff] }
 0x2b3   : > { %3317 = vst [vmem:[%s4649_s5 + $0x50] sm:$0xff] %v3201_v62   ;;  %v2293_v9 = vsel %vm2165_vm11, %v2101_v25, %v2229_v58  ;;  %vm2166_vm12 = vcmp.ge.f32.partialorder %v2102_v54, 0.0  ;;  %v2230_v38 = vmul.f32 0.01, %v2102_v54  ;;  %v2038_v3 = vmul.f32 %v4401_v46, %v1970_v11  ;;  %v1981_v58 = vld [vmem:[#allocation2 + $0x128] sm:$0xff] }
 0x2b4   : > { %v3206_v7 = vpack.c.bf16 %v2293_v9, %v2292_v55  ;;  %vm2167_vm13 = vcmp.ge.f32.partialorder %v2103_v16, 0.0  ;;  %v2231_v45 = vmul.f32 0.01, %v2103_v16  ;;  %v2104_v49 = vadd.f32 %v4411_v24, %v2036_v14  ;;  %v1982_v9 = vld [vmem:[#allocation2 + $0x1a0] sm:$0xff] }
 0x2b5   : > { %v2294_v20 = vsel %vm2166_vm12, %v2102_v54, %v2230_v38  ;;  %v2105_v6 = vadd.f32 %v4411_v24, %v2037_v18  ;;  %v2039_v26 = vmul.f32 %v4401_v46, %v1971_v29  ;;  %v2106_v31 = vadd.f32 %v4411_v24, %v2038_v3 }
 0x2b6   : > { %3318 = vst [vmem:[%s4649_s5 + $0x58] sm:$0xff] %v3206_v7   ;;  %v2295_v22 = vsel %vm2167_vm13, %v2103_v16, %v2231_v45  ;;  %vm2168_vm14 = vcmp.ge.f32.partialorder %v2104_v49, 0.0  ;;  %v2232_v13 = vmul.f32 0.01, %v2104_v49  ;;  %v2040_v30 = vmul.f32 %v4401_v46, %v1972_v39  ;;  %v1983_v7 = vld [vmem:[#allocation2 + $0x1f0] sm:$0xff] }
 0x2b7   : > { %v3211_v21 = vpack.c.bf16 %v2295_v22, %v2294_v20  ;;  %vm2169_vm15 = vcmp.ge.f32.partialorder %v2105_v6, 0.0  ;;  %v2233_v48 = vmul.f32 0.01, %v2105_v6  ;;  %v2107_v15 = vadd.f32 %v4411_v24, %v2039_v26  ;;  %v1984_v22 = vld [vmem:[#allocation2 + $0xe8] sm:$0xff] }
 0x2b8   : > { %v2296_v17 = vsel %vm2168_vm14, %v2104_v49, %v2232_v13  ;;  %vm2170_vm0 = vcmp.ge.f32.partialorder %v2106_v31, 0.0  ;;  %v2234_v27 = vmul.f32 0.01, %v2106_v31  ;;  %v2041_v51 = vmul.f32 %v4401_v46, %v1973_v32  ;;  %v1985_v13 = vld [vmem:[#allocation2 + $0x78] sm:$0xff] }
 0x2b9   : > { %3319 = vst [vmem:[%s4649_s5 + $0x60] sm:$0xff] %v3211_v21   ;;  %v2297_v4 = vsel %vm2169_vm15, %v2105_v6, %v2233_v48  ;;  %vm2171_vm1 = vcmp.ge.f32.partialorder %v2107_v15, 0.0  ;;  %v2235_v23 = vmul.f32 0.01, %v2107_v15  ;;  %v2108_v41 = vadd.f32 %v4411_v24, %v2040_v30 }
 0x2ba   : > { %v3216_v52 = vpack.c.bf16 %v2297_v4, %v2296_v17  ;;  %v2298_v43 = vsel %vm2170_vm0, %v2106_v31, %v2234_v27  ;;  %v2109_v50 = vadd.f32 %v4411_v24, %v2041_v51  ;;  %v2042_v33 = vmul.f32 %v4401_v46, %v1974_v40 }
 0x2bb   : > { %v2299_v35 = vsel %vm2171_vm1, %v2107_v15, %v2235_v23  ;;  %vm2172_vm2 = vcmp.ge.f32.partialorder %v2108_v41, 0.0  ;;  %v2236_v53 = vmul.f32 0.01, %v2108_v41  ;;  %v2043_v59 = vmul.f32 %v4401_v46, %v1975_v56  ;;  %v1986_v15 = vld [vmem:[#allocation2 + $0x70] sm:$0xff] }
 0x2bc   : > { %3320 = vst [vmem:[%s4649_s5 + $0x68] sm:$0xff] %v3216_v52   ;;  %v3221_v60 = vpack.c.bf16 %v2299_v35, %v2298_v43  ;;  %vm2173_vm3 = vcmp.ge.f32.partialorder %v2109_v50, 0.0  ;;  %v2237_v47 = vmul.f32 0.01, %v2109_v50  ;;  %v2110_v61 = vadd.f32 %v4411_v24, %v2042_v33  ;;  %v1988_v33 = vld [vmem:[#allocation2 + $0x1d8] sm:$0xff] }
 0x2bd   : > { %v2300_v57 = vsel %vm2172_vm2, %v2108_v41, %v2236_v53  ;;  %v2111_v8 = vadd.f32 %v4411_v24, %v2043_v59  ;;  %v2044_v19 = vmul.f32 %v4401_v46, %v1976_v44  ;;  %v2045_v12 = vmul.f32 %v4401_v46, %v1977_v36  ;;  %v1987_v41 = vld [vmem:[#allocation2 + $0x90] sm:$0xff] }
 0x2be   : > { %3321 = vst [vmem:[%s4649_s5 + $0x70] sm:$0xff] %v3221_v60   ;;  %v2301_v63 = vsel %vm2173_vm3, %v2109_v50, %v2237_v47  ;;  %vm2174_vm4 = vcmp.ge.f32.partialorder %v2110_v61, 0.0  ;;  %v2238_v0 = vmul.f32 0.01, %v2110_v61  ;;  %v2046_v25 = vmul.f32 %v4401_v46, %v1978_v37  ;;  %v1989_v47 = vld [vmem:[#allocation2 + $0xd0] sm:$0xff] }
 0x2bf   : > { %v3226_v1 = vpack.c.bf16 %v2301_v63, %v2300_v57  ;;  %vm2175_vm5 = vcmp.ge.f32.partialorder %v2111_v8, 0.0  ;;  %v2239_v42 = vmul.f32 0.01, %v2111_v8  ;;  %v2112_v34 = vadd.f32 %v4411_v24, %v2044_v19  ;;  %v1990_v63 = vld [vmem:[#allocation2 + $0xb8] sm:$0xff] }
 0x2c0   : > { %v2302_v5 = vsel %vm2174_vm4, %v2110_v61, %v2238_v0  ;;  %v2113_v10 = vadd.f32 %v4411_v24, %v2045_v12  ;;  %v2047_v11 = vmul.f32 %v4401_v46, %v1979_v2  ;;  %v2114_v62 = vadd.f32 %v4411_v24, %v2046_v25 }
 0x2c1   : > { %3322 = vst [vmem:[%s4649_s5 + $0x78] sm:$0xff] %v3226_v1   ;;  %v2303_v54 = vsel %vm2175_vm5, %v2111_v8, %v2239_v42  ;;  %vm2176_vm6 = vcmp.ge.f32.partialorder %v2112_v34, 0.0  ;;  %v2240_v55 = vmul.f32 0.01, %v2112_v34  ;;  %v2048_v16 = vmul.f32 %v4401_v46, %v1980_v28  ;;  %v1991_v1 = vld [vmem:[#allocation2 + $0x88] sm:$0xff] }
 0x2c2   : > { %v3231_v14 = vpack.c.bf16 %v2303_v54, %v2302_v5  ;;  %vm2177_vm7 = vcmp.ge.f32.partialorder %v2113_v10, 0.0  ;;  %v2241_v18 = vmul.f32 0.01, %v2113_v10  ;;  %v2115_v29 = vadd.f32 %v4411_v24, %v2047_v11  ;;  %v1992_v54 = vld [vmem:[#allocation2 + $0xa8] sm:$0xff] }
 0x2c3   : > { %v2304_v38 = vsel %vm2176_vm6, %v2112_v34, %v2240_v55  ;;  %vm2178_vm8 = vcmp.ge.f32.partialorder %v2114_v62, 0.0  ;;  %v2242_v3 = vmul.f32 0.01, %v2114_v62  ;;  %v2049_v39 = vmul.f32 %v4401_v46, %v1981_v58  ;;  %v1993_v55 = vld [vmem:[#allocation2 + $0x1c8] sm:$0xff] }
 0x2c4   : > { %3323 = vst [vmem:[%s4649_s5 + $0x80] sm:$0xff] %v3231_v14   ;;  %v2305_v45 = vsel %vm2177_vm7, %v2113_v10, %v2241_v18  ;;  %vm2179_vm9 = vcmp.ge.f32.partialorder %v2115_v29, 0.0  ;;  %v2243_v49 = vmul.f32 0.01, %v2115_v29  ;;  %v2116_v20 = vadd.f32 %v4411_v24, %v2048_v16 }
 0x2c5   : > { %v3236_v6 = vpack.c.bf16 %v2305_v45, %v2304_v38  ;;  %v2306_v26 = vsel %vm2178_vm8, %v2114_v62, %v2242_v3  ;;  %v2117_v31 = vadd.f32 %v4411_v24, %v2049_v39  ;;  %v2050_v32 = vmul.f32 %v4401_v46, %v1982_v9 }
 0x2c6   : > { %v2307_v30 = vsel %vm2179_vm9, %v2115_v29, %v2243_v49  ;;  %vm2180_vm10 = vcmp.ge.f32.partialorder %v2116_v20, 0.0  ;;  %v2244_v21 = vmul.f32 0.01, %v2116_v20  ;;  %v2051_v48 = vmul.f32 %v4401_v46, %v1983_v7  ;;  %v1994_v29 = vld [vmem:[#allocation2 + $0x170] sm:$0xff] }
 0x2c7   : > { %3324 = vst [vmem:[%s4649_s5 + $0x88] sm:$0xff] %v3236_v6   ;;  %v3241_v40 = vpack.c.bf16 %v2307_v30, %v2306_v26  ;;  %vm2181_vm11 = vcmp.ge.f32.partialorder %v2117_v31, 0.0  ;;  %v2245_v17 = vmul.f32 0.01, %v2117_v31  ;;  %v2118_v27 = vadd.f32 %v4411_v24, %v2050_v32  ;;  %v1996_v32 = vld [vmem:[#allocation2 + $0x68] sm:$0xff] }
 0x2c8   : > { %v2308_v51 = vsel %vm2180_vm10, %v2116_v20, %v2244_v21  ;;  %v2119_v56 = vadd.f32 %v4411_v24, %v2051_v48  ;;  %v2052_v4 = vmul.f32 %v4401_v46, %v1984_v22  ;;  %v2053_v23 = vmul.f32 %v4401_v46, %v1985_v13  ;;  %v1995_v20 = vld [vmem:[#allocation2 + $0x178] sm:$0xff] }
 0x2c9   : > { %3325 = vst [vmem:[%s4649_s5 + $0x90] sm:$0xff] %v3241_v40   ;;  %v2309_v52 = vsel %vm2181_vm11, %v2117_v31, %v2245_v17  ;;  %vm2182_vm12 = vcmp.ge.f32.partialorder %v2118_v27, 0.0  ;;  %v2246_v43 = vmul.f32 0.01, %v2118_v27  ;;  %v2054_v50 = vmul.f32 %v4401_v46, %v1986_v15  ;;  %v1997_v17 = vld [vmem:[#allocation2 + $0x190] sm:$0xff] }
 0x2ca   : > { %v3246_v44 = vpack.c.bf16 %v2309_v52, %v2308_v51  ;;  %vm2183_vm13 = vcmp.ge.f32.partialorder %v2119_v56, 0.0  ;;  %v2247_v36 = vmul.f32 0.01, %v2119_v56  ;;  %v2120_v35 = vadd.f32 %v4411_v24, %v2052_v4  ;;  %v1998_v52 = vld [vmem:[#allocation2 + $0x198] sm:$0xff] }
 0x2cb   : > { %v2310_v53 = vsel %vm2182_vm12, %v2118_v27, %v2246_v43  ;;  %v2121_v59 = vadd.f32 %v4411_v24, %v2053_v23  ;;  %v2055_v37 = vmul.f32 %v4401_v46, %v1987_v41  ;;  %v2122_v60 = vadd.f32 %v4411_v24, %v2054_v50 }
 0x2cc   : > { %3326 = vst [vmem:[%s4649_s5 + $0x98] sm:$0xff] %v3246_v44   ;;  %v2311_v61 = vsel %vm2183_vm13, %v2119_v56, %v2247_v36  ;;  %vm2184_vm14 = vcmp.ge.f32.partialorder %v2120_v35, 0.0  ;;  %v2248_v57 = vmul.f32 0.01, %v2120_v35  ;;  %v2056_v8 = vmul.f32 %v4401_v46, %v1988_v33  ;;  %v1999_v44 = vld [vmem:[#allocation2 + $0x38] sm:$0xff] }
 0x2cd   : > { %v3251_v19 = vpack.c.bf16 %v2311_v61, %v2310_v53  ;;  %vm2185_vm15 = vcmp.ge.f32.partialorder %v2121_v59, 0.0  ;;  %v2249_v12 = vmul.f32 0.01, %v2121_v59  ;;  %v2123_v2 = vadd.f32 %v4411_v24, %v2055_v37  ;;  %v2000_v61 = vld [vmem:[#allocation2 + $0xc0] sm:$0xff] }
 0x2ce   : > { %v2312_v0 = vsel %vm2184_vm14, %v2120_v35, %v2248_v57  ;;  %vm2186_vm0 = vcmp.ge.f32.partialorder %v2122_v60, 0.0  ;;  %v2250_v25 = vmul.f32 0.01, %v2122_v60  ;;  %v2057_v28 = vmul.f32 %v4401_v46, %v1989_v47  ;;  %v2001_v57 = vld [vmem:[#allocation2 + $0x1c0] sm:$0xff] }
 0x2cf   : > { %3327 = vst [vmem:[%s4649_s5 + $0xa0] sm:$0xff] %v3251_v19   ;;  %v2313_v42 = vsel %vm2185_vm15, %v2121_v59, %v2249_v12  ;;  %vm2187_vm1 = vcmp.ge.f32.partialorder %v2123_v2, 0.0  ;;  %v2251_v34 = vmul.f32 0.01, %v2123_v2  ;;  %v2124_v5 = vadd.f32 %v4411_v24, %v2056_v8 }
 0x2d0   : > { %v3256_v10 = vpack.c.bf16 %v2313_v42, %v2312_v0  ;;  %v2314_v11 = vsel %vm2186_vm0, %v2122_v60, %v2250_v25  ;;  %v2125_v62 = vadd.f32 %v4411_v24, %v2057_v28  ;;  %v2058_v58 = vmul.f32 %v4401_v46, %v1990_v63 }
 0x2d1   : > { %v2315_v16 = vsel %vm2187_vm1, %v2123_v2, %v2251_v34  ;;  %vm2188_vm2 = vcmp.ge.f32.partialorder %v2124_v5, 0.0  ;;  %v2252_v14 = vmul.f32 0.01, %v2124_v5  ;;  %v2059_v18 = vmul.f32 %v4401_v46, %v1991_v1  ;;  %v2002_v2 = vld [vmem:[#allocation2 + $0x158] sm:$0xff] }
 0x2d2   : > { %3328 = vst [vmem:[%s4649_s5 + $0xa8] sm:$0xff] %v3256_v10   ;;  %v3261_v9 = vpack.c.bf16 %v2315_v16, %v2314_v11  ;;  %vm2189_vm3 = vcmp.ge.f32.partialorder %v2125_v62, 0.0  ;;  %v2253_v38 = vmul.f32 0.01, %v2125_v62  ;;  %v2126_v3 = vadd.f32 %v4411_v24, %v2058_v58  ;;  %v2004_v58 = vld [vmem:[#allocation2 + $0x58] sm:$0xff] }
 0x2d3   : > { %v2316_v39 = vsel %vm2188_vm2, %v2124_v5, %v2252_v14  ;;  %v2127_v7 = vadd.f32 %v4411_v24, %v2059_v18  ;;  %v2060_v45 = vmul.f32 %v4401_v46, %v1992_v54  ;;  %v2061_v49 = vmul.f32 %v4401_v46, %v1993_v55  ;;  %v2003_v5 = vld [vmem:[#allocation2 + $0x10] sm:$0xff] }
 0x2d4   : > { %3329 = vst [vmem:[%s4649_s5 + $0xb0] sm:$0xff] %v3261_v9   ;;  %v2317_v6 = vsel %vm2189_vm3, %v2125_v62, %v2253_v38  ;;  %vm2190_vm4 = vcmp.ge.f32.partialorder %v2126_v3, 0.0  ;;  %v2254_v26 = vmul.f32 0.01, %v2126_v3  ;;  %v2062_v31 = vmul.f32 %v4401_v46, %v1994_v29  ;;  %v2005_v38 = vld [vmem:[#allocation2 + $0xa0] sm:$0xff] }
 0x2d5   : > { %v3266_v22 = vpack.c.bf16 %v2317_v6, %v2316_v39  ;;  %vm2191_vm5 = vcmp.ge.f32.partialorder %v2127_v7, 0.0  ;;  %v2255_v13 = vmul.f32 0.01, %v2127_v7  ;;  %v2128_v30 = vadd.f32 %v4411_v24, %v2060_v45 }
 0x2d6   : > { %v2318_v21 = vsel %vm2190_vm4, %v2126_v3, %v2254_v26  ;;  %v2129_v48 = vadd.f32 %v4411_v24, %v2061_v49  ;;  %v2063_v15 = vmul.f32 %v4401_v46, %v1995_v20  ;;  %v2130_v40 = vadd.f32 %v4411_v24, %v2062_v31 }
 0x2d7   : > { %3330 = vst [vmem:[%s4649_s5 + $0xb8] sm:$0xff] %v3266_v22   ;;  %v2319_v27 = vsel %vm2191_vm5, %v2127_v7, %v2255_v13  ;;  %vm2192_vm6 = vcmp.ge.f32.partialorder %v2128_v30, 0.0  ;;  %v2256_v51 = vmul.f32 0.01, %v2128_v30  ;;  %v2064_v56 = vmul.f32 %v4401_v46, %v1996_v32 }
 0x2d8   : > { %v3271_v4 = vpack.c.bf16 %v2319_v27, %v2318_v21  ;;  %vm2193_vm7 = vcmp.ge.f32.partialorder %v2129_v48, 0.0  ;;  %v2257_v23 = vmul.f32 0.01, %v2129_v48  ;;  %v2131_v41 = vadd.f32 %v4411_v24, %v2063_v15 }
 0x2d9   : > { %v2320_v43 = vsel %vm2192_vm6, %v2128_v30, %v2256_v51  ;;  %vm2194_vm8 = vcmp.ge.f32.partialorder %v2130_v40, 0.0  ;;  %v2258_v50 = vmul.f32 0.01, %v2130_v40  ;;  %v2065_v33 = vmul.f32 %v4401_v46, %v1997_v17 }
 0x2da   : > { %3331 = vst [vmem:[%s4649_s5 + $0xc0] sm:$0xff] %v3271_v4   ;;  %v2321_v36 = vsel %vm2193_vm7, %v2129_v48, %v2257_v23  ;;  %vm2195_vm9 = vcmp.ge.f32.partialorder %v2131_v41, 0.0  ;;  %v2259_v35 = vmul.f32 0.01, %v2131_v41  ;;  %v2132_v53 = vadd.f32 %v4411_v24, %v2064_v56 }
 0x2db   : > { %v3276_v59 = vpack.c.bf16 %v2321_v36, %v2320_v43  ;;  %v2322_v37 = vsel %vm2194_vm8, %v2130_v40, %v2258_v50  ;;  %v2133_v60 = vadd.f32 %v4411_v24, %v2065_v33  ;;  %v2066_v47 = vmul.f32 %v4401_v46, %v1998_v52 }
 0x2dc   : > { %v2323_v8 = vsel %vm2195_vm9, %v2131_v41, %v2259_v35  ;;  %vm2196_vm10 = vcmp.ge.f32.partialorder %v2132_v53, 0.0  ;;  %v2260_v19 = vmul.f32 0.01, %v2132_v53  ;;  %v2067_v12 = vmul.f32 %v4401_v46, %v1999_v44 }
 0x2dd   : > { %3332 = vst [vmem:[%s4649_s5 + $0xc8] sm:$0xff] %v3276_v59   ;;  %v3281_v63 = vpack.c.bf16 %v2323_v8, %v2322_v37  ;;  %vm2197_vm11 = vcmp.ge.f32.partialorder %v2133_v60, 0.0  ;;  %v2261_v0 = vmul.f32 0.01, %v2133_v60  ;;  %v2134_v25 = vadd.f32 %v4411_v24, %v2066_v47 }
 0x2de   : > { %v2324_v28 = vsel %vm2196_vm10, %v2132_v53, %v2260_v19  ;;  %v2135_v1 = vadd.f32 %v4411_v24, %v2067_v12  ;;  %v2068_v42 = vmul.f32 %v4401_v46, %v2000_v61  ;;  %v2069_v34 = vmul.f32 %v4401_v46, %v2001_v57 }
 0x2df   : > { %3333 = vst [vmem:[%s4649_s5 + $0xd0] sm:$0xff] %v3281_v63   ;;  %v2325_v10 = vsel %vm2197_vm11, %v2133_v60, %v2261_v0  ;;  %vm2198_vm12 = vcmp.ge.f32.partialorder %v2134_v25, 0.0  ;;  %v2262_v11 = vmul.f32 0.01, %v2134_v25  ;;  %v2070_v62 = vmul.f32 %v4401_v46, %v2002_v2 }
 0x2e0   : > { %v3286_v54 = vpack.c.bf16 %v2325_v10, %v2324_v28  ;;  %vm2199_vm13 = vcmp.ge.f32.partialorder %v2135_v1, 0.0  ;;  %v2263_v55 = vmul.f32 0.01, %v2135_v1  ;;  %v2136_v16 = vadd.f32 %v4411_v24, %v2068_v42 }
 0x2e1   : > { %v2326_v14 = vsel %vm2198_vm12, %v2134_v25, %v2262_v11  ;;  %v2137_v18 = vadd.f32 %v4411_v24, %v2069_v34  ;;  %v2071_v29 = vmul.f32 %v4401_v46, %v2003_v5  ;;  %v2138_v9 = vadd.f32 %v4411_v24, %v2070_v62 }
 0x2e2   : > { %3334 = vst [vmem:[%s4649_s5 + $0xd8] sm:$0xff] %v3286_v54   ;;  %v2327_v3 = vsel %vm2199_vm13, %v2135_v1, %v2263_v55  ;;  %vm2200_vm14 = vcmp.ge.f32.partialorder %v2136_v16, 0.0  ;;  %v2264_v39 = vmul.f32 0.01, %v2136_v16  ;;  %v2072_v7 = vmul.f32 %v4401_v46, %v2004_v58 }
 0x2e3   : > { %v3291_v45 = vpack.c.bf16 %v2327_v3, %v2326_v14  ;;  %vm2201_vm15 = vcmp.ge.f32.partialorder %v2137_v18, 0.0  ;;  %v2265_v49 = vmul.f32 0.01, %v2137_v18  ;;  %v2139_v20 = vadd.f32 %v4411_v24, %v2071_v29 }
 0x2e4   : > { %v2328_v6 = vsel %vm2200_vm14, %v2136_v16, %v2264_v39  ;;  %vm2202_vm0 = vcmp.ge.f32.partialorder %v2138_v9, 0.0  ;;  %v2266_v26 = vmul.f32 0.01, %v2138_v9  ;;  %v2073_v31 = vmul.f32 %v4401_v46, %v2005_v38 }
 0x2e5   : > { %3335 = vst [vmem:[%s4649_s5 + $0xe0] sm:$0xff] %v3291_v45   ;;  %v2329_v32 = vsel %vm2201_vm15, %v2137_v18, %v2265_v49  ;;  %vm2203_vm1 = vcmp.ge.f32.partialorder %v2139_v20, 0.0  ;;  %v2267_v22 = vmul.f32 0.01, %v2139_v20  ;;  %v2140_v13 = vadd.f32 %v4411_v24, %v2072_v7 }
 0x2e6   : > { %v3296_v30 = vpack.c.bf16 %v2329_v32, %v2328_v6  ;;  %v2330_v21 = vsel %vm2202_vm0, %v2138_v9, %v2266_v26  ;;  %v2141_v48 = vadd.f32 %v4411_v24, %v2073_v31 }
 0x2e7   : > { %v2331_v15 = vsel %vm2203_vm1, %v2139_v20, %v2267_v22  ;;  %vm2204_vm2 = vcmp.ge.f32.partialorder %v2140_v13, 0.0  ;;  %v2268_v40 = vmul.f32 0.01, %v2140_v13 }
 0x2e8   : > { %3336 = vst [vmem:[%s4649_s5 + $0xe8] sm:$0xff] %v3296_v30   ;;  %v3301_v46 = vpack.c.bf16 %v2331_v15, %v2330_v21  ;;  %vm2205_vm3 = vcmp.ge.f32.partialorder %v2141_v48, 0.0  ;;  %v2269_v17 = vmul.f32 0.01, %v2141_v48 }
 0x2e9   : > { %v2332_v27 = vsel %vm2204_vm2, %v2140_v13, %v2268_v40 }
 0x2ea   : > { %3337 = vst [vmem:[%s4649_s5 + $0xf0] sm:$0xff] %v3301_v46   ;;  %v2333_v51 = vsel %vm2205_vm3, %v2141_v48, %v2269_v17 }
 0x2eb   : > { %v3306_v56 = vpack.c.bf16 %v2333_v51, %v2332_v27 }
 0x2ed   : > { %3338 = vst [vmem:[%s4649_s5 + $0xf8] sm:$0xff] %v3306_v56  }
 0x2ee PF: > { %s15_s20 = sadd.s32 1, %s3410_s20   ;;  %s4650_s18 = smov %s3406_s19 }
 0x2ef   : > { %p12_p6 = scmp.ge.s32.totalorder %s15_s20, 4   ;;  %s4651_s19 = smov %s4653_s21 }
 0x2f1   :  { %14 = sbr.rel (!%p12_p6) target bundleno = 2 (0x2), region = 88 }

</bundles_post_ra>
